<compile_context>
chip_gen: v6e
topology: v6e:2x2x1
jax: 0.10.0
libtpu: 0.0.40
codegen_flags: <defaults>
</compile_context>

<pallas_src>
import jax
import jax.numpy as jnp
from jax import lax
from jax.experimental import pallas as pl
from jax.experimental.pallas import tpu as pltpu


def _round_up(x, m):
    return ((x + m - 1) // m) * m


def _sigmoid_via_tanh(x):
    # sigmoid(x) == 0.5 * tanh(0.5 * x) + 0.5 : one EUP push (tanh) instead of
    # exp + reciprocal; the extra scale/add lands on spare VALU slots.
    return 0.5 * jnp.tanh(0.5 * x) + 0.5


def _pick_time_block(T, time_block):
    """Largest multiple-of-8 divisor of T that is <= time_block, else T."""
    best = 0
    d = 8
    while d <= min(time_block, T):
        if T % d == 0:
            best = d
        d += 8
    # Fallback TS = T is still legal (block dim == full dim) and the fori_loop
    # step loop keeps code size bounded even for long sequences.
    return best if best else T


def _pick_vmem_limit():
    """Generation-aware scoped-VMEM budget: ~3/4 of physical, capped 100 MiB."""
    try:
        cap = int(pltpu.get_tpu_info().vmem_capacity_bytes)
    except Exception:  # hardware query unavailable -> conservative default
        cap = 64 * 1024 * 1024  # v7x physical VMEM per TensorCore
    return min((cap * 3) // 4, 100 * 1024 * 1024)


def _make_recurrent_kernel(n_layers, hidden, ts, bs, reverse, unroll):
    H, L, TS, BS = hidden, n_layers, ts, bs

    def kernel(*refs):
        # inputs : x_t(TS,BS,D), h0(L,BS,H), c0(L,BS,H), w_hh(L,H,4H),
        #          bias(L,1,4H), w_ih_0 .. w_ih_{L-1}
        # outputs: out_t(TS,BS,H), h_n(L,BS,H), c_n(L,BS,H)
        # scratch: gx(TS,BS,4H) f32, seq(TS,BS,H) f32
        x_ref, h0_ref, c0_ref, whh_ref, b_ref = refs[:5]
        wih_refs = refs[5:5 + L]
        out_ref, hn_ref, cn_ref, gx_ref, seq_ref = refs[5 + L:]

        tb = pl.program_id(1)

        @pl.when(tb == 0)
        def _():
            # h_n / c_n output blocks are resident along the sequential time
            # axis (constant block index) and double as the running state.
            hn_ref[...] = h0_ref[...]
            cn_ref[...] = c0_ref[...]

        for layer in range(L):                      # static unroll, L is small
            # ---- hoisted, loop-invariant per-layer loads ----------------
            w_ih = wih_refs[layer][...]             # (D_in, 4H)
            w_hh = whh_ref[layer]                   # (H, 4H)
            bias = b_ref[layer].astype(jnp.float32)  # (1, 4H)

            xin = x_ref[...] if layer == 0 else seq_ref[...]  # (TS, BS, D_in)

            # cuDNN-style hoist: one fat MXU matmul (M = TS*BS) computes the
            # input projection for the whole time block, bias folded in; off
            # the recurrent critical path.
            gx = jnp.dot(
                xin.reshape(TS * BS, xin.shape[-1]).astype(w_ih.dtype), w_ih,
                preferred_element_type=jnp.float32)           # (TS*BS, 4H)
            gx_ref[...] = (gx + bias).reshape(TS, BS, 4 * H)

            # Top layer writes straight into the (TS, BS, H) output block;
            # lower layers into the seq scratch feeding the next layer.
            dst_ref = out_ref if layer == L - 1 else seq_ref

            def step(i, carry):
                h_prev, c_prev = carry                        # (BS, H) f32
                s = (TS - 1 - i) if reverse else i
                gates = gx_ref[s] + jnp.dot(
                    h_prev.astype(w_hh.dtype), w_hh,
                    preferred_element_type=jnp.float32)       # (BS, 4H)
                i_g = _sigmoid_via_tanh(gates[:, 0 * H:1 * H])
                f_g = _sigmoid_via_tanh(gates[:, 1 * H:2 * H])
                g_g = jnp.tanh(gates[:, 2 * H:3 * H])
                o_g = _sigmoid_via_tanh(gates[:, 3 * H:4 * H])
                c_new = f_g * c_prev + i_g * g_g
                h_new = o_g * jnp.tanh(c_new)
                dst_ref[s] = h_new                 # full (BS, H) tile store
                return (h_new, c_new)

            h_last, c_last = lax.fori_loop(
                0, TS, step, (hn_ref[layer], cn_ref[layer]), unroll=unroll)
            hn_ref[layer] = h_last
            cn_ref[layer] = c_last

    return kernel


def recurrent_forward(x_btd, pre_hidden, params, *, reverse=False,
                      batch_block=128, time_block=16,
                      single_buffer_weights=False):
    """Pallas equivalent of Recurrent.forward wrapping a stacked LSTM cell.

    x_btd:      [B, T, D] float32 (batch-first, as in the PyTorch module)
    pre_hidden: (h0 [L, B, H], c0 [L, B, H]) float32
    params:     per-layer (w_ih [D_in, 4H], w_hh [H, 4H], b [1, 4H]);
                weights may be bf16 (activations are cast to the weight dtype
                before each MXU dot; accumulation and gate math stay f32 --
                note bf16 rounding of the recurrent state compounds over T,
                intended for inference).
    single_buffer_weights: request pl.Buffered(1) for the stationary weight /
                bias / initial-state operands so they are not double-buffered
                in VMEM (recommended for large weights on v7x's 64 MiB VMEM).
    returns:    (outputs [B, T, H], (h_n [L, B, H], c_n [L, B, H]))
    """
    B, T, D = x_btd.shape
    h0, c0 = pre_hidden
    L, _, H = h0.shape

    # ---- operand packing -------------------------------------------------
    wih_list = [w_ih for (w_ih, _, _) in params]
    whh_stack = jnp.stack([w_hh for (_, w_hh, _) in params], axis=0)  # (L,H,4H)
    bias_stack = jnp.stack(
        [jnp.reshape(b, (1, 4 * H)) for (_, _, b) in params],
        axis=0).astype(jnp.float32)                                   # (L,1,4H)

    # ---- tiling ------------------------------------------------------------
    # Batch block up to 128 rows per MXU pass, padded to a multiple of 8.
    BS = max(8, min(_round_up(batch_block, 8), _round_up(B, 8)))
    B_pad = _round_up(B, BS)
    TS = _pick_time_block(T, time_block)
    n_bs, n_tb = B_pad // BS, T // TS

    if B_pad != B:
        pad = B_pad - B
        x_btd = jnp.pad(x_btd, ((0, pad), (0, 0), (0, 0)))
        h0 = jnp.pad(h0, ((0, 0), (0, pad), (0, 0)))
        c0 = jnp.pad(c0, ((0, 0), (0, pad), (0, 0)))

    # Time-major inside the kernel: per-step slices become full (BS, .) tiles.
    x_t = jnp.swapaxes(x_btd, 0, 1)                  # (T, B_pad, D)

    if reverse:
        t_map = lambda b_i, t_i: (n_tb - 1 - t_i, b_i, 0)
    else:
        t_map = lambda b_i, t_i: (t_i, b_i, 0)
    state_map = lambda b_i, t_i: (0, b_i, 0)
    const3 = lambda b_i, t_i: (0, 0, 0)
    const2 = lambda b_i, t_i: (0, 0)

    def _stationary(shape, index_map):
        # Weights / biases / initial state are constant over the whole grid.
        if single_buffer_weights:
            return pl.BlockSpec(shape, index_map, pipeline_mode=pl.Buffered(1))
        return pl.BlockSpec(shape, index_map)

    in_specs = [
        pl.BlockSpec((TS, BS, D), t_map),            # x (streamed over time)
        _stationary((L, BS, H), state_map),          # h0
        _stationary((L, BS, H), state_map),          # c0
        _stationary((L, H, 4 * H), const3),          # w_hh stack
        _stationary((L, 1, 4 * H), const3),          # bias stack
    ] + [_stationary(w.shape, const2) for w in wih_list]   # per-layer w_ih

    out_specs = [
        pl.BlockSpec((TS, BS, H), t_map),            # outputs (streamed)
        pl.BlockSpec((L, BS, H), state_map),         # h_n (resident over time)
        pl.BlockSpec((L, BS, H), state_map),         # c_n (resident over time)
    ]
    out_shape = [
        jax.ShapeDtypeStruct((T, B_pad, H), jnp.float32),
        jax.ShapeDtypeStruct((L, B_pad, H), jnp.float32),
        jax.ShapeDtypeStruct((L, B_pad, H), jnp.float32),
    ]

    kernel = _make_recurrent_kernel(L, H, TS, BS, reverse, unroll=TS <= 32)

    out_t, h_n, c_n = pl.pallas_call(
        kernel,
        out_shape=out_shape,
        grid_spec=pltpu.PrefetchScalarGridSpec(
            num_scalar_prefetch=0,
            grid=(n_bs, n_tb),
            in_specs=in_specs,
            out_specs=out_specs,
            scratch_shapes=[
                pltpu.VMEM((TS, BS, 4 * H), jnp.float32),  # gx: input proj.
                pltpu.VMEM((TS, BS, H), jnp.float32),      # per-layer hidden seq
            ],
        ),
        compiler_params=pltpu.CompilerParams(
            # Batch shards are independent ("parallel"); time is sequential.
            dimension_semantics=("parallel", "arbitrary"),
            vmem_limit_bytes=_pick_vmem_limit(),
        ),
    )(x_t, h0, c0, whh_stack, bias_stack, *wih_list)

    outputs = jnp.swapaxes(out_t, 0, 1)[:B]
    return outputs, (h_n[:, :B, :], c_n[:, :B, :])


def _reference_forward(x_btd, pre_hidden, params, *, reverse=False):
    """Pure-JAX reference mirroring the PyTorch loop."""
    B, T, D = x_btd.shape
    h, c = pre_hidden
    H = h.shape[-1]
    time_order = list(range(T))
    if reverse:
        time_order = time_order[::-1]
    outs = [None] * T
    for t in time_order:
        x = x_btd[:, t, :]
        new_h, new_c = [], []
        for layer, (w_ih, w_hh, b) in enumerate(params):
            gates = x @ w_ih + h[layer] @ w_hh + b
            i_g = jax.nn.sigmoid(gates[:, 0 * H:1 * H])
            f_g = jax.nn.sigmoid(gates[:, 1 * H:2 * H])
            g_g = jnp.tanh(gates[:, 2 * H:3 * H])
            o_g = jax.nn.sigmoid(gates[:, 3 * H:4 * H])
            c_l = f_g * c[layer] + i_g * g_g
            h_l = o_g * jnp.tanh(c_l)
            new_h.append(h_l)
            new_c.append(c_l)
            x = h_l
        h = jnp.stack(new_h)
        c = jnp.stack(new_c)
        outs[t] = x
    return jnp.stack(outs, axis=1), (h, c)


if __name__ == "__main__":
    # Small but hardware-aligned shapes: B multiple of 8, H multiple of 128.
    B, T, D, H, L = 8, 16, 32, 128, 2

    key = jax.random.PRNGKey(0)
    ks = jax.random.split(key, 2 + L)

    x = jax.random.normal(ks[0], (B, T, D), dtype=jnp.float32)
    h0 = jax.random.normal(ks[1], (L, B, H), dtype=jnp.float32) * 0.1
    c0 = jnp.zeros((L, B, H), dtype=jnp.float32)

    params = []
    for layer in range(L):
        d_in = D if layer == 0 else H
        k_ih, k_hh, k_b = jax.random.split(ks[2 + layer], 3)
        params.append((
            jax.random.normal(k_ih, (d_in, 4 * H), dtype=jnp.float32) * 0.1,
            jax.random.normal(k_hh, (H, 4 * H), dtype=jnp.float32) * 0.1,
            jax.random.normal(k_b, (1, 4 * H), dtype=jnp.float32) * 0.1,
        ))

    # f32 weights, multi time block (TS=8): strict check, forward and reverse.
    for rev in (False, True):
        out, (h_n, c_n) = recurrent_forward(x, (h0, c0), params, reverse=rev,
                                            time_block=8)
        jax.block_until_ready((out, h_n, c_n))
        ref_out, (ref_h, ref_c) = _reference_forward(x, (h0, c0), params,
                                                     reverse=rev)
        assert out.shape == (B, T, H)
        assert h_n.shape == (L, B, H) and c_n.shape == (L, B, H)
        assert jnp.allclose(out, ref_out, atol=2e-3, rtol=2e-3), rev
        assert jnp.allclose(h_n, ref_h, atol=2e-3, rtol=2e-3), rev
        assert jnp.allclose(c_n, ref_c, atol=2e-3, rtol=2e-3), rev

    ref_fwd, (ref_fh, ref_fc) = _reference_forward(x, (h0, c0), params,
                                                   reverse=False)

    # Single time block (TS == T) path.
    out1, (h1, c1) = recurrent_forward(x, (h0, c0), params, time_block=16)
    jax.block_until_ready((out1, h1, c1))
    assert jnp.allclose(out1, ref_fwd, atol=2e-3, rtol=2e-3)
    assert jnp.allclose(h1, ref_fh, atol=2e-3, rtol=2e-3)
    assert jnp.allclose(c1, ref_fc, atol=2e-3, rtol=2e-3)

    # Ragged batch (B=12 -> padded to 16) sharded over two batch blocks.
    B2 = 12
    x2 = jax.random.normal(jax.random.PRNGKey(1), (B2, T, D), jnp.float32)
    h02 = jax.random.normal(jax.random.PRNGKey(2), (L, B2, H), jnp.float32) * 0.1
    c02 = jnp.zeros((L, B2, H), dtype=jnp.float32)
    out2, (h2, c2) = recurrent_forward(x2, (h02, c02), params,
                                       batch_block=8, time_block=8)
    jax.block_until_ready((out2, h2, c2))
    ref2, (rh2, rc2) = _reference_forward(x2, (h02, c02), params)
    assert out2.shape == (B2, T, H)
    assert jnp.allclose(out2, ref2, atol=2e-3, rtol=2e-3)
    assert jnp.allclose(h2, rh2, atol=2e-3, rtol=2e-3)
    assert jnp.allclose(c2, rc2, atol=2e-3, rtol=2e-3)

    # bf16-weight path (halves weight VMEM/DMA); loose smoke check vs f32 ref.
    # TODO(synk): bf16 rounding of the recurrent state compounds over T; this
    # path targets inference with bounded sequence length.
    params_bf16 = [(w.astype(jnp.bfloat16), u.astype(jnp.bfloat16),
                    b.astype(jnp.bfloat16)) for (w, u, b) in params]
    out_b, (h_b, c_b) = recurrent_forward(x, (h0, c0), params_bf16,
                                          time_block=8)
    jax.block_until_ready((out_b, h_b, c_b))
    assert bool(jnp.all(jnp.isfinite(out_b)))
    assert float(jnp.max(jnp.abs(out_b - ref_fwd))) < 0.15

    print("KERNEL_OK")
</pallas_src>

<mosaic_0001>
module attributes {stable_mosaic.version = 11 : i64} {
  func.func @kernel(%arg0: i32, %arg1: i32, %arg2: memref<8x8x32xf32, #tpu.memory_space<vmem>>, %arg3: memref<2x8x128xf32, #tpu.memory_space<vmem>>, %arg4: memref<2x8x128xf32, #tpu.memory_space<vmem>>, %arg5: memref<2x128x512xf32, #tpu.memory_space<vmem>>, %arg6: memref<2x1x512xf32, #tpu.memory_space<vmem>>, %arg7: memref<32x512xf32, #tpu.memory_space<vmem>>, %arg8: memref<128x512xf32, #tpu.memory_space<vmem>>, %arg9: memref<8x8x128xf32, #tpu.memory_space<vmem>>, %arg10: memref<2x8x128xf32, #tpu.memory_space<vmem>>, %arg11: memref<2x8x128xf32, #tpu.memory_space<vmem>>, %arg12: memref<8x8x512xf32, #tpu.memory_space<vmem>>, %arg13: memref<8x8x128xf32, #tpu.memory_space<vmem>>) attributes {dimension_semantics = [#tpu.dimension_semantics<parallel>, #tpu.dimension_semantics<arbitrary>], iteration_bounds = array<i64: 1, 2>, scalar_prefetch = 0 : i64, scratch_operands = 2 : i64, tpu.core_type = #tpu.core_type<tc>, window_params = [{transform_indices = @transform_0, window_bounds = array<i64: 8, 8, 32>}, {transform_indices = @transform_1, window_bounds = array<i64: 2, 8, 128>}, {transform_indices = @transform_2, window_bounds = array<i64: 2, 8, 128>}, {pipeline_mode = #tpu.pipeline_mode<synchronous>, transform_indices = @transform_3, window_bounds = array<i64: 2, 128, 512>}, {pipeline_mode = #tpu.pipeline_mode<synchronous>, transform_indices = @transform_4, window_bounds = array<i64: 2, 1, 512>}, {pipeline_mode = #tpu.pipeline_mode<synchronous>, transform_indices = @transform_5, window_bounds = array<i64: 32, 512>}, {pipeline_mode = #tpu.pipeline_mode<synchronous>, transform_indices = @transform_6, window_bounds = array<i64: 128, 512>}, {transform_indices = @transform_7, window_bounds = array<i64: 8, 8, 128>}, {transform_indices = @transform_8, window_bounds = array<i64: 2, 8, 128>}, {transform_indices = @transform_9, window_bounds = array<i64: 2, 8, 128>}]} {
    %c0_i32 = arith.constant 0 : i32
    %0 = arith.cmpi eq, %arg1, %c0_i32 : i32
    %1 = arith.extui %0 : i1 to i32
    %c0_i32_0 = arith.constant 0 : i32
    %2 = arith.cmpi ne, %1, %c0_i32_0 : i32
    scf.if %2 {
      %c0_286 = arith.constant 0 : index
      %c0_287 = arith.constant 0 : index
      %c0_288 = arith.constant 0 : index
      %687 = vector.load %arg3[%c0_286, %c0_287, %c0_288] : memref<2x8x128xf32, #tpu.memory_space<vmem>>, vector<2x8x128xf32>
      %c0_289 = arith.constant 0 : index
      %c0_290 = arith.constant 0 : index
      %c0_291 = arith.constant 0 : index
      %688 = vector.load %arg10[%c0_289, %c0_290, %c0_291] : memref<2x8x128xf32, #tpu.memory_space<vmem>>, vector<2x8x128xf32>
      tpu.vector_store %arg10[%c0_289, %c0_290, %c0_291], %687 {strides = array<i32>} : memref<2x8x128xf32, #tpu.memory_space<vmem>>, vector<2x8x128xf32>,
      %c0_292 = arith.constant 0 : index
      %c0_293 = arith.constant 0 : index
      %c0_294 = arith.constant 0 : index
      %689 = vector.load %arg4[%c0_292, %c0_293, %c0_294] : memref<2x8x128xf32, #tpu.memory_space<vmem>>, vector<2x8x128xf32>
      %c0_295 = arith.constant 0 : index
      %c0_296 = arith.constant 0 : index
      %c0_297 = arith.constant 0 : index
      %690 = vector.load %arg11[%c0_295, %c0_296, %c0_297] : memref<2x8x128xf32, #tpu.memory_space<vmem>>, vector<2x8x128xf32>
      tpu.vector_store %arg11[%c0_295, %c0_296, %c0_297], %689 {strides = array<i32>} : memref<2x8x128xf32, #tpu.memory_space<vmem>>, vector<2x8x128xf32>,
    } else {
    }
    %c0 = arith.constant 0 : index
    %c0_1 = arith.constant 0 : index
    %3 = vector.load %arg7[%c0, %c0_1] : memref<32x512xf32, #tpu.memory_space<vmem>>, vector<32x512xf32>
    %c0_2 = arith.constant 0 : index
    %c0_3 = arith.constant 0 : index
    %c0_4 = arith.constant 0 : index
    %4 = vector.load %arg5[%c0_2, %c0_3, %c0_4] : memref<2x128x512xf32, #tpu.memory_space<vmem>>, vector<1x128x512xf32>
    %5 = vector.shape_cast %4 : vector<1x128x512xf32> to vector<128x512xf32>
    %c0_5 = arith.constant 0 : index
    %c0_6 = arith.constant 0 : index
    %c0_7 = arith.constant 0 : index
    %6 = vector.load %arg6[%c0_5, %c0_6, %c0_7] : memref<2x1x512xf32, #tpu.memory_space<vmem>>, vector<1x1x512xf32>
    %7 = vector.shape_cast %6 : vector<1x1x512xf32> to vector<1x512xf32>
    %c0_8 = arith.constant 0 : index
    %c0_9 = arith.constant 0 : index
    %c0_10 = arith.constant 0 : index
    %8 = vector.load %arg2[%c0_8, %c0_9, %c0_10] : memref<8x8x32xf32, #tpu.memory_space<vmem>>, vector<8x8x32xf32>
    %9 = vector.shape_cast %8 : vector<8x8x32xf32> to vector<64x32xf32>
    %cst = arith.constant dense<0.000000e+00> : vector<64x512xf32>
    %10 = tpu.matmul %9, %3, %cst {dimension_numbers = #tpu.dot_dimension_numbers<[1], [0], [0], [1], [0, 0, 1, 1], [], []>} : vector<64x32xf32>, vector<32x512xf32>, vector<64x512xf32> -> vector<64x512xf32>
    %11 = vector.broadcast %7 : vector<1x512xf32> to vector<64x512xf32>
    %12 = arith.addf %10, %11 : vector<64x512xf32>
    %13 = vector.shape_cast %12 : vector<64x512xf32> to vector<8x8x512xf32>
    %c0_11 = arith.constant 0 : index
    %c0_12 = arith.constant 0 : index
    %c0_13 = arith.constant 0 : index
    %14 = vector.load %arg12[%c0_11, %c0_12, %c0_13] : memref<8x8x512xf32, #tpu.memory_space<vmem>>, vector<8x8x512xf32>
    tpu.vector_store %arg12[%c0_11, %c0_12, %c0_13], %13 {strides = array<i32>} : memref<8x8x512xf32, #tpu.memory_space<vmem>>, vector<8x8x512xf32>,
    %c0_14 = arith.constant 0 : index
    %c0_15 = arith.constant 0 : index
    %c0_16 = arith.constant 0 : index
    %15 = vector.load %arg10[%c0_14, %c0_15, %c0_16] : memref<2x8x128xf32, #tpu.memory_space<vmem>>, vector<1x8x128xf32>
    %16 = vector.shape_cast %15 : vector<1x8x128xf32> to vector<8x128xf32>
    %c0_17 = arith.constant 0 : index
    %c0_18 = arith.constant 0 : index
    %c0_19 = arith.constant 0 : index
    %17 = vector.load %arg11[%c0_17, %c0_18, %c0_19] : memref<2x8x128xf32, #tpu.memory_space<vmem>>, vector<1x8x128xf32>
    %18 = vector.shape_cast %17 : vector<1x8x128xf32> to vector<8x128xf32>
    %c0_i32_20 = arith.constant 0 : i32
    %19 = arith.index_cast %c0_i32_20 : i32 to index
    %c0_21 = arith.constant 0 : index
    %c0_22 = arith.constant 0 : index
    %20 = vector.load %arg12[%19, %c0_21, %c0_22] : memref<8x8x512xf32, #tpu.memory_space<vmem>>, vector<1x8x512xf32>
    %21 = vector.shape_cast %20 : vector<1x8x512xf32> to vector<8x512xf32>
    %cst_23 = arith.constant dense<0.000000e+00> : vector<8x512xf32>
    %22 = tpu.matmul %16, %5, %cst_23 {dimension_numbers = #tpu.dot_dimension_numbers<[1], [0], [0], [1], [0, 0, 1, 1], [], []>} : vector<8x128xf32>, vector<128x512xf32>, vector<8x512xf32> -> vector<8x512xf32>
    %23 = arith.addf %21, %22 : vector<8x512xf32>
    %24 = vector.extract_strided_slice %23 {offsets = [0, 0], sizes = [8, 128], strides = [1, 1]} : vector<8x512xf32> to vector<8x128xf32>
    %cst_24 = arith.constant 5.000000e-01 : f32
    %25 = vector.broadcast %cst_24 : f32 to vector<8x128xf32>
    %26 = arith.mulf %25, %24 : vector<8x128xf32>
    %27 = math.tanh %26 : vector<8x128xf32>
    %cst_25 = arith.constant 5.000000e-01 : f32
    %28 = vector.broadcast %cst_25 : f32 to vector<8x128xf32>
    %29 = arith.mulf %28, %27 : vector<8x128xf32>
    %cst_26 = arith.constant 5.000000e-01 : f32
    %30 = vector.broadcast %cst_26 : f32 to vector<8x128xf32>
    %31 = arith.addf %29, %30 : vector<8x128xf32>
    %32 = vector.extract_strided_slice %23 {offsets = [0, 128], sizes = [8, 128], strides = [1, 1]} : vector<8x512xf32> to vector<8x128xf32>
    %cst_27 = arith.constant 5.000000e-01 : f32
    %33 = vector.broadcast %cst_27 : f32 to vector<8x128xf32>
    %34 = arith.mulf %33, %32 : vector<8x128xf32>
    %35 = math.tanh %34 : vector<8x128xf32>
    %cst_28 = arith.constant 5.000000e-01 : f32
    %36 = vector.broadcast %cst_28 : f32 to vector<8x128xf32>
    %37 = arith.mulf %36, %35 : vector<8x128xf32>
    %cst_29 = arith.constant 5.000000e-01 : f32
    %38 = vector.broadcast %cst_29 : f32 to vector<8x128xf32>
    %39 = arith.addf %37, %38 : vector<8x128xf32>
    %40 = vector.extract_strided_slice %23 {offsets = [0, 256], sizes = [8, 128], strides = [1, 1]} : vector<8x512xf32> to vector<8x128xf32>
    %41 = math.tanh %40 : vector<8x128xf32>
    %42 = vector.extract_strided_slice %23 {offsets = [0, 384], sizes = [8, 128], strides = [1, 1]} : vector<8x512xf32> to vector<8x128xf32>
    %cst_30 = arith.constant 5.000000e-01 : f32
    %43 = vector.broadcast %cst_30 : f32 to vector<8x128xf32>
    %44 = arith.mulf %43, %42 : vector<8x128xf32>
    %45 = math.tanh %44 : vector<8x128xf32>
    %cst_31 = arith.constant 5.000000e-01 : f32
    %46 = vector.broadcast %cst_31 : f32 to vector<8x128xf32>
    %47 = arith.mulf %46, %45 : vector<8x128xf32>
    %cst_32 = arith.constant 5.000000e-01 : f32
    %48 = vector.broadcast %cst_32 : f32 to vector<8x128xf32>
    %49 = arith.addf %47, %48 : vector<8x128xf32>
    %50 = arith.mulf %39, %18 : vector<8x128xf32>
    %51 = arith.mulf %31, %41 : vector<8x128xf32>
    %52 = arith.addf %50, %51 : vector<8x128xf32>
    %53 = math.tanh %52 : vector<8x128xf32>
    %54 = arith.mulf %49, %53 : vector<8x128xf32>
    %55 = arith.index_cast %c0_i32_20 : i32 to index
    %c0_33 = arith.constant 0 : index
    %c0_34 = arith.constant 0 : index
    %56 = vector.load %arg13[%55, %c0_33, %c0_34] : memref<8x8x128xf32, #tpu.memory_space<vmem>>, vector<1x8x128xf32>
    %57 = vector.shape_cast %56 : vector<1x8x128xf32> to vector<8x128xf32>
    %58 = vector.shape_cast %54 : vector<8x128xf32> to vector<1x8x128xf32>
    tpu.vector_store %arg13[%55, %c0_33, %c0_34], %58 {strides = array<i32>} : memref<8x8x128xf32, #tpu.memory_space<vmem>>, vector<1x8x128xf32>,
    %c1_i32 = arith.constant 1 : i32
    %59 = arith.index_cast %c1_i32 : i32 to index
    %c0_35 = arith.constant 0 : index
    %c0_36 = arith.constant 0 : index
    %60 = vector.load %arg12[%59, %c0_35, %c0_36] : memref<8x8x512xf32, #tpu.memory_space<vmem>>, vector<1x8x512xf32>
    %61 = vector.shape_cast %60 : vector<1x8x512xf32> to vector<8x512xf32>
    %cst_37 = arith.constant dense<0.000000e+00> : vector<8x512xf32>
    %62 = tpu.matmul %54, %5, %cst_37 {dimension_numbers = #tpu.dot_dimension_numbers<[1], [0], [0], [1], [0, 0, 1, 1], [], []>} : vector<8x128xf32>, vector<128x512xf32>, vector<8x512xf32> -> vector<8x512xf32>
    %63 = arith.addf %61, %62 : vector<8x512xf32>
    %64 = vector.extract_strided_slice %63 {offsets = [0, 0], sizes = [8, 128], strides = [1, 1]} : vector<8x512xf32> to vector<8x128xf32>
    %cst_38 = arith.constant 5.000000e-01 : f32
    %65 = vector.broadcast %cst_38 : f32 to vector<8x128xf32>
    %66 = arith.mulf %65, %64 : vector<8x128xf32>
    %67 = math.tanh %66 : vector<8x128xf32>
    %cst_39 = arith.constant 5.000000e-01 : f32
    %68 = vector.broadcast %cst_39 : f32 to vector<8x128xf32>
    %69 = arith.mulf %68, %67 : vector<8x128xf32>
    %cst_40 = arith.constant 5.000000e-01 : f32
    %70 = vector.broadcast %cst_40 : f32 to vector<8x128xf32>
    %71 = arith.addf %69, %70 : vector<8x128xf32>
    %72 = vector.extract_strided_slice %63 {offsets = [0, 128], sizes = [8, 128], strides = [1, 1]} : vector<8x512xf32> to vector<8x128xf32>
    %cst_41 = arith.constant 5.000000e-01 : f32
    %73 = vector.broadcast %cst_41 : f32 to vector<8x128xf32>
    %74 = arith.mulf %73, %72 : vector<8x128xf32>
    %75 = math.tanh %74 : vector<8x128xf32>
    %cst_42 = arith.constant 5.000000e-01 : f32
    %76 = vector.broadcast %cst_42 : f32 to vector<8x128xf32>
    %77 = arith.mulf %76, %75 : vector<8x128xf32>
    %cst_43 = arith.constant 5.000000e-01 : f32
    %78 = vector.broadcast %cst_43 : f32 to vector<8x128xf32>
    %79 = arith.addf %77, %78 : vector<8x128xf32>
    %80 = vector.extract_strided_slice %63 {offsets = [0, 256], sizes = [8, 128], strides = [1, 1]} : vector<8x512xf32> to vector<8x128xf32>
    %81 = math.tanh %80 : vector<8x128xf32>
    %82 = vector.extract_strided_slice %63 {offsets = [0, 384], sizes = [8, 128], strides = [1, 1]} : vector<8x512xf32> to vector<8x128xf32>
    %cst_44 = arith.constant 5.000000e-01 : f32
    %83 = vector.broadcast %cst_44 : f32 to vector<8x128xf32>
    %84 = arith.mulf %83, %82 : vector<8x128xf32>
    %85 = math.tanh %84 : vector<8x128xf32>
    %cst_45 = arith.constant 5.000000e-01 : f32
    %86 = vector.broadcast %cst_45 : f32 to vector<8x128xf32>
    %87 = arith.mulf %86, %85 : vector<8x128xf32>
    %cst_46 = arith.constant 5.000000e-01 : f32
    %88 = vector.broadcast %cst_46 : f32 to vector<8x128xf32>
    %89 = arith.addf %87, %88 : vector<8x128xf32>
    %90 = arith.mulf %79, %52 : vector<8x128xf32>
    %91 = arith.mulf %71, %81 : vector<8x128xf32>
    %92 = arith.addf %90, %91 : vector<8x128xf32>
    %93 = math.tanh %92 : vector<8x128xf32>
    %94 = arith.mulf %89, %93 : vector<8x128xf32>
    %95 = arith.index_cast %c1_i32 : i32 to index
    %c0_47 = arith.constant 0 : index
    %c0_48 = arith.constant 0 : index
    %96 = vector.load %arg13[%95, %c0_47, %c0_48] : memref<8x8x128xf32, #tpu.memory_space<vmem>>, vector<1x8x128xf32>
    %97 = vector.shape_cast %96 : vector<1x8x128xf32> to vector<8x128xf32>
    %98 = vector.shape_cast %94 : vector<8x128xf32> to vector<1x8x128xf32>
    tpu.vector_store %arg13[%95, %c0_47, %c0_48], %98 {strides = array<i32>} : memref<8x8x128xf32, #tpu.memory_space<vmem>>, vector<1x8x128xf32>,
    %c2_i32 = arith.constant 2 : i32
    %99 = arith.index_cast %c2_i32 : i32 to index
    %c0_49 = arith.constant 0 : index
    %c0_50 = arith.constant 0 : index
    %100 = vector.load %arg12[%99, %c0_49, %c0_50] : memref<8x8x512xf32, #tpu.memory_space<vmem>>, vector<1x8x512xf32>
    %101 = vector.shape_cast %100 : vector<1x8x512xf32> to vector<8x512xf32>
    %cst_51 = arith.constant dense<0.000000e+00> : vector<8x512xf32>
    %102 = tpu.matmul %94, %5, %cst_51 {dimension_numbers = #tpu.dot_dimension_numbers<[1], [0], [0], [1], [0, 0, 1, 1], [], []>} : vector<8x128xf32>, vector<128x512xf32>, vector<8x512xf32> -> vector<8x512xf32>
    %103 = arith.addf %101, %102 : vector<8x512xf32>
    %104 = vector.extract_strided_slice %103 {offsets = [0, 0], sizes = [8, 128], strides = [1, 1]} : vector<8x512xf32> to vector<8x128xf32>
    %cst_52 = arith.constant 5.000000e-01 : f32
    %105 = vector.broadcast %cst_52 : f32 to vector<8x128xf32>
    %106 = arith.mulf %105, %104 : vector<8x128xf32>
    %107 = math.tanh %106 : vector<8x128xf32>
    %cst_53 = arith.constant 5.000000e-01 : f32
    %108 = vector.broadcast %cst_53 : f32 to vector<8x128xf32>
    %109 = arith.mulf %108, %107 : vector<8x128xf32>
    %cst_54 = arith.constant 5.000000e-01 : f32
    %110 = vector.broadcast %cst_54 : f32 to vector<8x128xf32>
    %111 = arith.addf %109, %110 : vector<8x128xf32>
    %112 = vector.extract_strided_slice %103 {offsets = [0, 128], sizes = [8, 128], strides = [1, 1]} : vector<8x512xf32> to vector<8x128xf32>
    %cst_55 = arith.constant 5.000000e-01 : f32
    %113 = vector.broadcast %cst_55 : f32 to vector<8x128xf32>
    %114 = arith.mulf %113, %112 : vector<8x128xf32>
    %115 = math.tanh %114 : vector<8x128xf32>
    %cst_56 = arith.constant 5.000000e-01 : f32
    %116 = vector.broadcast %cst_56 : f32 to vector<8x128xf32>
    %117 = arith.mulf %116, %115 : vector<8x128xf32>
    %cst_57 = arith.constant 5.000000e-01 : f32
    %118 = vector.broadcast %cst_57 : f32 to vector<8x128xf32>
    %119 = arith.addf %117, %118 : vector<8x128xf32>
    %120 = vector.extract_strided_slice %103 {offsets = [0, 256], sizes = [8, 128], strides = [1, 1]} : vector<8x512xf32> to vector<8x128xf32>
    %121 = math.tanh %120 : vector<8x128xf32>
    %122 = vector.extract_strided_slice %103 {offsets = [0, 384], sizes = [8, 128], strides = [1, 1]} : vector<8x512xf32> to vector<8x128xf32>
    %cst_58 = arith.constant 5.000000e-01 : f32
    %123 = vector.broadcast %cst_58 : f32 to vector<8x128xf32>
    %124 = arith.mulf %123, %122 : vector<8x128xf32>
    %125 = math.tanh %124 : vector<8x128xf32>
    %cst_59 = arith.constant 5.000000e-01 : f32
    %126 = vector.broadcast %cst_59 : f32 to vector<8x128xf32>
    %127 = arith.mulf %126, %125 : vector<8x128xf32>
    %cst_60 = arith.constant 5.000000e-01 : f32
    %128 = vector.broadcast %cst_60 : f32 to vector<8x128xf32>
    %129 = arith.addf %127, %128 : vector<8x128xf32>
    %130 = arith.mulf %119, %92 : vector<8x128xf32>
    %131 = arith.mulf %111, %121 : vector<8x128xf32>
    %132 = arith.addf %130, %131 : vector<8x128xf32>
    %133 = math.tanh %132 : vector<8x128xf32>
    %134 = arith.mulf %129, %133 : vector<8x128xf32>
    %135 = arith.index_cast %c2_i32 : i32 to index
    %c0_61 = arith.constant 0 : index
    %c0_62 = arith.constant 0 : index
    %136 = vector.load %arg13[%135, %c0_61, %c0_62] : memref<8x8x128xf32, #tpu.memory_space<vmem>>, vector<1x8x128xf32>
    %137 = vector.shape_cast %136 : vector<1x8x128xf32> to vector<8x128xf32>
    %138 = vector.shape_cast %134 : vector<8x128xf32> to vector<1x8x128xf32>
    tpu.vector_store %arg13[%135, %c0_61, %c0_62], %138 {strides = array<i32>} : memref<8x8x128xf32, #tpu.memory_space<vmem>>, vector<1x8x128xf32>,
    %c3_i32 = arith.constant 3 : i32
    %139 = arith.index_cast %c3_i32 : i32 to index
    %c0_63 = arith.constant 0 : index
    %c0_64 = arith.constant 0 : index
    %140 = vector.load %arg12[%139, %c0_63, %c0_64] : memref<8x8x512xf32, #tpu.memory_space<vmem>>, vector<1x8x512xf32>
    %141 = vector.shape_cast %140 : vector<1x8x512xf32> to vector<8x512xf32>
    %cst_65 = arith.constant dense<0.000000e+00> : vector<8x512xf32>
    %142 = tpu.matmul %134, %5, %cst_65 {dimension_numbers = #tpu.dot_dimension_numbers<[1], [0], [0], [1], [0, 0, 1, 1], [], []>} : vector<8x128xf32>, vector<128x512xf32>, vector<8x512xf32> -> vector<8x512xf32>
    %143 = arith.addf %141, %142 : vector<8x512xf32>
    %144 = vector.extract_strided_slice %143 {offsets = [0, 0], sizes = [8, 128], strides = [1, 1]} : vector<8x512xf32> to vector<8x128xf32>
    %cst_66 = arith.constant 5.000000e-01 : f32
    %145 = vector.broadcast %cst_66 : f32 to vector<8x128xf32>
    %146 = arith.mulf %145, %144 : vector<8x128xf32>
    %147 = math.tanh %146 : vector<8x128xf32>
    %cst_67 = arith.constant 5.000000e-01 : f32
    %148 = vector.broadcast %cst_67 : f32 to vector<8x128xf32>
    %149 = arith.mulf %148, %147 : vector<8x128xf32>
    %cst_68 = arith.constant 5.000000e-01 : f32
    %150 = vector.broadcast %cst_68 : f32 to vector<8x128xf32>
    %151 = arith.addf %149, %150 : vector<8x128xf32>
    %152 = vector.extract_strided_slice %143 {offsets = [0, 128], sizes = [8, 128], strides = [1, 1]} : vector<8x512xf32> to vector<8x128xf32>
    %cst_69 = arith.constant 5.000000e-01 : f32
    %153 = vector.broadcast %cst_69 : f32 to vector<8x128xf32>
    %154 = arith.mulf %153, %152 : vector<8x128xf32>
    %155 = math.tanh %154 : vector<8x128xf32>
    %cst_70 = arith.constant 5.000000e-01 : f32
    %156 = vector.broadcast %cst_70 : f32 to vector<8x128xf32>
    %157 = arith.mulf %156, %155 : vector<8x128xf32>
    %cst_71 = arith.constant 5.000000e-01 : f32
    %158 = vector.broadcast %cst_71 : f32 to vector<8x128xf32>
    %159 = arith.addf %157, %158 : vector<8x128xf32>
    %160 = vector.extract_strided_slice %143 {offsets = [0, 256], sizes = [8, 128], strides = [1, 1]} : vector<8x512xf32> to vector<8x128xf32>
    %161 = math.tanh %160 : vector<8x128xf32>
    %162 = vector.extract_strided_slice %143 {offsets = [0, 384], sizes = [8, 128], strides = [1, 1]} : vector<8x512xf32> to vector<8x128xf32>
    %cst_72 = arith.constant 5.000000e-01 : f32
    %163 = vector.broadcast %cst_72 : f32 to vector<8x128xf32>
    %164 = arith.mulf %163, %162 : vector<8x128xf32>
    %165 = math.tanh %164 : vector<8x128xf32>
    %cst_73 = arith.constant 5.000000e-01 : f32
    %166 = vector.broadcast %cst_73 : f32 to vector<8x128xf32>
    %167 = arith.mulf %166, %165 : vector<8x128xf32>
    %cst_74 = arith.constant 5.000000e-01 : f32
    %168 = vector.broadcast %cst_74 : f32 to vector<8x128xf32>
    %169 = arith.addf %167, %168 : vector<8x128xf32>
    %170 = arith.mulf %159, %132 : vector<8x128xf32>
    %171 = arith.mulf %151, %161 : vector<8x128xf32>
    %172 = arith.addf %170, %171 : vector<8x128xf32>
    %173 = math.tanh %172 : vector<8x128xf32>
    %174 = arith.mulf %169, %173 : vector<8x128xf32>
    %175 = arith.index_cast %c3_i32 : i32 to index
    %c0_75 = arith.constant 0 : index
    %c0_76 = arith.constant 0 : index
    %176 = vector.load %arg13[%175, %c0_75, %c0_76] : memref<8x8x128xf32, #tpu.memory_space<vmem>>, vector<1x8x128xf32>
    %177 = vector.shape_cast %176 : vector<1x8x128xf32> to vector<8x128xf32>
    %178 = vector.shape_cast %174 : vector<8x128xf32> to vector<1x8x128xf32>
    tpu.vector_store %arg13[%175, %c0_75, %c0_76], %178 {strides = array<i32>} : memref<8x8x128xf32, #tpu.memory_space<vmem>>, vector<1x8x128xf32>,
    %c4_i32 = arith.constant 4 : i32
    %179 = arith.index_cast %c4_i32 : i32 to index
    %c0_77 = arith.constant 0 : index
    %c0_78 = arith.constant 0 : index
    %180 = vector.load %arg12[%179, %c0_77, %c0_78] : memref<8x8x512xf32, #tpu.memory_space<vmem>>, vector<1x8x512xf32>
    %181 = vector.shape_cast %180 : vector<1x8x512xf32> to vector<8x512xf32>
    %cst_79 = arith.constant dense<0.000000e+00> : vector<8x512xf32>
    %182 = tpu.matmul %174, %5, %cst_79 {dimension_numbers = #tpu.dot_dimension_numbers<[1], [0], [0], [1], [0, 0, 1, 1], [], []>} : vector<8x128xf32>, vector<128x512xf32>, vector<8x512xf32> -> vector<8x512xf32>
    %183 = arith.addf %181, %182 : vector<8x512xf32>
    %184 = vector.extract_strided_slice %183 {offsets = [0, 0], sizes = [8, 128], strides = [1, 1]} : vector<8x512xf32> to vector<8x128xf32>
    %cst_80 = arith.constant 5.000000e-01 : f32
    %185 = vector.broadcast %cst_80 : f32 to vector<8x128xf32>
    %186 = arith.mulf %185, %184 : vector<8x128xf32>
    %187 = math.tanh %186 : vector<8x128xf32>
    %cst_81 = arith.constant 5.000000e-01 : f32
    %188 = vector.broadcast %cst_81 : f32 to vector<8x128xf32>
    %189 = arith.mulf %188, %187 : vector<8x128xf32>
    %cst_82 = arith.constant 5.000000e-01 : f32
    %190 = vector.broadcast %cst_82 : f32 to vector<8x128xf32>
    %191 = arith.addf %189, %190 : vector<8x128xf32>
    %192 = vector.extract_strided_slice %183 {offsets = [0, 128], sizes = [8, 128], strides = [1, 1]} : vector<8x512xf32> to vector<8x128xf32>
    %cst_83 = arith.constant 5.000000e-01 : f32
    %193 = vector.broadcast %cst_83 : f32 to vector<8x128xf32>
    %194 = arith.mulf %193, %192 : vector<8x128xf32>
    %195 = math.tanh %194 : vector<8x128xf32>
    %cst_84 = arith.constant 5.000000e-01 : f32
    %196 = vector.broadcast %cst_84 : f32 to vector<8x128xf32>
    %197 = arith.mulf %196, %195 : vector<8x128xf32>
    %cst_85 = arith.constant 5.000000e-01 : f32
    %198 = vector.broadcast %cst_85 : f32 to vector<8x128xf32>
    %199 = arith.addf %197, %198 : vector<8x128xf32>
    %200 = vector.extract_strided_slice %183 {offsets = [0, 256], sizes = [8, 128], strides = [1, 1]} : vector<8x512xf32> to vector<8x128xf32>
    %201 = math.tanh %200 : vector<8x128xf32>
    %202 = vector.extract_strided_slice %183 {offsets = [0, 384], sizes = [8, 128], strides = [1, 1]} : vector<8x512xf32> to vector<8x128xf32>
    %cst_86 = arith.constant 5.000000e-01 : f32
    %203 = vector.broadcast %cst_86 : f32 to vector<8x128xf32>
    %204 = arith.mulf %203, %202 : vector<8x128xf32>
    %205 = math.tanh %204 : vector<8x128xf32>
    %cst_87 = arith.constant 5.000000e-01 : f32
    %206 = vector.broadcast %cst_87 : f32 to vector<8x128xf32>
    %207 = arith.mulf %206, %205 : vector<8x128xf32>
    %cst_88 = arith.constant 5.000000e-01 : f32
    %208 = vector.broadcast %cst_88 : f32 to vector<8x128xf32>
    %209 = arith.addf %207, %208 : vector<8x128xf32>
    %210 = arith.mulf %199, %172 : vector<8x128xf32>
    %211 = arith.mulf %191, %201 : vector<8x128xf32>
    %212 = arith.addf %210, %211 : vector<8x128xf32>
    %213 = math.tanh %212 : vector<8x128xf32>
    %214 = arith.mulf %209, %213 : vector<8x128xf32>
    %215 = arith.index_cast %c4_i32 : i32 to index
    %c0_89 = arith.constant 0 : index
    %c0_90 = arith.constant 0 : index
    %216 = vector.load %arg13[%215, %c0_89, %c0_90] : memref<8x8x128xf32, #tpu.memory_space<vmem>>, vector<1x8x128xf32>
    %217 = vector.shape_cast %216 : vector<1x8x128xf32> to vector<8x128xf32>
    %218 = vector.shape_cast %214 : vector<8x128xf32> to vector<1x8x128xf32>
    tpu.vector_store %arg13[%215, %c0_89, %c0_90], %218 {strides = array<i32>} : memref<8x8x128xf32, #tpu.memory_space<vmem>>, vector<1x8x128xf32>,
    %c5_i32 = arith.constant 5 : i32
    %219 = arith.index_cast %c5_i32 : i32 to index
    %c0_91 = arith.constant 0 : index
    %c0_92 = arith.constant 0 : index
    %220 = vector.load %arg12[%219, %c0_91, %c0_92] : memref<8x8x512xf32, #tpu.memory_space<vmem>>, vector<1x8x512xf32>
    %221 = vector.shape_cast %220 : vector<1x8x512xf32> to vector<8x512xf32>
    %cst_93 = arith.constant dense<0.000000e+00> : vector<8x512xf32>
    %222 = tpu.matmul %214, %5, %cst_93 {dimension_numbers = #tpu.dot_dimension_numbers<[1], [0], [0], [1], [0, 0, 1, 1], [], []>} : vector<8x128xf32>, vector<128x512xf32>, vector<8x512xf32> -> vector<8x512xf32>
    %223 = arith.addf %221, %222 : vector<8x512xf32>
    %224 = vector.extract_strided_slice %223 {offsets = [0, 0], sizes = [8, 128], strides = [1, 1]} : vector<8x512xf32> to vector<8x128xf32>
    %cst_94 = arith.constant 5.000000e-01 : f32
    %225 = vector.broadcast %cst_94 : f32 to vector<8x128xf32>
    %226 = arith.mulf %225, %224 : vector<8x128xf32>
    %227 = math.tanh %226 : vector<8x128xf32>
    %cst_95 = arith.constant 5.000000e-01 : f32
    %228 = vector.broadcast %cst_95 : f32 to vector<8x128xf32>
    %229 = arith.mulf %228, %227 : vector<8x128xf32>
    %cst_96 = arith.constant 5.000000e-01 : f32
    %230 = vector.broadcast %cst_96 : f32 to vector<8x128xf32>
    %231 = arith.addf %229, %230 : vector<8x128xf32>
    %232 = vector.extract_strided_slice %223 {offsets = [0, 128], sizes = [8, 128], strides = [1, 1]} : vector<8x512xf32> to vector<8x128xf32>
    %cst_97 = arith.constant 5.000000e-01 : f32
    %233 = vector.broadcast %cst_97 : f32 to vector<8x128xf32>
    %234 = arith.mulf %233, %232 : vector<8x128xf32>
    %235 = math.tanh %234 : vector<8x128xf32>
    %cst_98 = arith.constant 5.000000e-01 : f32
    %236 = vector.broadcast %cst_98 : f32 to vector<8x128xf32>
    %237 = arith.mulf %236, %235 : vector<8x128xf32>
    %cst_99 = arith.constant 5.000000e-01 : f32
    %238 = vector.broadcast %cst_99 : f32 to vector<8x128xf32>
    %239 = arith.addf %237, %238 : vector<8x128xf32>
    %240 = vector.extract_strided_slice %223 {offsets = [0, 256], sizes = [8, 128], strides = [1, 1]} : vector<8x512xf32> to vector<8x128xf32>
    %241 = math.tanh %240 : vector<8x128xf32>
    %242 = vector.extract_strided_slice %223 {offsets = [0, 384], sizes = [8, 128], strides = [1, 1]} : vector<8x512xf32> to vector<8x128xf32>
    %cst_100 = arith.constant 5.000000e-01 : f32
    %243 = vector.broadcast %cst_100 : f32 to vector<8x128xf32>
    %244 = arith.mulf %243, %242 : vector<8x128xf32>
    %245 = math.tanh %244 : vector<8x128xf32>
    %cst_101 = arith.constant 5.000000e-01 : f32
    %246 = vector.broadcast %cst_101 : f32 to vector<8x128xf32>
    %247 = arith.mulf %246, %245 : vector<8x128xf32>
    %cst_102 = arith.constant 5.000000e-01 : f32
    %248 = vector.broadcast %cst_102 : f32 to vector<8x128xf32>
    %249 = arith.addf %247, %248 : vector<8x128xf32>
    %250 = arith.mulf %239, %212 : vector<8x128xf32>
    %251 = arith.mulf %231, %241 : vector<8x128xf32>
    %252 = arith.addf %250, %251 : vector<8x128xf32>
    %253 = math.tanh %252 : vector<8x128xf32>
    %254 = arith.mulf %249, %253 : vector<8x128xf32>
    %255 = arith.index_cast %c5_i32 : i32 to index
    %c0_103 = arith.constant 0 : index
    %c0_104 = arith.constant 0 : index
    %256 = vector.load %arg13[%255, %c0_103, %c0_104] : memref<8x8x128xf32, #tpu.memory_space<vmem>>, vector<1x8x128xf32>
    %257 = vector.shape_cast %256 : vector<1x8x128xf32> to vector<8x128xf32>
    %258 = vector.shape_cast %254 : vector<8x128xf32> to vector<1x8x128xf32>
    tpu.vector_store %arg13[%255, %c0_103, %c0_104], %258 {strides = array<i32>} : memref<8x8x128xf32, #tpu.memory_space<vmem>>, vector<1x8x128xf32>,
    %c6_i32 = arith.constant 6 : i32
    %259 = arith.index_cast %c6_i32 : i32 to index
    %c0_105 = arith.constant 0 : index
    %c0_106 = arith.constant 0 : index
    %260 = vector.load %arg12[%259, %c0_105, %c0_106] : memref<8x8x512xf32, #tpu.memory_space<vmem>>, vector<1x8x512xf32>
    %261 = vector.shape_cast %260 : vector<1x8x512xf32> to vector<8x512xf32>
    %cst_107 = arith.constant dense<0.000000e+00> : vector<8x512xf32>
    %262 = tpu.matmul %254, %5, %cst_107 {dimension_numbers = #tpu.dot_dimension_numbers<[1], [0], [0], [1], [0, 0, 1, 1], [], []>} : vector<8x128xf32>, vector<128x512xf32>, vector<8x512xf32> -> vector<8x512xf32>
    %263 = arith.addf %261, %262 : vector<8x512xf32>
    %264 = vector.extract_strided_slice %263 {offsets = [0, 0], sizes = [8, 128], strides = [1, 1]} : vector<8x512xf32> to vector<8x128xf32>
    %cst_108 = arith.constant 5.000000e-01 : f32
    %265 = vector.broadcast %cst_108 : f32 to vector<8x128xf32>
    %266 = arith.mulf %265, %264 : vector<8x128xf32>
    %267 = math.tanh %266 : vector<8x128xf32>
    %cst_109 = arith.constant 5.000000e-01 : f32
    %268 = vector.broadcast %cst_109 : f32 to vector<8x128xf32>
    %269 = arith.mulf %268, %267 : vector<8x128xf32>
    %cst_110 = arith.constant 5.000000e-01 : f32
    %270 = vector.broadcast %cst_110 : f32 to vector<8x128xf32>
    %271 = arith.addf %269, %270 : vector<8x128xf32>
    %272 = vector.extract_strided_slice %263 {offsets = [0, 128], sizes = [8, 128], strides = [1, 1]} : vector<8x512xf32> to vector<8x128xf32>
    %cst_111 = arith.constant 5.000000e-01 : f32
    %273 = vector.broadcast %cst_111 : f32 to vector<8x128xf32>
    %274 = arith.mulf %273, %272 : vector<8x128xf32>
    %275 = math.tanh %274 : vector<8x128xf32>
    %cst_112 = arith.constant 5.000000e-01 : f32
    %276 = vector.broadcast %cst_112 : f32 to vector<8x128xf32>
    %277 = arith.mulf %276, %275 : vector<8x128xf32>
    %cst_113 = arith.constant 5.000000e-01 : f32
    %278 = vector.broadcast %cst_113 : f32 to vector<8x128xf32>
    %279 = arith.addf %277, %278 : vector<8x128xf32>
    %280 = vector.extract_strided_slice %263 {offsets = [0, 256], sizes = [8, 128], strides = [1, 1]} : vector<8x512xf32> to vector<8x128xf32>
    %281 = math.tanh %280 : vector<8x128xf32>
    %282 = vector.extract_strided_slice %263 {offsets = [0, 384], sizes = [8, 128], strides = [1, 1]} : vector<8x512xf32> to vector<8x128xf32>
    %cst_114 = arith.constant 5.000000e-01 : f32
    %283 = vector.broadcast %cst_114 : f32 to vector<8x128xf32>
    %284 = arith.mulf %283, %282 : vector<8x128xf32>
    %285 = math.tanh %284 : vector<8x128xf32>
    %cst_115 = arith.constant 5.000000e-01 : f32
    %286 = vector.broadcast %cst_115 : f32 to vector<8x128xf32>
    %287 = arith.mulf %286, %285 : vector<8x128xf32>
    %cst_116 = arith.constant 5.000000e-01 : f32
    %288 = vector.broadcast %cst_116 : f32 to vector<8x128xf32>
    %289 = arith.addf %287, %288 : vector<8x128xf32>
    %290 = arith.mulf %279, %252 : vector<8x128xf32>
    %291 = arith.mulf %271, %281 : vector<8x128xf32>
    %292 = arith.addf %290, %291 : vector<8x128xf32>
    %293 = math.tanh %292 : vector<8x128xf32>
    %294 = arith.mulf %289, %293 : vector<8x128xf32>
    %295 = arith.index_cast %c6_i32 : i32 to index
    %c0_117 = arith.constant 0 : index
    %c0_118 = arith.constant 0 : index
    %296 = vector.load %arg13[%295, %c0_117, %c0_118] : memref<8x8x128xf32, #tpu.memory_space<vmem>>, vector<1x8x128xf32>
    %297 = vector.shape_cast %296 : vector<1x8x128xf32> to vector<8x128xf32>
    %298 = vector.shape_cast %294 : vector<8x128xf32> to vector<1x8x128xf32>
    tpu.vector_store %arg13[%295, %c0_117, %c0_118], %298 {strides = array<i32>} : memref<8x8x128xf32, #tpu.memory_space<vmem>>, vector<1x8x128xf32>,
    %c7_i32 = arith.constant 7 : i32
    %299 = arith.index_cast %c7_i32 : i32 to index
    %c0_119 = arith.constant 0 : index
    %c0_120 = arith.constant 0 : index
    %300 = vector.load %arg12[%299, %c0_119, %c0_120] : memref<8x8x512xf32, #tpu.memory_space<vmem>>, vector<1x8x512xf32>
    %301 = vector.shape_cast %300 : vector<1x8x512xf32> to vector<8x512xf32>
    %cst_121 = arith.constant dense<0.000000e+00> : vector<8x512xf32>
    %302 = tpu.matmul %294, %5, %cst_121 {dimension_numbers = #tpu.dot_dimension_numbers<[1], [0], [0], [1], [0, 0, 1, 1], [], []>} : vector<8x128xf32>, vector<128x512xf32>, vector<8x512xf32> -> vector<8x512xf32>
    %303 = arith.addf %301, %302 : vector<8x512xf32>
    %304 = vector.extract_strided_slice %303 {offsets = [0, 0], sizes = [8, 128], strides = [1, 1]} : vector<8x512xf32> to vector<8x128xf32>
    %cst_122 = arith.constant 5.000000e-01 : f32
    %305 = vector.broadcast %cst_122 : f32 to vector<8x128xf32>
    %306 = arith.mulf %305, %304 : vector<8x128xf32>
    %307 = math.tanh %306 : vector<8x128xf32>
    %cst_123 = arith.constant 5.000000e-01 : f32
    %308 = vector.broadcast %cst_123 : f32 to vector<8x128xf32>
    %309 = arith.mulf %308, %307 : vector<8x128xf32>
    %cst_124 = arith.constant 5.000000e-01 : f32
    %310 = vector.broadcast %cst_124 : f32 to vector<8x128xf32>
    %311 = arith.addf %309, %310 : vector<8x128xf32>
    %312 = vector.extract_strided_slice %303 {offsets = [0, 128], sizes = [8, 128], strides = [1, 1]} : vector<8x512xf32> to vector<8x128xf32>
    %cst_125 = arith.constant 5.000000e-01 : f32
    %313 = vector.broadcast %cst_125 : f32 to vector<8x128xf32>
    %314 = arith.mulf %313, %312 : vector<8x128xf32>
    %315 = math.tanh %314 : vector<8x128xf32>
    %cst_126 = arith.constant 5.000000e-01 : f32
    %316 = vector.broadcast %cst_126 : f32 to vector<8x128xf32>
    %317 = arith.mulf %316, %315 : vector<8x128xf32>
    %cst_127 = arith.constant 5.000000e-01 : f32
    %318 = vector.broadcast %cst_127 : f32 to vector<8x128xf32>
    %319 = arith.addf %317, %318 : vector<8x128xf32>
    %320 = vector.extract_strided_slice %303 {offsets = [0, 256], sizes = [8, 128], strides = [1, 1]} : vector<8x512xf32> to vector<8x128xf32>
    %321 = math.tanh %320 : vector<8x128xf32>
    %322 = vector.extract_strided_slice %303 {offsets = [0, 384], sizes = [8, 128], strides = [1, 1]} : vector<8x512xf32> to vector<8x128xf32>
    %cst_128 = arith.constant 5.000000e-01 : f32
    %323 = vector.broadcast %cst_128 : f32 to vector<8x128xf32>
    %324 = arith.mulf %323, %322 : vector<8x128xf32>
    %325 = math.tanh %324 : vector<8x128xf32>
    %cst_129 = arith.constant 5.000000e-01 : f32
    %326 = vector.broadcast %cst_129 : f32 to vector<8x128xf32>
    %327 = arith.mulf %326, %325 : vector<8x128xf32>
    %cst_130 = arith.constant 5.000000e-01 : f32
    %328 = vector.broadcast %cst_130 : f32 to vector<8x128xf32>
    %329 = arith.addf %327, %328 : vector<8x128xf32>
    %330 = arith.mulf %319, %292 : vector<8x128xf32>
    %331 = arith.mulf %311, %321 : vector<8x128xf32>
    %332 = arith.addf %330, %331 : vector<8x128xf32>
    %333 = math.tanh %332 : vector<8x128xf32>
    %334 = arith.mulf %329, %333 : vector<8x128xf32>
    %335 = arith.index_cast %c7_i32 : i32 to index
    %c0_131 = arith.constant 0 : index
    %c0_132 = arith.constant 0 : index
    %336 = vector.load %arg13[%335, %c0_131, %c0_132] : memref<8x8x128xf32, #tpu.memory_space<vmem>>, vector<1x8x128xf32>
    %337 = vector.shape_cast %336 : vector<1x8x128xf32> to vector<8x128xf32>
    %338 = vector.shape_cast %334 : vector<8x128xf32> to vector<1x8x128xf32>
    tpu.vector_store %arg13[%335, %c0_131, %c0_132], %338 {strides = array<i32>} : memref<8x8x128xf32, #tpu.memory_space<vmem>>, vector<1x8x128xf32>,
    %c8_i32 = arith.constant 8 : i32
    %c0_133 = arith.constant 0 : index
    %c0_134 = arith.constant 0 : index
    %c0_135 = arith.constant 0 : index
    %339 = vector.load %arg10[%c0_133, %c0_134, %c0_135] : memref<2x8x128xf32, #tpu.memory_space<vmem>>, vector<1x8x128xf32>
    %340 = vector.shape_cast %339 : vector<1x8x128xf32> to vector<8x128xf32>
    %341 = vector.shape_cast %334 : vector<8x128xf32> to vector<1x8x128xf32>
    tpu.vector_store %arg10[%c0_133, %c0_134, %c0_135], %341 {strides = array<i32>} : memref<2x8x128xf32, #tpu.memory_space<vmem>>, vector<1x8x128xf32>,
    %c0_136 = arith.constant 0 : index
    %c0_137 = arith.constant 0 : index
    %c0_138 = arith.constant 0 : index
    %342 = vector.load %arg11[%c0_136, %c0_137, %c0_138] : memref<2x8x128xf32, #tpu.memory_space<vmem>>, vector<1x8x128xf32>
    %343 = vector.shape_cast %342 : vector<1x8x128xf32> to vector<8x128xf32>
    %344 = vector.shape_cast %332 : vector<8x128xf32> to vector<1x8x128xf32>
    tpu.vector_store %arg11[%c0_136, %c0_137, %c0_138], %344 {strides = array<i32>} : memref<2x8x128xf32, #tpu.memory_space<vmem>>, vector<1x8x128xf32>,
    %c0_139 = arith.constant 0 : index
    %c0_140 = arith.constant 0 : index
    %345 = vector.load %arg8[%c0_139, %c0_140] : memref<128x512xf32, #tpu.memory_space<vmem>>, vector<128x512xf32>
    %c1 = arith.constant 1 : index
    %c0_141 = arith.constant 0 : index
    %c0_142 = arith.constant 0 : index
    %346 = vector.load %arg5[%c1, %c0_141, %c0_142] : memref<2x128x512xf32, #tpu.memory_space<vmem>>, vector<1x128x512xf32>
    %347 = vector.shape_cast %346 : vector<1x128x512xf32> to vector<128x512xf32>
    %c1_143 = arith.constant 1 : index
    %c0_144 = arith.constant 0 : index
    %c0_145 = arith.constant 0 : index
    %348 = vector.load %arg6[%c1_143, %c0_144, %c0_145] : memref<2x1x512xf32, #tpu.memory_space<vmem>>, vector<1x1x512xf32>
    %349 = vector.shape_cast %348 : vector<1x1x512xf32> to vector<1x512xf32>
    %c0_146 = arith.constant 0 : index
    %c0_147 = arith.constant 0 : index
    %c0_148 = arith.constant 0 : index
    %350 = vector.load %arg13[%c0_146, %c0_147, %c0_148] : memref<8x8x128xf32, #tpu.memory_space<vmem>>, vector<8x8x128xf32>
    %351 = vector.shape_cast %350 : vector<8x8x128xf32> to vector<64x128xf32>
    %cst_149 = arith.constant dense<0.000000e+00> : vector<64x512xf32>
    %352 = tpu.matmul %351, %345, %cst_149 {dimension_numbers = #tpu.dot_dimension_numbers<[1], [0], [0], [1], [0, 0, 1, 1], [], []>} : vector<64x128xf32>, vector<128x512xf32>, vector<64x512xf32> -> vector<64x512xf32>
    %353 = vector.broadcast %349 : vector<1x512xf32> to vector<64x512xf32>
    %354 = arith.addf %352, %353 : vector<64x512xf32>
    %355 = vector.shape_cast %354 : vector<64x512xf32> to vector<8x8x512xf32>
    %c0_150 = arith.constant 0 : index
    %c0_151 = arith.constant 0 : index
    %c0_152 = arith.constant 0 : index
    %356 = vector.load %arg12[%c0_150, %c0_151, %c0_152] : memref<8x8x512xf32, #tpu.memory_space<vmem>>, vector<8x8x512xf32>
    tpu.vector_store %arg12[%c0_150, %c0_151, %c0_152], %355 {strides = array<i32>} : memref<8x8x512xf32, #tpu.memory_space<vmem>>, vector<8x8x512xf32>,
    %c1_153 = arith.constant 1 : index
    %c0_154 = arith.constant 0 : index
    %c0_155 = arith.constant 0 : index
    %357 = vector.load %arg10[%c1_153, %c0_154, %c0_155] : memref<2x8x128xf32, #tpu.memory_space<vmem>>, vector<1x8x128xf32>
    %358 = vector.shape_cast %357 : vector<1x8x128xf32> to vector<8x128xf32>
    %c1_156 = arith.constant 1 : index
    %c0_157 = arith.constant 0 : index
    %c0_158 = arith.constant 0 : index
    %359 = vector.load %arg11[%c1_156, %c0_157, %c0_158] : memref<2x8x128xf32, #tpu.memory_space<vmem>>, vector<1x8x128xf32>
    %360 = vector.shape_cast %359 : vector<1x8x128xf32> to vector<8x128xf32>
    %c0_i32_159 = arith.constant 0 : i32
    %361 = arith.index_cast %c0_i32_159 : i32 to index
    %c0_160 = arith.constant 0 : index
    %c0_161 = arith.constant 0 : index
    %362 = vector.load %arg12[%361, %c0_160, %c0_161] : memref<8x8x512xf32, #tpu.memory_space<vmem>>, vector<1x8x512xf32>
    %363 = vector.shape_cast %362 : vector<1x8x512xf32> to vector<8x512xf32>
    %cst_162 = arith.constant dense<0.000000e+00> : vector<8x512xf32>
    %364 = tpu.matmul %358, %347, %cst_162 {dimension_numbers = #tpu.dot_dimension_numbers<[1], [0], [0], [1], [0, 0, 1, 1], [], []>} : vector<8x128xf32>, vector<128x512xf32>, vector<8x512xf32> -> vector<8x512xf32>
    %365 = arith.addf %363, %364 : vector<8x512xf32>
    %366 = vector.extract_strided_slice %365 {offsets = [0, 0], sizes = [8, 128], strides = [1, 1]} : vector<8x512xf32> to vector<8x128xf32>
    %cst_163 = arith.constant 5.000000e-01 : f32
    %367 = vector.broadcast %cst_163 : f32 to vector<8x128xf32>
    %368 = arith.mulf %367, %366 : vector<8x128xf32>
    %369 = math.tanh %368 : vector<8x128xf32>
    %cst_164 = arith.constant 5.000000e-01 : f32
    %370 = vector.broadcast %cst_164 : f32 to vector<8x128xf32>
    %371 = arith.mulf %370, %369 : vector<8x128xf32>
    %cst_165 = arith.constant 5.000000e-01 : f32
    %372 = vector.broadcast %cst_165 : f32 to vector<8x128xf32>
    %373 = arith.addf %371, %372 : vector<8x128xf32>
    %374 = vector.extract_strided_slice %365 {offsets = [0, 128], sizes = [8, 128], strides = [1, 1]} : vector<8x512xf32> to vector<8x128xf32>
    %cst_166 = arith.constant 5.000000e-01 : f32
    %375 = vector.broadcast %cst_166 : f32 to vector<8x128xf32>
    %376 = arith.mulf %375, %374 : vector<8x128xf32>
    %377 = math.tanh %376 : vector<8x128xf32>
    %cst_167 = arith.constant 5.000000e-01 : f32
    %378 = vector.broadcast %cst_167 : f32 to vector<8x128xf32>
    %379 = arith.mulf %378, %377 : vector<8x128xf32>
    %cst_168 = arith.constant 5.000000e-01 : f32
    %380 = vector.broadcast %cst_168 : f32 to vector<8x128xf32>
    %381 = arith.addf %379, %380 : vector<8x128xf32>
    %382 = vector.extract_strided_slice %365 {offsets = [0, 256], sizes = [8, 128], strides = [1, 1]} : vector<8x512xf32> to vector<8x128xf32>
    %383 = math.tanh %382 : vector<8x128xf32>
    %384 = vector.extract_strided_slice %365 {offsets = [0, 384], sizes = [8, 128], strides = [1, 1]} : vector<8x512xf32> to vector<8x128xf32>
    %cst_169 = arith.constant 5.000000e-01 : f32
    %385 = vector.broadcast %cst_169 : f32 to vector<8x128xf32>
    %386 = arith.mulf %385, %384 : vector<8x128xf32>
    %387 = math.tanh %386 : vector<8x128xf32>
    %cst_170 = arith.constant 5.000000e-01 : f32
    %388 = vector.broadcast %cst_170 : f32 to vector<8x128xf32>
    %389 = arith.mulf %388, %387 : vector<8x128xf32>
    %cst_171 = arith.constant 5.000000e-01 : f32
    %390 = vector.broadcast %cst_171 : f32 to vector<8x128xf32>
    %391 = arith.addf %389, %390 : vector<8x128xf32>
    %392 = arith.mulf %381, %360 : vector<8x128xf32>
    %393 = arith.mulf %373, %383 : vector<8x128xf32>
    %394 = arith.addf %392, %393 : vector<8x128xf32>
    %395 = math.tanh %394 : vector<8x128xf32>
    %396 = arith.mulf %391, %395 : vector<8x128xf32>
    %397 = arith.index_cast %c0_i32_159 : i32 to index
    %c0_172 = arith.constant 0 : index
    %c0_173 = arith.constant 0 : index
    %398 = vector.load %arg9[%397, %c0_172, %c0_173] : memref<8x8x128xf32, #tpu.memory_space<vmem>>, vector<1x8x128xf32>
    %399 = vector.shape_cast %398 : vector<1x8x128xf32> to vector<8x128xf32>
    %400 = vector.shape_cast %396 : vector<8x128xf32> to vector<1x8x128xf32>
    tpu.vector_store %arg9[%397, %c0_172, %c0_173], %400 {strides = array<i32>} : memref<8x8x128xf32, #tpu.memory_space<vmem>>, vector<1x8x128xf32>,
    %c1_i32_174 = arith.constant 1 : i32
    %401 = arith.index_cast %c1_i32_174 : i32 to index
    %c0_175 = arith.constant 0 : index
    %c0_176 = arith.constant 0 : index
    %402 = vector.load %arg12[%401, %c0_175, %c0_176] : memref<8x8x512xf32, #tpu.memory_space<vmem>>, vector<1x8x512xf32>
    %403 = vector.shape_cast %402 : vector<1x8x512xf32> to vector<8x512xf32>
    %cst_177 = arith.constant dense<0.000000e+00> : vector<8x512xf32>
    %404 = tpu.matmul %396, %347, %cst_177 {dimension_numbers = #tpu.dot_dimension_numbers<[1], [0], [0], [1], [0, 0, 1, 1], [], []>} : vector<8x128xf32>, vector<128x512xf32>, vector<8x512xf32> -> vector<8x512xf32>
    %405 = arith.addf %403, %404 : vector<8x512xf32>
    %406 = vector.extract_strided_slice %405 {offsets = [0, 0], sizes = [8, 128], strides = [1, 1]} : vector<8x512xf32> to vector<8x128xf32>
    %cst_178 = arith.constant 5.000000e-01 : f32
    %407 = vector.broadcast %cst_178 : f32 to vector<8x128xf32>
    %408 = arith.mulf %407, %406 : vector<8x128xf32>
    %409 = math.tanh %408 : vector<8x128xf32>
    %cst_179 = arith.constant 5.000000e-01 : f32
    %410 = vector.broadcast %cst_179 : f32 to vector<8x128xf32>
    %411 = arith.mulf %410, %409 : vector<8x128xf32>
    %cst_180 = arith.constant 5.000000e-01 : f32
    %412 = vector.broadcast %cst_180 : f32 to vector<8x128xf32>
    %413 = arith.addf %411, %412 : vector<8x128xf32>
    %414 = vector.extract_strided_slice %405 {offsets = [0, 128], sizes = [8, 128], strides = [1, 1]} : vector<8x512xf32> to vector<8x128xf32>
    %cst_181 = arith.constant 5.000000e-01 : f32
    %415 = vector.broadcast %cst_181 : f32 to vector<8x128xf32>
    %416 = arith.mulf %415, %414 : vector<8x128xf32>
    %417 = math.tanh %416 : vector<8x128xf32>
    %cst_182 = arith.constant 5.000000e-01 : f32
    %418 = vector.broadcast %cst_182 : f32 to vector<8x128xf32>
    %419 = arith.mulf %418, %417 : vector<8x128xf32>
    %cst_183 = arith.constant 5.000000e-01 : f32
    %420 = vector.broadcast %cst_183 : f32 to vector<8x128xf32>
    %421 = arith.addf %419, %420 : vector<8x128xf32>
    %422 = vector.extract_strided_slice %405 {offsets = [0, 256], sizes = [8, 128], strides = [1, 1]} : vector<8x512xf32> to vector<8x128xf32>
    %423 = math.tanh %422 : vector<8x128xf32>
    %424 = vector.extract_strided_slice %405 {offsets = [0, 384], sizes = [8, 128], strides = [1, 1]} : vector<8x512xf32> to vector<8x128xf32>
    %cst_184 = arith.constant 5.000000e-01 : f32
    %425 = vector.broadcast %cst_184 : f32 to vector<8x128xf32>
    %426 = arith.mulf %425, %424 : vector<8x128xf32>
    %427 = math.tanh %426 : vector<8x128xf32>
    %cst_185 = arith.constant 5.000000e-01 : f32
    %428 = vector.broadcast %cst_185 : f32 to vector<8x128xf32>
    %429 = arith.mulf %428, %427 : vector<8x128xf32>
    %cst_186 = arith.constant 5.000000e-01 : f32
    %430 = vector.broadcast %cst_186 : f32 to vector<8x128xf32>
    %431 = arith.addf %429, %430 : vector<8x128xf32>
    %432 = arith.mulf %421, %394 : vector<8x128xf32>
    %433 = arith.mulf %413, %423 : vector<8x128xf32>
    %434 = arith.addf %432, %433 : vector<8x128xf32>
    %435 = math.tanh %434 : vector<8x128xf32>
    %436 = arith.mulf %431, %435 : vector<8x128xf32>
    %437 = arith.index_cast %c1_i32_174 : i32 to index
    %c0_187 = arith.constant 0 : index
    %c0_188 = arith.constant 0 : index
    %438 = vector.load %arg9[%437, %c0_187, %c0_188] : memref<8x8x128xf32, #tpu.memory_space<vmem>>, vector<1x8x128xf32>
    %439 = vector.shape_cast %438 : vector<1x8x128xf32> to vector<8x128xf32>
    %440 = vector.shape_cast %436 : vector<8x128xf32> to vector<1x8x128xf32>
    tpu.vector_store %arg9[%437, %c0_187, %c0_188], %440 {strides = array<i32>} : memref<8x8x128xf32, #tpu.memory_space<vmem>>, vector<1x8x128xf32>,
    %c2_i32_189 = arith.constant 2 : i32
    %441 = arith.index_cast %c2_i32_189 : i32 to index
    %c0_190 = arith.constant 0 : index
    %c0_191 = arith.constant 0 : index
    %442 = vector.load %arg12[%441, %c0_190, %c0_191] : memref<8x8x512xf32, #tpu.memory_space<vmem>>, vector<1x8x512xf32>
    %443 = vector.shape_cast %442 : vector<1x8x512xf32> to vector<8x512xf32>
    %cst_192 = arith.constant dense<0.000000e+00> : vector<8x512xf32>
    %444 = tpu.matmul %436, %347, %cst_192 {dimension_numbers = #tpu.dot_dimension_numbers<[1], [0], [0], [1], [0, 0, 1, 1], [], []>} : vector<8x128xf32>, vector<128x512xf32>, vector<8x512xf32> -> vector<8x512xf32>
    %445 = arith.addf %443, %444 : vector<8x512xf32>
    %446 = vector.extract_strided_slice %445 {offsets = [0, 0], sizes = [8, 128], strides = [1, 1]} : vector<8x512xf32> to vector<8x128xf32>
    %cst_193 = arith.constant 5.000000e-01 : f32
    %447 = vector.broadcast %cst_193 : f32 to vector<8x128xf32>
    %448 = arith.mulf %447, %446 : vector<8x128xf32>
    %449 = math.tanh %448 : vector<8x128xf32>
    %cst_194 = arith.constant 5.000000e-01 : f32
    %450 = vector.broadcast %cst_194 : f32 to vector<8x128xf32>
    %451 = arith.mulf %450, %449 : vector<8x128xf32>
    %cst_195 = arith.constant 5.000000e-01 : f32
    %452 = vector.broadcast %cst_195 : f32 to vector<8x128xf32>
    %453 = arith.addf %451, %452 : vector<8x128xf32>
    %454 = vector.extract_strided_slice %445 {offsets = [0, 128], sizes = [8, 128], strides = [1, 1]} : vector<8x512xf32> to vector<8x128xf32>
    %cst_196 = arith.constant 5.000000e-01 : f32
    %455 = vector.broadcast %cst_196 : f32 to vector<8x128xf32>
    %456 = arith.mulf %455, %454 : vector<8x128xf32>
    %457 = math.tanh %456 : vector<8x128xf32>
    %cst_197 = arith.constant 5.000000e-01 : f32
    %458 = vector.broadcast %cst_197 : f32 to vector<8x128xf32>
    %459 = arith.mulf %458, %457 : vector<8x128xf32>
    %cst_198 = arith.constant 5.000000e-01 : f32
    %460 = vector.broadcast %cst_198 : f32 to vector<8x128xf32>
    %461 = arith.addf %459, %460 : vector<8x128xf32>
    %462 = vector.extract_strided_slice %445 {offsets = [0, 256], sizes = [8, 128], strides = [1, 1]} : vector<8x512xf32> to vector<8x128xf32>
    %463 = math.tanh %462 : vector<8x128xf32>
    %464 = vector.extract_strided_slice %445 {offsets = [0, 384], sizes = [8, 128], strides = [1, 1]} : vector<8x512xf32> to vector<8x128xf32>
    %cst_199 = arith.constant 5.000000e-01 : f32
    %465 = vector.broadcast %cst_199 : f32 to vector<8x128xf32>
    %466 = arith.mulf %465, %464 : vector<8x128xf32>
    %467 = math.tanh %466 : vector<8x128xf32>
    %cst_200 = arith.constant 5.000000e-01 : f32
    %468 = vector.broadcast %cst_200 : f32 to vector<8x128xf32>
    %469 = arith.mulf %468, %467 : vector<8x128xf32>
    %cst_201 = arith.constant 5.000000e-01 : f32
    %470 = vector.broadcast %cst_201 : f32 to vector<8x128xf32>
    %471 = arith.addf %469, %470 : vector<8x128xf32>
    %472 = arith.mulf %461, %434 : vector<8x128xf32>
    %473 = arith.mulf %453, %463 : vector<8x128xf32>
    %474 = arith.addf %472, %473 : vector<8x128xf32>
    %475 = math.tanh %474 : vector<8x128xf32>
    %476 = arith.mulf %471, %475 : vector<8x128xf32>
    %477 = arith.index_cast %c2_i32_189 : i32 to index
    %c0_202 = arith.constant 0 : index
    %c0_203 = arith.constant 0 : index
    %478 = vector.load %arg9[%477, %c0_202, %c0_203] : memref<8x8x128xf32, #tpu.memory_space<vmem>>, vector<1x8x128xf32>
    %479 = vector.shape_cast %478 : vector<1x8x128xf32> to vector<8x128xf32>
    %480 = vector.shape_cast %476 : vector<8x128xf32> to vector<1x8x128xf32>
    tpu.vector_store %arg9[%477, %c0_202, %c0_203], %480 {strides = array<i32>} : memref<8x8x128xf32, #tpu.memory_space<vmem>>, vector<1x8x128xf32>,
    %c3_i32_204 = arith.constant 3 : i32
    %481 = arith.index_cast %c3_i32_204 : i32 to index
    %c0_205 = arith.constant 0 : index
    %c0_206 = arith.constant 0 : index
    %482 = vector.load %arg12[%481, %c0_205, %c0_206] : memref<8x8x512xf32, #tpu.memory_space<vmem>>, vector<1x8x512xf32>
    %483 = vector.shape_cast %482 : vector<1x8x512xf32> to vector<8x512xf32>
    %cst_207 = arith.constant dense<0.000000e+00> : vector<8x512xf32>
    %484 = tpu.matmul %476, %347, %cst_207 {dimension_numbers = #tpu.dot_dimension_numbers<[1], [0], [0], [1], [0, 0, 1, 1], [], []>} : vector<8x128xf32>, vector<128x512xf32>, vector<8x512xf32> -> vector<8x512xf32>
    %485 = arith.addf %483, %484 : vector<8x512xf32>
    %486 = vector.extract_strided_slice %485 {offsets = [0, 0], sizes = [8, 128], strides = [1, 1]} : vector<8x512xf32> to vector<8x128xf32>
    %cst_208 = arith.constant 5.000000e-01 : f32
    %487 = vector.broadcast %cst_208 : f32 to vector<8x128xf32>
    %488 = arith.mulf %487, %486 : vector<8x128xf32>
    %489 = math.tanh %488 : vector<8x128xf32>
    %cst_209 = arith.constant 5.000000e-01 : f32
    %490 = vector.broadcast %cst_209 : f32 to vector<8x128xf32>
    %491 = arith.mulf %490, %489 : vector<8x128xf32>
    %cst_210 = arith.constant 5.000000e-01 : f32
    %492 = vector.broadcast %cst_210 : f32 to vector<8x128xf32>
    %493 = arith.addf %491, %492 : vector<8x128xf32>
    %494 = vector.extract_strided_slice %485 {offsets = [0, 128], sizes = [8, 128], strides = [1, 1]} : vector<8x512xf32> to vector<8x128xf32>
    %cst_211 = arith.constant 5.000000e-01 : f32
    %495 = vector.broadcast %cst_211 : f32 to vector<8x128xf32>
    %496 = arith.mulf %495, %494 : vector<8x128xf32>
    %497 = math.tanh %496 : vector<8x128xf32>
    %cst_212 = arith.constant 5.000000e-01 : f32
    %498 = vector.broadcast %cst_212 : f32 to vector<8x128xf32>
    %499 = arith.mulf %498, %497 : vector<8x128xf32>
    %cst_213 = arith.constant 5.000000e-01 : f32
    %500 = vector.broadcast %cst_213 : f32 to vector<8x128xf32>
    %501 = arith.addf %499, %500 : vector<8x128xf32>
    %502 = vector.extract_strided_slice %485 {offsets = [0, 256], sizes = [8, 128], strides = [1, 1]} : vector<8x512xf32> to vector<8x128xf32>
    %503 = math.tanh %502 : vector<8x128xf32>
    %504 = vector.extract_strided_slice %485 {offsets = [0, 384], sizes = [8, 128], strides = [1, 1]} : vector<8x512xf32> to vector<8x128xf32>
    %cst_214 = arith.constant 5.000000e-01 : f32
    %505 = vector.broadcast %cst_214 : f32 to vector<8x128xf32>
    %506 = arith.mulf %505, %504 : vector<8x128xf32>
    %507 = math.tanh %506 : vector<8x128xf32>
    %cst_215 = arith.constant 5.000000e-01 : f32
    %508 = vector.broadcast %cst_215 : f32 to vector<8x128xf32>
    %509 = arith.mulf %508, %507 : vector<8x128xf32>
    %cst_216 = arith.constant 5.000000e-01 : f32
    %510 = vector.broadcast %cst_216 : f32 to vector<8x128xf32>
    %511 = arith.addf %509, %510 : vector<8x128xf32>
    %512 = arith.mulf %501, %474 : vector<8x128xf32>
    %513 = arith.mulf %493, %503 : vector<8x128xf32>
    %514 = arith.addf %512, %513 : vector<8x128xf32>
    %515 = math.tanh %514 : vector<8x128xf32>
    %516 = arith.mulf %511, %515 : vector<8x128xf32>
    %517 = arith.index_cast %c3_i32_204 : i32 to index
    %c0_217 = arith.constant 0 : index
    %c0_218 = arith.constant 0 : index
    %518 = vector.load %arg9[%517, %c0_217, %c0_218] : memref<8x8x128xf32, #tpu.memory_space<vmem>>, vector<1x8x128xf32>
    %519 = vector.shape_cast %518 : vector<1x8x128xf32> to vector<8x128xf32>
    %520 = vector.shape_cast %516 : vector<8x128xf32> to vector<1x8x128xf32>
    tpu.vector_store %arg9[%517, %c0_217, %c0_218], %520 {strides = array<i32>} : memref<8x8x128xf32, #tpu.memory_space<vmem>>, vector<1x8x128xf32>,
    %c4_i32_219 = arith.constant 4 : i32
    %521 = arith.index_cast %c4_i32_219 : i32 to index
    %c0_220 = arith.constant 0 : index
    %c0_221 = arith.constant 0 : index
    %522 = vector.load %arg12[%521, %c0_220, %c0_221] : memref<8x8x512xf32, #tpu.memory_space<vmem>>, vector<1x8x512xf32>
    %523 = vector.shape_cast %522 : vector<1x8x512xf32> to vector<8x512xf32>
    %cst_222 = arith.constant dense<0.000000e+00> : vector<8x512xf32>
    %524 = tpu.matmul %516, %347, %cst_222 {dimension_numbers = #tpu.dot_dimension_numbers<[1], [0], [0], [1], [0, 0, 1, 1], [], []>} : vector<8x128xf32>, vector<128x512xf32>, vector<8x512xf32> -> vector<8x512xf32>
    %525 = arith.addf %523, %524 : vector<8x512xf32>
    %526 = vector.extract_strided_slice %525 {offsets = [0, 0], sizes = [8, 128], strides = [1, 1]} : vector<8x512xf32> to vector<8x128xf32>
    %cst_223 = arith.constant 5.000000e-01 : f32
    %527 = vector.broadcast %cst_223 : f32 to vector<8x128xf32>
    %528 = arith.mulf %527, %526 : vector<8x128xf32>
    %529 = math.tanh %528 : vector<8x128xf32>
    %cst_224 = arith.constant 5.000000e-01 : f32
    %530 = vector.broadcast %cst_224 : f32 to vector<8x128xf32>
    %531 = arith.mulf %530, %529 : vector<8x128xf32>
    %cst_225 = arith.constant 5.000000e-01 : f32
    %532 = vector.broadcast %cst_225 : f32 to vector<8x128xf32>
    %533 = arith.addf %531, %532 : vector<8x128xf32>
    %534 = vector.extract_strided_slice %525 {offsets = [0, 128], sizes = [8, 128], strides = [1, 1]} : vector<8x512xf32> to vector<8x128xf32>
    %cst_226 = arith.constant 5.000000e-01 : f32
    %535 = vector.broadcast %cst_226 : f32 to vector<8x128xf32>
    %536 = arith.mulf %535, %534 : vector<8x128xf32>
    %537 = math.tanh %536 : vector<8x128xf32>
    %cst_227 = arith.constant 5.000000e-01 : f32
    %538 = vector.broadcast %cst_227 : f32 to vector<8x128xf32>
    %539 = arith.mulf %538, %537 : vector<8x128xf32>
    %cst_228 = arith.constant 5.000000e-01 : f32
    %540 = vector.broadcast %cst_228 : f32 to vector<8x128xf32>
    %541 = arith.addf %539, %540 : vector<8x128xf32>
    %542 = vector.extract_strided_slice %525 {offsets = [0, 256], sizes = [8, 128], strides = [1, 1]} : vector<8x512xf32> to vector<8x128xf32>
    %543 = math.tanh %542 : vector<8x128xf32>
    %544 = vector.extract_strided_slice %525 {offsets = [0, 384], sizes = [8, 128], strides = [1, 1]} : vector<8x512xf32> to vector<8x128xf32>
    %cst_229 = arith.constant 5.000000e-01 : f32
    %545 = vector.broadcast %cst_229 : f32 to vector<8x128xf32>
    %546 = arith.mulf %545, %544 : vector<8x128xf32>
    %547 = math.tanh %546 : vector<8x128xf32>
    %cst_230 = arith.constant 5.000000e-01 : f32
    %548 = vector.broadcast %cst_230 : f32 to vector<8x128xf32>
    %549 = arith.mulf %548, %547 : vector<8x128xf32>
    %cst_231 = arith.constant 5.000000e-01 : f32
    %550 = vector.broadcast %cst_231 : f32 to vector<8x128xf32>
    %551 = arith.addf %549, %550 : vector<8x128xf32>
    %552 = arith.mulf %541, %514 : vector<8x128xf32>
    %553 = arith.mulf %533, %543 : vector<8x128xf32>
    %554 = arith.addf %552, %553 : vector<8x128xf32>
    %555 = math.tanh %554 : vector<8x128xf32>
    %556 = arith.mulf %551, %555 : vector<8x128xf32>
    %557 = arith.index_cast %c4_i32_219 : i32 to index
    %c0_232 = arith.constant 0 : index
    %c0_233 = arith.constant 0 : index
    %558 = vector.load %arg9[%557, %c0_232, %c0_233] : memref<8x8x128xf32, #tpu.memory_space<vmem>>, vector<1x8x128xf32>
    %559 = vector.shape_cast %558 : vector<1x8x128xf32> to vector<8x128xf32>
    %560 = vector.shape_cast %556 : vector<8x128xf32> to vector<1x8x128xf32>
    tpu.vector_store %arg9[%557, %c0_232, %c0_233], %560 {strides = array<i32>} : memref<8x8x128xf32, #tpu.memory_space<vmem>>, vector<1x8x128xf32>,
    %c5_i32_234 = arith.constant 5 : i32
    %561 = arith.index_cast %c5_i32_234 : i32 to index
    %c0_235 = arith.constant 0 : index
    %c0_236 = arith.constant 0 : index
    %562 = vector.load %arg12[%561, %c0_235, %c0_236] : memref<8x8x512xf32, #tpu.memory_space<vmem>>, vector<1x8x512xf32>
    %563 = vector.shape_cast %562 : vector<1x8x512xf32> to vector<8x512xf32>
    %cst_237 = arith.constant dense<0.000000e+00> : vector<8x512xf32>
    %564 = tpu.matmul %556, %347, %cst_237 {dimension_numbers = #tpu.dot_dimension_numbers<[1], [0], [0], [1], [0, 0, 1, 1], [], []>} : vector<8x128xf32>, vector<128x512xf32>, vector<8x512xf32> -> vector<8x512xf32>
    %565 = arith.addf %563, %564 : vector<8x512xf32>
    %566 = vector.extract_strided_slice %565 {offsets = [0, 0], sizes = [8, 128], strides = [1, 1]} : vector<8x512xf32> to vector<8x128xf32>
    %cst_238 = arith.constant 5.000000e-01 : f32
    %567 = vector.broadcast %cst_238 : f32 to vector<8x128xf32>
    %568 = arith.mulf %567, %566 : vector<8x128xf32>
    %569 = math.tanh %568 : vector<8x128xf32>
    %cst_239 = arith.constant 5.000000e-01 : f32
    %570 = vector.broadcast %cst_239 : f32 to vector<8x128xf32>
    %571 = arith.mulf %570, %569 : vector<8x128xf32>
    %cst_240 = arith.constant 5.000000e-01 : f32
    %572 = vector.broadcast %cst_240 : f32 to vector<8x128xf32>
    %573 = arith.addf %571, %572 : vector<8x128xf32>
    %574 = vector.extract_strided_slice %565 {offsets = [0, 128], sizes = [8, 128], strides = [1, 1]} : vector<8x512xf32> to vector<8x128xf32>
    %cst_241 = arith.constant 5.000000e-01 : f32
    %575 = vector.broadcast %cst_241 : f32 to vector<8x128xf32>
    %576 = arith.mulf %575, %574 : vector<8x128xf32>
    %577 = math.tanh %576 : vector<8x128xf32>
    %cst_242 = arith.constant 5.000000e-01 : f32
    %578 = vector.broadcast %cst_242 : f32 to vector<8x128xf32>
    %579 = arith.mulf %578, %577 : vector<8x128xf32>
    %cst_243 = arith.constant 5.000000e-01 : f32
    %580 = vector.broadcast %cst_243 : f32 to vector<8x128xf32>
    %581 = arith.addf %579, %580 : vector<8x128xf32>
    %582 = vector.extract_strided_slice %565 {offsets = [0, 256], sizes = [8, 128], strides = [1, 1]} : vector<8x512xf32> to vector<8x128xf32>
    %583 = math.tanh %582 : vector<8x128xf32>
    %584 = vector.extract_strided_slice %565 {offsets = [0, 384], sizes = [8, 128], strides = [1, 1]} : vector<8x512xf32> to vector<8x128xf32>
    %cst_244 = arith.constant 5.000000e-01 : f32
    %585 = vector.broadcast %cst_244 : f32 to vector<8x128xf32>
    %586 = arith.mulf %585, %584 : vector<8x128xf32>
    %587 = math.tanh %586 : vector<8x128xf32>
    %cst_245 = arith.constant 5.000000e-01 : f32
    %588 = vector.broadcast %cst_245 : f32 to vector<8x128xf32>
    %589 = arith.mulf %588, %587 : vector<8x128xf32>
    %cst_246 = arith.constant 5.000000e-01 : f32
    %590 = vector.broadcast %cst_246 : f32 to vector<8x128xf32>
    %591 = arith.addf %589, %590 : vector<8x128xf32>
    %592 = arith.mulf %581, %554 : vector<8x128xf32>
    %593 = arith.mulf %573, %583 : vector<8x128xf32>
    %594 = arith.addf %592, %593 : vector<8x128xf32>
    %595 = math.tanh %594 : vector<8x128xf32>
    %596 = arith.mulf %591, %595 : vector<8x128xf32>
    %597 = arith.index_cast %c5_i32_234 : i32 to index
    %c0_247 = arith.constant 0 : index
    %c0_248 = arith.constant 0 : index
    %598 = vector.load %arg9[%597, %c0_247, %c0_248] : memref<8x8x128xf32, #tpu.memory_space<vmem>>, vector<1x8x128xf32>
    %599 = vector.shape_cast %598 : vector<1x8x128xf32> to vector<8x128xf32>
    %600 = vector.shape_cast %596 : vector<8x128xf32> to vector<1x8x128xf32>
    tpu.vector_store %arg9[%597, %c0_247, %c0_248], %600 {strides = array<i32>} : memref<8x8x128xf32, #tpu.memory_space<vmem>>, vector<1x8x128xf32>,
    %c6_i32_249 = arith.constant 6 : i32
    %601 = arith.index_cast %c6_i32_249 : i32 to index
    %c0_250 = arith.constant 0 : index
    %c0_251 = arith.constant 0 : index
    %602 = vector.load %arg12[%601, %c0_250, %c0_251] : memref<8x8x512xf32, #tpu.memory_space<vmem>>, vector<1x8x512xf32>
    %603 = vector.shape_cast %602 : vector<1x8x512xf32> to vector<8x512xf32>
    %cst_252 = arith.constant dense<0.000000e+00> : vector<8x512xf32>
    %604 = tpu.matmul %596, %347, %cst_252 {dimension_numbers = #tpu.dot_dimension_numbers<[1], [0], [0], [1], [0, 0, 1, 1], [], []>} : vector<8x128xf32>, vector<128x512xf32>, vector<8x512xf32> -> vector<8x512xf32>
    %605 = arith.addf %603, %604 : vector<8x512xf32>
    %606 = vector.extract_strided_slice %605 {offsets = [0, 0], sizes = [8, 128], strides = [1, 1]} : vector<8x512xf32> to vector<8x128xf32>
    %cst_253 = arith.constant 5.000000e-01 : f32
    %607 = vector.broadcast %cst_253 : f32 to vector<8x128xf32>
    %608 = arith.mulf %607, %606 : vector<8x128xf32>
    %609 = math.tanh %608 : vector<8x128xf32>
    %cst_254 = arith.constant 5.000000e-01 : f32
    %610 = vector.broadcast %cst_254 : f32 to vector<8x128xf32>
    %611 = arith.mulf %610, %609 : vector<8x128xf32>
    %cst_255 = arith.constant 5.000000e-01 : f32
    %612 = vector.broadcast %cst_255 : f32 to vector<8x128xf32>
    %613 = arith.addf %611, %612 : vector<8x128xf32>
    %614 = vector.extract_strided_slice %605 {offsets = [0, 128], sizes = [8, 128], strides = [1, 1]} : vector<8x512xf32> to vector<8x128xf32>
    %cst_256 = arith.constant 5.000000e-01 : f32
    %615 = vector.broadcast %cst_256 : f32 to vector<8x128xf32>
    %616 = arith.mulf %615, %614 : vector<8x128xf32>
    %617 = math.tanh %616 : vector<8x128xf32>
    %cst_257 = arith.constant 5.000000e-01 : f32
    %618 = vector.broadcast %cst_257 : f32 to vector<8x128xf32>
    %619 = arith.mulf %618, %617 : vector<8x128xf32>
    %cst_258 = arith.constant 5.000000e-01 : f32
    %620 = vector.broadcast %cst_258 : f32 to vector<8x128xf32>
    %621 = arith.addf %619, %620 : vector<8x128xf32>
    %622 = vector.extract_strided_slice %605 {offsets = [0, 256], sizes = [8, 128], strides = [1, 1]} : vector<8x512xf32> to vector<8x128xf32>
    %623 = math.tanh %622 : vector<8x128xf32>
    %624 = vector.extract_strided_slice %605 {offsets = [0, 384], sizes = [8, 128], strides = [1, 1]} : vector<8x512xf32> to vector<8x128xf32>
    %cst_259 = arith.constant 5.000000e-01 : f32
    %625 = vector.broadcast %cst_259 : f32 to vector<8x128xf32>
    %626 = arith.mulf %625, %624 : vector<8x128xf32>
    %627 = math.tanh %626 : vector<8x128xf32>
    %cst_260 = arith.constant 5.000000e-01 : f32
    %628 = vector.broadcast %cst_260 : f32 to vector<8x128xf32>
    %629 = arith.mulf %628, %627 : vector<8x128xf32>
    %cst_261 = arith.constant 5.000000e-01 : f32
    %630 = vector.broadcast %cst_261 : f32 to vector<8x128xf32>
    %631 = arith.addf %629, %630 : vector<8x128xf32>
    %632 = arith.mulf %621, %594 : vector<8x128xf32>
    %633 = arith.mulf %613, %623 : vector<8x128xf32>
    %634 = arith.addf %632, %633 : vector<8x128xf32>
    %635 = math.tanh %634 : vector<8x128xf32>
    %636 = arith.mulf %631, %635 : vector<8x128xf32>
    %637 = arith.index_cast %c6_i32_249 : i32 to index
    %c0_262 = arith.constant 0 : index
    %c0_263 = arith.constant 0 : index
    %638 = vector.load %arg9[%637, %c0_262, %c0_263] : memref<8x8x128xf32, #tpu.memory_space<vmem>>, vector<1x8x128xf32>
    %639 = vector.shape_cast %638 : vector<1x8x128xf32> to vector<8x128xf32>
    %640 = vector.shape_cast %636 : vector<8x128xf32> to vector<1x8x128xf32>
    tpu.vector_store %arg9[%637, %c0_262, %c0_263], %640 {strides = array<i32>} : memref<8x8x128xf32, #tpu.memory_space<vmem>>, vector<1x8x128xf32>,
    %c7_i32_264 = arith.constant 7 : i32
    %641 = arith.index_cast %c7_i32_264 : i32 to index
    %c0_265 = arith.constant 0 : index
    %c0_266 = arith.constant 0 : index
    %642 = vector.load %arg12[%641, %c0_265, %c0_266] : memref<8x8x512xf32, #tpu.memory_space<vmem>>, vector<1x8x512xf32>
    %643 = vector.shape_cast %642 : vector<1x8x512xf32> to vector<8x512xf32>
    %cst_267 = arith.constant dense<0.000000e+00> : vector<8x512xf32>
    %644 = tpu.matmul %636, %347, %cst_267 {dimension_numbers = #tpu.dot_dimension_numbers<[1], [0], [0], [1], [0, 0, 1, 1], [], []>} : vector<8x128xf32>, vector<128x512xf32>, vector<8x512xf32> -> vector<8x512xf32>
    %645 = arith.addf %643, %644 : vector<8x512xf32>
    %646 = vector.extract_strided_slice %645 {offsets = [0, 0], sizes = [8, 128], strides = [1, 1]} : vector<8x512xf32> to vector<8x128xf32>
    %cst_268 = arith.constant 5.000000e-01 : f32
    %647 = vector.broadcast %cst_268 : f32 to vector<8x128xf32>
    %648 = arith.mulf %647, %646 : vector<8x128xf32>
    %649 = math.tanh %648 : vector<8x128xf32>
    %cst_269 = arith.constant 5.000000e-01 : f32
    %650 = vector.broadcast %cst_269 : f32 to vector<8x128xf32>
    %651 = arith.mulf %650, %649 : vector<8x128xf32>
    %cst_270 = arith.constant 5.000000e-01 : f32
    %652 = vector.broadcast %cst_270 : f32 to vector<8x128xf32>
    %653 = arith.addf %651, %652 : vector<8x128xf32>
    %654 = vector.extract_strided_slice %645 {offsets = [0, 128], sizes = [8, 128], strides = [1, 1]} : vector<8x512xf32> to vector<8x128xf32>
    %cst_271 = arith.constant 5.000000e-01 : f32
    %655 = vector.broadcast %cst_271 : f32 to vector<8x128xf32>
    %656 = arith.mulf %655, %654 : vector<8x128xf32>
    %657 = math.tanh %656 : vector<8x128xf32>
    %cst_272 = arith.constant 5.000000e-01 : f32
    %658 = vector.broadcast %cst_272 : f32 to vector<8x128xf32>
    %659 = arith.mulf %658, %657 : vector<8x128xf32>
    %cst_273 = arith.constant 5.000000e-01 : f32
    %660 = vector.broadcast %cst_273 : f32 to vector<8x128xf32>
    %661 = arith.addf %659, %660 : vector<8x128xf32>
    %662 = vector.extract_strided_slice %645 {offsets = [0, 256], sizes = [8, 128], strides = [1, 1]} : vector<8x512xf32> to vector<8x128xf32>
    %663 = math.tanh %662 : vector<8x128xf32>
    %664 = vector.extract_strided_slice %645 {offsets = [0, 384], sizes = [8, 128], strides = [1, 1]} : vector<8x512xf32> to vector<8x128xf32>
    %cst_274 = arith.constant 5.000000e-01 : f32
    %665 = vector.broadcast %cst_274 : f32 to vector<8x128xf32>
    %666 = arith.mulf %665, %664 : vector<8x128xf32>
    %667 = math.tanh %666 : vector<8x128xf32>
    %cst_275 = arith.constant 5.000000e-01 : f32
    %668 = vector.broadcast %cst_275 : f32 to vector<8x128xf32>
    %669 = arith.mulf %668, %667 : vector<8x128xf32>
    %cst_276 = arith.constant 5.000000e-01 : f32
    %670 = vector.broadcast %cst_276 : f32 to vector<8x128xf32>
    %671 = arith.addf %669, %670 : vector<8x128xf32>
    %672 = arith.mulf %661, %634 : vector<8x128xf32>
    %673 = arith.mulf %653, %663 : vector<8x128xf32>
    %674 = arith.addf %672, %673 : vector<8x128xf32>
    %675 = math.tanh %674 : vector<8x128xf32>
    %676 = arith.mulf %671, %675 : vector<8x128xf32>
    %677 = arith.index_cast %c7_i32_264 : i32 to index
    %c0_277 = arith.constant 0 : index
    %c0_278 = arith.constant 0 : index
    %678 = vector.load %arg9[%677, %c0_277, %c0_278] : memref<8x8x128xf32, #tpu.memory_space<vmem>>, vector<1x8x128xf32>
    %679 = vector.shape_cast %678 : vector<1x8x128xf32> to vector<8x128xf32>
    %680 = vector.shape_cast %676 : vector<8x128xf32> to vector<1x8x128xf32>
    tpu.vector_store %arg9[%677, %c0_277, %c0_278], %680 {strides = array<i32>} : memref<8x8x128xf32, #tpu.memory_space<vmem>>, vector<1x8x128xf32>,
    %c8_i32_279 = arith.constant 8 : i32
    %c1_280 = arith.constant 1 : index
    %c0_281 = arith.constant 0 : index
    %c0_282 = arith.constant 0 : index
    %681 = vector.load %arg10[%c1_280, %c0_281, %c0_282] : memref<2x8x128xf32, #tpu.memory_space<vmem>>, vector<1x8x128xf32>
    %682 = vector.shape_cast %681 : vector<1x8x128xf32> to vector<8x128xf32>
    %683 = vector.shape_cast %676 : vector<8x128xf32> to vector<1x8x128xf32>
    tpu.vector_store %arg10[%c1_280, %c0_281, %c0_282], %683 {strides = array<i32>} : memref<2x8x128xf32, #tpu.memory_space<vmem>>, vector<1x8x128xf32>,
    %c1_283 = arith.constant 1 : index
    %c0_284 = arith.constant 0 : index
    %c0_285 = arith.constant 0 : index
    %684 = vector.load %arg11[%c1_283, %c0_284, %c0_285] : memref<2x8x128xf32, #tpu.memory_space<vmem>>, vector<1x8x128xf32>
    %685 = vector.shape_cast %684 : vector<1x8x128xf32> to vector<8x128xf32>
    %686 = vector.shape_cast %674 : vector<8x128xf32> to vector<1x8x128xf32>
    tpu.vector_store %arg11[%c1_283, %c0_284, %c0_285], %686 {strides = array<i32>} : memref<2x8x128xf32, #tpu.memory_space<vmem>>, vector<1x8x128xf32>,
    return
  }
  func.func @transform_0(%arg0: i32, %arg1: i32) -> (i32, i32, i32) {
    %c0_i32 = arith.constant 0 : i32
    %c0_i32_0 = arith.constant 0 : i32
    return %arg1, %arg0, %c0_i32 : i32, i32, i32
  }
  func.func @transform_1(%arg0: i32, %arg1: i32) -> (i32, i32, i32) {
    %c0_i32 = arith.constant 0 : i32
    %c0_i32_0 = arith.constant 0 : i32
    %c0_i32_1 = arith.constant 0 : i32
    return %c0_i32, %arg0, %c0_i32_0 : i32, i32, i32
  }
  func.func @transform_2(%arg0: i32, %arg1: i32) -> (i32, i32, i32) {
    %c0_i32 = arith.constant 0 : i32
    %c0_i32_0 = arith.constant 0 : i32
    %c0_i32_1 = arith.constant 0 : i32
    return %c0_i32, %arg0, %c0_i32_0 : i32, i32, i32
  }
  func.func @transform_3(%arg0: i32, %arg1: i32) -> (i32, i32, i32) {
    %c0_i32 = arith.constant 0 : i32
    %c0_i32_0 = arith.constant 0 : i32
    %c0_i32_1 = arith.constant 0 : i32
    %c0_i32_2 = arith.constant 0 : i32
    return %c0_i32, %c0_i32_0, %c0_i32_1 : i32, i32, i32
  }
  func.func @transform_4(%arg0: i32, %arg1: i32) -> (i32, i32, i32) {
    %c0_i32 = arith.constant 0 : i32
    %c0_i32_0 = arith.constant 0 : i32
    %c0_i32_1 = arith.constant 0 : i32
    %c0_i32_2 = arith.constant 0 : i32
    return %c0_i32, %c0_i32_0, %c0_i32_1 : i32, i32, i32
  }
  func.func @transform_5(%arg0: i32, %arg1: i32) -> (i32, i32) {
    %c0_i32 = arith.constant 0 : i32
    %c0_i32_0 = arith.constant 0 : i32
    %c0_i32_1 = arith.constant 0 : i32
    return %c0_i32, %c0_i32_0 : i32, i32
  }
  func.func @transform_6(%arg0: i32, %arg1: i32) -> (i32, i32) {
    %c0_i32 = arith.constant 0 : i32
    %c0_i32_0 = arith.constant 0 : i32
    %c0_i32_1 = arith.constant 0 : i32
    return %c0_i32, %c0_i32_0 : i32, i32
  }
  func.func @transform_7(%arg0: i32, %arg1: i32) -> (i32, i32, i32) {
    %c0_i32 = arith.constant 0 : i32
    %c0_i32_0 = arith.constant 0 : i32
    return %arg1, %arg0, %c0_i32 : i32, i32, i32
  }
  func.func @transform_8(%arg0: i32, %arg1: i32) -> (i32, i32, i32) {
    %c0_i32 = arith.constant 0 : i32
    %c0_i32_0 = arith.constant 0 : i32
    %c0_i32_1 = arith.constant 0 : i32
    return %c0_i32, %arg0, %c0_i32_0 : i32, i32, i32
  }
  func.func @transform_9(%arg0: i32, %arg1: i32) -> (i32, i32, i32) {
    %c0_i32 = arith.constant 0 : i32
    %c0_i32_0 = arith.constant 0 : i32
    %c0_i32_1 = arith.constant 0 : i32
    return %c0_i32, %arg0, %c0_i32_0 : i32, i32, i32
  }
}

</mosaic_0001>

<bundles_post_ra>
// kernel: tpu_custom_call.1
= control target key start
LH: loop header
LB: loop body
LE: loop exit
PB: predicated region body
PF: predicated region fallthrough
CT: control target
= control target key end

     0   :  { %s7419_s0 = inlined_call_operand.hbm [shape: f32[16,8,32], index: 0, kind: input, shape index: {}]   ;;  %s7420_s1 = inlined_call_operand.hbm [shape: f32[2,8,128], index: 1, kind: input, shape index: {}]   ;;  %s7421_s2 = inlined_call_operand.hbm [shape: f32[2,8,128], index: 2, kind: input, shape index: {}]   ;;  %s7422_s3 = inlined_call_operand.hbm [shape: f32[2,128,512], index: 3, kind: input, shape index: {}]   ;;  %s7423_s4 = inlined_call_operand.hbm [shape: f32[2,1,512], index: 4, kind: input, shape index: {}]   ;;  %s7424_s5 = inlined_call_operand.hbm [shape: f32[32,512], index: 5, kind: input, shape index: {}]   ;;  %s7425_s6 = inlined_call_operand.hbm [shape: f32[128,512], index: 6, kind: input, shape index: {}]   ;;  %s7426_s7 = inlined_call_operand.hbm [shape: f32[16,8,128], index: 7, kind: output, shape index: {0}]   ;;  %s7427_s8 = inlined_call_operand.hbm [shape: f32[2,8,128], index: 8, kind: output, shape index: {1}]   ;;  %s7428_s9 = inlined_call_operand.hbm [shape: f32[2,8,128], index: 9, kind: output, shape index: {2}]  }
   0x1   :  { %7648 = sst [smem:[#allocation81_spill]] %s7420_s1 }
   0x2   :  { %7649 = sst [smem:[#allocation82_spill]] %s7421_s2 }
   0x3   :  { %7650 = sst [smem:[#allocation83_spill]] %s7422_s3 }
   0x4   :  { %7651 = sst [smem:[#allocation84_spill]] %s7423_s4 }
   0x5   :  { %7652 = sst [smem:[#allocation85_spill]] %s7424_s5 }
   0x6   :  { %7653 = sst [smem:[#allocation86_spill]] %s7425_s6 }
   0x7   :  { %15 = vsyncpa [#allocation5], 0 }
   0x8   :  { %17 = vsyncpa [#allocation5 + $0x1], 0 }
   0x9   :  { %18 = vsyncpa [#allocation8], 0 }
   0xa   :  { %19 = vsyncpa [#allocation11], 0 }
   0xb   :  { %20 = vsyncpa [#allocation14], 0 }
   0xc   :  { %21 = vsyncpa [#allocation6], 0 }
   0xd   :  { %23 = vsyncpa [#allocation6 + $0x1], 0 }
   0xe   :  { %24 = vsyncpa [#allocation18], 0  ;;  %s5141_s30 = smov 0   ;;  %s5143_s10 = smov 0  }
   0xf   :  { %s5145_s11 = smov 0   ;;  %s5147_s12 = smov 0  }
  0x10   :  { %s5149_s13 = smov 0   ;;  %s5151_s14 = smov 0  }
  0x11 LB: > { %7654 = sst [smem:[#allocation26_spill]] %s5066_s13  ;;  %s7429_s15 = sadd.s32 4294967295, %s5070_s14   ;;  %s5070_s14 = sphi %s5151_s14, %s30_s14   ;;  %s5066_s13 = sphi %s5149_s13, %s8129_s13   ;;  %s5062_s12 = sphi %s5147_s12, %s8128_s12   ;;  %s5058_s11 = sphi %s5145_s11, %s8132_s11   ;;  %s5054_s10 = sphi %s5143_s10, %s8131_s10   ;;  %s5050_s30 = sphi %s5141_s30, %s8130_s30  }
  0x12   : > { %p4253_p0 = scmp.ge.s32.totalorder %s5070_s14, 1  ;;  %p5175_p1 = scmp.eq.s32.totalorder %s7429_s15, 0 }
  0x13   : > { %p291_p2 = scmp.lt.s32.totalorder %s5070_s14, 3  ;;  %s5072_s18 = smov [#allocation7]  }
  0x14   : > { %s305_s19 = sshll.u32 %s5072_s18, 4  ;;  %s5073_s21 = smov [#allocation10]   ;;  %s306_s19 = int_to_ptr.vmem [resolvable:$true] %s305_s19 }
  0x15   : > { %p5180_p3 = pnand %p4253_p0, %p291_p2  ;;  %s333_s22 = sshll.u32 %s5073_s21, 4  ;;  %s334_s22 = int_to_ptr.vmem [resolvable:$true] %s333_s22 }
  0x16   : > { %s4753_s24 = scalar_lea.vmem %s306_s19, 256  ;;  %p4761_p11 = scmp.lt.s32.totalorder %s306_s19, %s306_s19 }
  0x17   : > { %p4344_p4 = pneg %p5180_p3  ;;  %p4754_p8 = scmp.ne.s32.totalorder %s306_s19, %s4753_s24 }
  0x18   : > { %p4762_p12 = scmp.lt.s32.totalorder %s4753_s24, %s4753_s24 }
  0x19   : > { %p5189_p6 = pnand %p4344_p4, %p5175_p1 }
  0x1a   : > { %p4763_p13 = por %p4762_p12, %p4761_p11 }
  0x1b   : > { %p5195_p7 = pneg %p5189_p6 }
  0x1d   : > { %p4756_p9 = pnand %p4754_p8, %p5195_p7 }
  0x1f   : > { %p4757_p10 = pneg %p4756_p9 }
  0x21   : > { %p4764_p0 = pnand %p4763_p13, %p4757_p10 }
  0x23   : > { %4767 = shalt.err (!%p4764_p0)
}
  0x24   : > { %s7430_s25 = smov 128   ;;  %s7433_s26 = smov 8  }
  0x25   : > { %s7659_s1 = sld [smem:[#allocation81_spill]]  ;;  %s4779_s29 = scalar_lea.vmem %s334_s22, 16384 }
  0x26   : > { %p4780_p2 = scmp.ne.s32.totalorder %s334_s22, %s4779_s29  ;;  %p4787_p9 = scmp.lt.s32.totalorder %s334_s22, %s334_s22 }
  0x27   : > { %p4788_p10 = scmp.lt.s32.totalorder %s4779_s29, %s4779_s29 }
  0x28   : > { %p4782_p4 = pnand %p4780_p2, %p5195_p7 }
  0x29   : > { %p4789_p11 = por %p4788_p10, %p4787_p9 }
  0x2a   : > { %p4783_p8 = pneg %p4782_p4 }
  0x2b   : > { %4347 = dma.hbm_to_vmem [thread:$0]  (!%p5189_p6), %s7659_s1, 256, %s306_s19, [#allocation8], %s7430_s25, %s7430_s25, %s7433_s26  }
  0x2c   : > { %p4790_p12 = pnand %p4789_p11, %p4783_p8 }
  0x2e   : > { %4793 = shalt.err (!%p4790_p12)
}
  0x2f   : > { %s7432_s18 = smov 512   ;;  %s5077_s21 = smov 32  }
  0x30   : > { %s7660_s3 = sld [smem:[#allocation83_spill]]  ;;  %s5078_s27 = smov [#allocation13]  }
  0x31   : > { %s359_s28 = sshll.u32 %s5078_s27, 4  ;;  %s5079_s15 = smov [#allocation9]   ;;  %s360_s28 = int_to_ptr.vmem [resolvable:$true] %s359_s28 }
  0x32   : > { %s320_s25 = sshll.u32 %s5079_s15, 4  ;;  %s4805_s29 = scalar_lea.vmem %s360_s28, 2048  ;;  %s321_s25 = int_to_ptr.vmem [resolvable:$true] %s320_s25 }
  0x33   : > { %p4806_p13 = scmp.ne.s32.totalorder %s360_s28, %s4805_s29  ;;  %p4813_p4 = scmp.lt.s32.totalorder %s360_s28, %s360_s28 }
  0x34   : > { %p4814_p8 = scmp.lt.s32.totalorder %s4805_s29, %s4805_s29 }
  0x35   : > { %p4808_p0 = pnand %p4806_p13, %p5195_p7 }
  0x36   : > { %4353 = dma.hbm_to_vmem [thread:$0]  (!%p5189_p6), %s7660_s3, 16384, %s334_s22, [#allocation11], %s7432_s18, %s7432_s18, %s5077_s21  }
  0x37   : > { %p4809_p2 = pneg %p4808_p0  ;;  %p4815_p9 = por %p4814_p8, %p4813_p4 }
  0x39   : > { %p4816_p10 = pnand %p4815_p9, %p4809_p2 }
  0x3b   : > { %4819 = shalt.err (!%p4816_p10)
}
  0x3c   : > { %s7661_s5 = sld [smem:[#allocation85_spill]]  ;;  %s4831_s15 = scalar_lea.vmem %s321_s25, 256 }
  0x3d   : > { %p4832_p11 = scmp.ne.s32.totalorder %s321_s25, %s4831_s15  ;;  %p4839_p0 = scmp.lt.s32.totalorder %s321_s25, %s321_s25 }
  0x3e   : > { %p4840_p5 = scmp.lt.s32.totalorder %s4831_s15, %s4831_s15 }
  0x3f   : > { %p4834_p12 = pnand %p4832_p11, %p5195_p7 }
  0x40   : > { %p4841_p4 = por %p4840_p5, %p4839_p0 }
  0x41   : > { %p4835_p13 = pneg %p4834_p12 }
  0x42   : > { %4359 = dma.hbm_to_vmem [thread:$0]  (!%p5189_p6), %s7661_s5, 2048, %s360_s28, [#allocation14], %s7432_s18, %s7432_s18, %s5077_s21  }
  0x43   : > { %p4842_p2 = pnand %p4841_p4, %p4835_p13 }
  0x45   : > { %4845 = shalt.err (!%p4842_p2)
}
  0x46   : > { %s7662_s19 = smov 128   ;;  %s7663_s2 = sld [smem:[#allocation82_spill]] }
  0x47   : > { %s5080_s28 = smov [#allocation12]  }
  0x48   : > { %s346_s22 = sshll.u32 %s5080_s28, 4  ;;  %s347_s22 = int_to_ptr.vmem [resolvable:$true] %s346_s22 }
  0x49   : > { %s4857_s24 = scalar_lea.vmem %s347_s22, 128  ;;  %p4865_p10 = scmp.lt.s32.totalorder %s347_s22, %s347_s22 }
  0x4a   : > { %p4858_p8 = scmp.ne.s32.totalorder %s347_s22, %s4857_s24  ;;  %p4866_p11 = scmp.lt.s32.totalorder %s4857_s24, %s4857_s24 }
  0x4c   : > { %4350 = dma.hbm_to_vmem [thread:$0]  (!%p5189_p6), %s7663_s2, 256, %s321_s25, [#allocation8], %s7662_s19, %s7662_s19, %s7433_s26  }
  0x4d   : > { %p4860_p9 = pnand %p4858_p8, %p5195_p7  ;;  %p4867_p12 = por %p4866_p11, %p4865_p10 }
  0x4f   : > { %p4861_p5 = pneg %p4860_p9 }
  0x51   : > { %p4868_p13 = pnand %p4867_p12, %p4861_p5 }
  0x53   : > { %4871 = shalt.err (!%p4868_p13)
}
  0x54   : > { %s5081_s15 = smov 64   ;;  %s5082_s18 = smov 4  }
  0x55   : > { %s7664_s4 = sld [smem:[#allocation84_spill]]  ;;  %s5083_s29 = smov [#allocation15]  }
  0x56   : > { %s372_s28 = sshll.u32 %s5083_s29, 4  ;;  %s373_s28 = int_to_ptr.vmem [resolvable:$true] %s372_s28 }
  0x57   : > { %s4883_s26 = scalar_lea.vmem %s373_s28, 8192  ;;  %p4891_p8 = scmp.lt.s32.totalorder %s373_s28, %s373_s28 }
  0x58   : > { %p4884_p0 = scmp.ne.s32.totalorder %s373_s28, %s4883_s26  ;;  %p4892_p9 = scmp.lt.s32.totalorder %s4883_s26, %s4883_s26 }
  0x5a   : > { %p4886_p4 = pnand %p4884_p0, %p5195_p7  ;;  %p4893_p5 = por %p4892_p9, %p4891_p8 }
  0x5b   : > { %4356 = dma.hbm_to_vmem [thread:$0]  (!%p5189_p6), %s7664_s4, 128, %s347_s22, [#allocation11], %s5081_s15, %s5081_s15, %s5082_s18  }
  0x5c   : > { %p4887_p2 = pneg %p4886_p4 }
  0x5e   : > { %p4894_p10 = pnand %p4893_p5, %p4887_p2 }
  0x60   : > { %4897 = shalt.err (!%p4894_p10)
}
  0x61   : > { %s7665_s24 = smov 512   ;;  %s7666_s6 = sld [smem:[#allocation86_spill]] }
  0x62   : > { %s4252_s20 = sadd.s32 4294967294, %s5070_s14   ;;  %s39_s23 = sadd.s32 1, %s5066_s13 }
  0x63   : > { %p40_p7 = scmp.ge.s32.totalorder %s39_s23, 2  ;;  %s51_s26 = sadd.s32 1, %s5058_s11 }
  0x64   : > { %p58_p11 = scmp.ne.s32.totalorder %s5058_s11, %s5054_s10  ;;  %p59_p12 = scmp.eq.s32.totalorder %s5070_s14, 0 }
  0x65   : > { %s8134_s23 = smov (%p40_p7, %s39_s23), 0  ;;  %p64_p0 = scmp.ne.s32.totalorder %s5054_s10, %s5050_s30 }
  0x66   : > { %7667 = sst [smem:[#allocation27_spill]] %s8134_s23  ;;  %p5264_p13 = por %p59_p12, %p58_p11 }
  0x67   : > { %4362 = dma.hbm_to_vmem [thread:$0]  (!%p5189_p6), %s7666_s6, 8192, %s373_s28, [#allocation14], %s7665_s24, %s7665_s24, %s5077_s21  }
  0x68   : > { %s46_s21 = ssub.s32 %s5066_s13, %s8134_s23  ;;  %s7669_s15 = sadd.s32 4294967295, %s5070_s14  }
  0x69   : > { %p5274_p6 = scmp.eq.s32.totalorder %s7669_s15, 1  ;;  %p49_p4 = scmp.eq.s32.totalorder %s46_s21, 0 }
  0x6a   : > { %p5280_p2 = por %p5175_p1, %p64_p0  ;;  %p232_p9 = scmp.eq.s32.totalorder %s4252_s20, 1 }
  0x6b   : > { %p5286_p8 = por %p5274_p6, %p58_p11  ;;  %p4377_p10 = scmp.lt.s32.totalorder %s5070_s14, 2 }
  0x6c   : > { %s5291_s24 = scalar_select %p49_p4, %s5058_s11, %s51_s26  }
  0x6d   : > { %s7672_s28 = scalar_select %p5286_p8, 1, 0 }
  0x6e   : > { %p5293_p5 = por %p232_p9, %p64_p0  ;;  %s386_s18 = sand.u32 1, %s5058_s11  }
  0x6f   : > { %s4306_s21 = sshll.u32 %s5066_s13, 10  ;;  %s4261_s15 = sshll.u32 %s386_s18, 6 }
  0x70   : > { %s7673_s27 = scalar_select %p5293_p5, 1, 0 }
  0x71   : > { %s397_s3 = scalar_lea.hbm %s7419_s0, %s4306_s21  ;;  %s390_s4 = scalar_lea.vmem [#allocation4], %s4261_s15 }
  0x72   : > { %s398_s5 = sshll.u32 %s390_s4, 4  ;;  %p5305_p7 = pnand %p4377_p10, %p5264_p13  ;;  %s399_s5 = int_to_ptr.vmem [resolvable:$true] %s398_s5 }
  0x73   : > { %s387_s20 = scalar_lea.sflag [#allocation5], %s386_s18  ;;  %s4911_s26 = scalar_lea.vmem %s399_s5, 1024 }
  0x74   : > { %p4900_p11 = pneg %p5305_p7  ;;  %p4912_p12 = scmp.ne.s32.totalorder %s399_s5, %s4911_s26 }
  0x75   : > { %s5084_s23 = smov [#allocation4]  }
  0x76   : > { %p4914_p0 = pnand %p4912_p12, %p4900_p11  ;;  %s4916_s13 = sshll.u32 %s5084_s23, 4  ;;  %s4917_s13 = int_to_ptr.vmem [resolvable:$false] %s4916_s13 }
  0x77   : > { %s4918_s1 = scalar_lea.vmem %s4917_s13, 2048  ;;  %p4919_p9 = scmp.lt.s32.totalorder %s399_s5, %s4917_s13 }
  0x78   : > { %p4915_p4 = pneg %p4914_p0  ;;  %p4920_p5 = scmp.lt.s32.totalorder %s4918_s1, %s4911_s26 }
  0x7a   : > { %p4921_p8 = por %p4920_p5, %p4919_p9 }
  0x7c   : > { %p4922_p13 = pnand %p4921_p8, %p4915_p4 }
  0x7e   : > { %4925 = shalt.err (!%p4922_p13)
}
  0x7f   : > { %s7675_s2 = smov 8   ;;  %410 = sbr.rel (%p5180_p3) target bundleno = 4046 (0xfce), region = 48 }
  0x80   : > { %4366 = dma.hbm_to_vmem [thread:$0]  (!%p5305_p7), %s397_s3, 1024, %s399_s5, %s387_s20, %s7662_s19, %s7662_s19, %s7675_s2  }
  0x84   : > { %s5319_s4 = sand.u32 1, %s5054_s10  }
  0x85   : > { %s4265_s13 = sshll.u32 %s5319_s4, 6  ;;  %s413_s23 = scalar_lea.sflag [#allocation5], %s5319_s4 }
  0x86   : > { %s5323_s22 = scalar_lea.vmem [#allocation4], %s4265_s13 }
  0x87   : > { %5025 = dma.done.wait (%p5280_p2), %s413_s23, 1024  }
  0x88   : > { %5027 = vsyncadd (%p5280_p2), %s413_s23, 4294966272 }
  0x89   : > { %5029 = dma.done.wait (%p5175_p1), [#allocation8], 512  }
  0x8a   : > { %5031 = vsyncadd (%p5175_p1), [#allocation8], 4294966784 }
  0x8b   : > { %5033 = dma.done.wait (%p5175_p1), [#allocation11], 16512  }
  0x8c   : > { %5035 = vsyncadd (%p5175_p1), [#allocation11], 4294950784 }
  0x8d   : > { %5037 = dma.done.wait (%p5175_p1), [#allocation14], 10240  }
  0x8e   : > { %5039 = vsyncadd (%p5175_p1), [#allocation14], 4294957056  ;;  %s5341_s3 = scalar_lea.vmem [#allocation16], %s4265_s13  ;;  %p4273_p3 = scmp.ne.s32.totalorder %s5062_s12, 0 }
  0x90   : > { %480 = sbr.rel (%p4273_p3) target bundleno = 152 (0x98), region = 80 }
  0x95   : > { %v481_v0 = vld [vmem:[#allocation7] sm:$0xff]  ;;  %v482_v1 = vld [vmem:[#allocation7 + $0x8] sm:$0xff]  ;;  %v485_v2 = vld [vmem:[#allocation9] sm:$0xff] }
  0x96   : > { %483 = vst [vmem:[#allocation17] sm:$0xff] %v481_v0  ;;  %484 = vst [vmem:[#allocation17 + $0x8] sm:$0xff] %v482_v1  ;;  %v486_v3 = vld [vmem:[#allocation9 + $0x8] sm:$0xff] }
  0x97   : > { %487 = vst [vmem:[#allocation19] sm:$0xff] %v485_v2  ;;  %488 = vst [vmem:[#allocation19 + $0x8] sm:$0xff] %v486_v3 }
  0x98 PF: > { %v502_v4 = vld [vmem:[#allocation13 + $0x68] sm:$0xff]  ;;  %v504_v5 = vld [vmem:[#allocation13 + $0x78] sm:$0xff]  ;;  %v501_v6 = vld [vmem:[#allocation13 + $0x60] sm:$0xff]  ;;  %vm599_vm0 = vcmask 261120   ;;  %v7437_v21 = vmov 0.0   ;;  %s5086_s5 = smov [#allocation17]  }
  0x99   : > { %648 = vmatprep.subr.mxu0 %v502_v4  ;;  %761 = vmatprep.subr.mxu1 %v504_v5  ;;  %v503_v7 = vld [vmem:[#allocation13 + $0x70] sm:$0xff]  ;;  %v498_v8 = vld [vmem:[#allocation13 + $0x48] sm:$0xff]  ;;  %v500_v9 = vld [vmem:[#allocation13 + $0x58] sm:$0xff]  ;;  %s4065_s6 = sshll.u32 %s5086_s5, 4  ;;  %s4307_s16 = sshll.u32 %s5062_s12, 10  ;;  %s4066_s6 = int_to_ptr.vmem [resolvable:$true] %s4065_s6 }
  0x9a   : > { %649 = vmatpush1.msra.mxu0 %v501_v6  ;;  %762 = vmatpush1.msra.mxu1 %v503_v7  ;;  %v497_v10 = vld [vmem:[#allocation13 + $0x40] sm:$0xff]  ;;  %v499_v11 = vld [vmem:[#allocation13 + $0x50] sm:$0xff]  ;;  %v494_v12 = vld [vmem:[#allocation13 + $0x28] sm:$0xff]  ;;  %s4050_s17 = sshll.u32 %s5341_s3, 4  ;;  %s5087_s19 = smov [#allocation19]   ;;  %s7338_s17 = int_to_ptr.vmem [resolvable:$true] %s4050_s17 }
  0x9b   : > { %650 = vmatprep.subr.mxu0 %v498_v8  ;;  %763 = vmatprep.subr.mxu1 %v500_v9  ;;  %v496_v13 = vld [vmem:[#allocation13 + $0x38] sm:$0xff]  ;;  %v493_v14 = vld [vmem:[#allocation13 + $0x20] sm:$0xff]  ;;  %v495_v15 = vld [vmem:[#allocation13 + $0x30] sm:$0xff]  ;;  %s4080_s29 = sshll.u32 %s5087_s19, 4  ;;  %s7336_s15 = scalar_lea.hbm %s7426_s7, %s4307_s16  ;;  %s7341_s29 = int_to_ptr.vmem [resolvable:$true] %s4080_s29 }
  0x9c   : > { %651 = vmatpush1.msra.mxu0 %v497_v10  ;;  %764 = vmatpush1.msra.mxu1 %v499_v11  ;;  %v490_v16 = vld [vmem:[#allocation13 + $0x8] sm:$0xff]  ;;  %v492_v17 = vld [vmem:[#allocation13 + $0x18] sm:$0xff]  ;;  %v489_v18 = vld [vmem:[#allocation13] sm:$0xff]  ;;  %s4926_s20 = scalar_lea.vmem %s4066_s6, 256  ;;  %p4933_p5 = scmp.lt.s32.totalorder %s4066_s6, %s4066_s6 }
  0x9d   : > { %652 = vmatprep.subr.mxu0 %v494_v12  ;;  %765 = vmatprep.subr.mxu1 %v496_v13  ;;  %v491_v19 = vld [vmem:[#allocation13 + $0x10] sm:$0xff]  ;;  %v570_v20 = vld [vmem:[%s5323_s22] sm:$0xff]  ;;  %v5346_v22 = vld [vmem:[#allocation10 + $0x1e8] sm:$0xff]  ;;  %p4927_p1 = scmp.ne.s32.totalorder %s4066_s6, %s4926_s20  ;;  %p4934_p10 = scmp.lt.s32.totalorder %s4926_s20, %s4926_s20 }
  0x9e   : > { %653 = vmatpush1.msra.mxu0 %v493_v14  ;;  %766 = vmatpush1.msra.mxu1 %v495_v15  ;;  %7676 = vst [vmem:[#allocation28_spill] sm:$0xff] %v5346_v22  ;;  %v5348_v23 = vld [vmem:[#allocation10 + $0x1f8] sm:$0xff]  ;;  %v5351_v24 = vld [vmem:[#allocation10 + $0x1e0] sm:$0xff]  ;;  %v5353_v25 = vld [vmem:[#allocation10 + $0x1f0] sm:$0xff] }
  0x9f   : > { %654 = vmatprep.subr.mxu0 %v490_v16  ;;  %767 = vmatprep.subr.mxu1 %v492_v17  ;;  %7677 = vst [vmem:[#allocation29_spill] sm:$0xff] %v5348_v23  ;;  %v5357_v26 = vld [vmem:[#allocation10 + $0x1c8] sm:$0xff]  ;;  %v5359_v27 = vld [vmem:[#allocation10 + $0x1d8] sm:$0xff]  ;;  %v5365_v28 = vld [vmem:[#allocation10 + $0x1c0] sm:$0xff]  ;;  %p4928_p2 = pnand %p4927_p1, %p5274_p6  ;;  %p4935_p7 = por %p4934_p10, %p4933_p5 }
  0xa0   : > { %655 = vmatpush1.msra.mxu0 %v489_v18  ;;  %688 = vmatprep.mubr.f32.mxu0 %v7437_v21  ;;  %v5367_v29 = vld [vmem:[#allocation10 + $0x1d0] sm:$0xff]  ;;  %v571_v30 = vld [vmem:[%s5323_s22 + $0x8] sm:$0xff]  ;;  %v5376_v32 = vld [vmem:[#allocation10 + $0x1b8] sm:$0xff] }
  0xa1   : > { %768 = vmatpush1.msra.mxu1 %v491_v19  ;;  %801 = vmatprep.mubr.f32.mxu1 %v7437_v21  ;;  %v5374_v31 = vld [vmem:[#allocation10 + $0x1a8] sm:$0xff]  ;;  %v5380_v33 = vld [vmem:[#allocation10 + $0x1a0] sm:$0xff]  ;;  %v5382_v34 = vld [vmem:[#allocation10 + $0x1b0] sm:$0xff]  ;;  %p4929_p8 = pneg %p4928_p2 }
  0xa2   : > { %4274 = vmatmul.mubr.msk.f32.vlgmr.msra.gmra.mxu0 %vm599_vm0, %v570_v20  ;;  %4282 = vmatmul.mubr.msk.f32.vlgmr.msra.gmra.mxu1 %vm599_vm0, %v570_v20  ;;  %v5386_v35 = vld [vmem:[#allocation10 + $0x188] sm:$0xff]  ;;  %v5388_v36 = vld [vmem:[#allocation10 + $0x198] sm:$0xff]  ;;  %v5394_v37 = vld [vmem:[#allocation10 + $0x180] sm:$0xff] }
  0xa3   : > { %888 = vmatprep.subr.mxu0 %v5346_v22  ;;  %959 = vmatprep.subr.mxu1 %v5348_v23  ;;  %v5396_v38 = vld [vmem:[#allocation10 + $0x190] sm:$0xff]  ;;  %v5403_v40 = vld [vmem:[#allocation10 + $0x168] sm:$0xff]  ;;  %v5405_v41 = vld [vmem:[#allocation10 + $0x178] sm:$0xff]  ;;  %p4936_p11 = pnand %p4935_p7, %p4929_p8 }
  0xa4   : > { %889 = vmatpush1.msra.mxu0 %v5351_v24  ;;  %960 = vmatpush1.msra.mxu1 %v5353_v25  ;;  %v572_v39 = vld [vmem:[%s5323_s22 + $0x10] sm:$0xff]  ;;  %v5409_v42 = vld [vmem:[#allocation10 + $0x160] sm:$0xff]  ;;  %v5415_v44 = vld [vmem:[#allocation10 + $0x148] sm:$0xff] }
  0xa5   : > { %890 = vmatprep.subr.mxu0 %v5357_v26  ;;  %961 = vmatprep.subr.mxu1 %v5359_v27  ;;  %v5411_v43 = vld [vmem:[#allocation10 + $0x170] sm:$0xff]  ;;  %v5417_v45 = vld [vmem:[#allocation10 + $0x158] sm:$0xff]  ;;  %v5423_v46 = vld [vmem:[#allocation10 + $0x140] sm:$0xff] }
  0xa6   : > { %694 = vmatprep.mubr.f32.mxu0 %v7437_v21  ;;  %807 = vmatprep.mubr.f32.mxu1 %v7437_v21  ;;  %v5425_v47 = vld [vmem:[#allocation10 + $0x150] sm:$0xff]  ;;  %v573_v48 = vld [vmem:[%s5323_s22 + $0x18] sm:$0xff]  ;;  %v5432_v49 = vld [vmem:[#allocation10 + $0x128] sm:$0xff] }
  0xa7   : > { %891 = vmatpush1.msra.mxu0 %v5365_v28  ;;  %962 = vmatpush1.msra.mxu1 %v5367_v29  ;;  %v5434_v50 = vld [vmem:[#allocation10 + $0x138] sm:$0xff]  ;;  %v5438_v51 = vld [vmem:[#allocation10 + $0x120] sm:$0xff]  ;;  %v5440_v52 = vld [vmem:[#allocation10 + $0x130] sm:$0xff] }
  0xa8   : > { %4275 = vmatmul.mubr.msk.f32.gmra.mxu0 %vm599_vm0, %v571_v30  ;;  %4283 = vmatmul.mubr.msk.f32.gmra.mxu1 %vm599_vm0, %v571_v30  ;;  %v5444_v53 = vld [vmem:[#allocation10 + $0x108] sm:$0xff]  ;;  %v5446_v54 = vld [vmem:[#allocation10 + $0x118] sm:$0xff]  ;;  %v5452_v55 = vld [vmem:[#allocation10 + $0x100] sm:$0xff] }
  0xa9   : > { %892 = vmatprep.subr.mxu0 %v5374_v31  ;;  %963 = vmatprep.subr.mxu1 %v5376_v32  ;;  %v5454_v56 = vld [vmem:[#allocation10 + $0x110] sm:$0xff]  ;;  %v574_v57 = vld [vmem:[%s5323_s22 + $0x20] sm:$0xff]  ;;  %v5461_v58 = vld [vmem:[#allocation10 + $0xe8] sm:$0xff] }
  0xaa   : > { %893 = vmatpush1.msra.mxu0 %v5380_v33  ;;  %964 = vmatpush1.msra.mxu1 %v5382_v34  ;;  %v5463_v59 = vld [vmem:[#allocation10 + $0xf8] sm:$0xff]  ;;  %v5467_v60 = vld [vmem:[#allocation10 + $0xe0] sm:$0xff]  ;;  %v5469_v61 = vld [vmem:[#allocation10 + $0xf0] sm:$0xff] }
  0xab   : > { %894 = vmatprep.subr.mxu0 %v5386_v35  ;;  %965 = vmatprep.subr.mxu1 %v5388_v36  ;;  %v5473_v62 = vld [vmem:[#allocation10 + $0xc8] sm:$0xff]  ;;  %v5475_v63 = vld [vmem:[#allocation10 + $0xd8] sm:$0xff]  ;;  %v5481_v0 = vld [vmem:[#allocation10 + $0xc0] sm:$0xff] }
  0xac   : > { %700 = vmatprep.mubr.f32.mxu0 %v7437_v21  ;;  %813 = vmatprep.mubr.f32.mxu1 %v7437_v21  ;;  %v5483_v1 = vld [vmem:[#allocation10 + $0xd0] sm:$0xff]  ;;  %v575_v2 = vld [vmem:[%s5323_s22 + $0x28] sm:$0xff]  ;;  %v5492_v4 = vld [vmem:[#allocation10 + $0xb8] sm:$0xff] }
  0xad   : > { %895 = vmatpush1.msra.mxu0 %v5394_v37  ;;  %966 = vmatpush1.msra.mxu1 %v5396_v38  ;;  %v5490_v3 = vld [vmem:[#allocation10 + $0xa8] sm:$0xff]  ;;  %v5496_v5 = vld [vmem:[#allocation10 + $0xa0] sm:$0xff]  ;;  %v5498_v6 = vld [vmem:[#allocation10 + $0xb0] sm:$0xff] }
  0xae   : > { %4276 = vmatmul.mubr.msk.f32.gmra.mxu0 %vm599_vm0, %v572_v39  ;;  %4284 = vmatmul.mubr.msk.f32.gmra.mxu1 %vm599_vm0, %v572_v39  ;;  %7678 = vst [vmem:[#allocation30_spill] sm:$0xff] %v5498_v6  ;;  %v5502_v7 = vld [vmem:[#allocation10 + $0x88] sm:$0xff]  ;;  %v5504_v8 = vld [vmem:[#allocation10 + $0x98] sm:$0xff]  ;;  %v5510_v9 = vld [vmem:[#allocation10 + $0x80] sm:$0xff] }
  0xaf   : > { %896 = vmatprep.subr.mxu0 %v5403_v40  ;;  %967 = vmatprep.subr.mxu1 %v5405_v41  ;;  %7679 = vst [vmem:[#allocation31_spill] sm:$0xff] %v5502_v7  ;;  %7680 = vst [vmem:[#allocation32_spill] sm:$0xff] %v5504_v8  ;;  %v5512_v10 = vld [vmem:[#allocation10 + $0x90] sm:$0xff]  ;;  %v5519_v12 = vld [vmem:[#allocation10 + $0x68] sm:$0xff] }
  0xb0   : > { %897 = vmatpush1.msra.mxu0 %v5409_v42  ;;  %968 = vmatpush1.msra.mxu1 %v5411_v43  ;;  %7681 = vst [vmem:[#allocation33_spill] sm:$0xff] %v5510_v9  ;;  %7682 = vst [vmem:[#allocation34_spill] sm:$0xff] %v5512_v10  ;;  %v576_v11 = vld [vmem:[%s5323_s22 + $0x30] sm:$0xff]  ;;  %v5521_v13 = vld [vmem:[#allocation10 + $0x78] sm:$0xff] }
  0xb1   : > { %898 = vmatprep.subr.mxu0 %v5415_v44  ;;  %969 = vmatprep.subr.mxu1 %v5417_v45  ;;  %7683 = vst [vmem:[#allocation35_spill] sm:$0xff] %v5519_v12  ;;  %7684 = vst [vmem:[#allocation36_spill] sm:$0xff] %v5521_v13  ;;  %v5525_v14 = vld [vmem:[#allocation10 + $0x60] sm:$0xff]  ;;  %v5527_v15 = vld [vmem:[#allocation10 + $0x70] sm:$0xff] }
  0xb2   : > { %706 = vmatprep.mubr.f32.mxu0 %v7437_v21  ;;  %819 = vmatprep.mubr.f32.mxu1 %v7437_v21  ;;  %7685 = vst [vmem:[#allocation37_spill] sm:$0xff] %v5525_v14  ;;  %7686 = vst [vmem:[#allocation38_spill] sm:$0xff] %v5527_v15  ;;  %v5531_v16 = vld [vmem:[#allocation10 + $0x48] sm:$0xff]  ;;  %v5533_v17 = vld [vmem:[#allocation10 + $0x58] sm:$0xff] }
  0xb3   : > { %899 = vmatpush1.msra.mxu0 %v5423_v46  ;;  %970 = vmatpush1.msra.mxu1 %v5425_v47  ;;  %7687 = vst [vmem:[#allocation39_spill] sm:$0xff] %v5531_v16  ;;  %7688 = vst [vmem:[#allocation40_spill] sm:$0xff] %v5533_v17  ;;  %v5539_v18 = vld [vmem:[#allocation10 + $0x40] sm:$0xff]  ;;  %v5541_v19 = vld [vmem:[#allocation10 + $0x50] sm:$0xff] }
  0xb4   : > { %4277 = vmatmul.mubr.msk.f32.gmra.mxu0 %vm599_vm0, %v573_v48  ;;  %4285 = vmatmul.mubr.msk.f32.gmra.mxu1 %vm599_vm0, %v573_v48  ;;  %7689 = vst [vmem:[#allocation41_spill] sm:$0xff] %v5539_v18  ;;  %7690 = vst [vmem:[#allocation42_spill] sm:$0xff] %v5541_v19  ;;  %v577_v20 = vld [vmem:[%s5323_s22 + $0x38] sm:$0xff]  ;;  %v5548_v30 = vld [vmem:[#allocation10 + $0x28] sm:$0xff] }
  0xb5   : > { %900 = vmatprep.subr.mxu0 %v5432_v49  ;;  %971 = vmatprep.subr.mxu1 %v5434_v50  ;;  %7691 = vst [vmem:[#allocation43_spill] sm:$0xff] %v5548_v30  ;;  %v5550_v39 = vld [vmem:[#allocation10 + $0x38] sm:$0xff]  ;;  %v5554_v48 = vld [vmem:[#allocation10 + $0x20] sm:$0xff] }
  0xb6   : > { %901 = vmatpush1.msra.mxu0 %v5438_v51  ;;  %972 = vmatpush1.msra.mxu1 %v5440_v52  ;;  %7692 = vst [vmem:[#allocation44_spill] sm:$0xff] %v5550_v39  ;;  %7693 = vst [vmem:[#allocation45_spill] sm:$0xff] %v5554_v48 }
  0xb7   : > { %902 = vmatprep.subr.mxu0 %v5444_v53  ;;  %973 = vmatprep.subr.mxu1 %v5446_v54 }
  0xb8   : > { %712 = vmatprep.mubr.f32.mxu0 %v7437_v21  ;;  %825 = vmatprep.mubr.f32.mxu1 %v7437_v21 }
  0xb9   : > { %903 = vmatpush1.msra.mxu0 %v5452_v55  ;;  %974 = vmatpush1.msra.mxu1 %v5454_v56 }
  0xba   : > { %4278 = vmatmul.mubr.msk.f32.gmra.mxu0 %vm599_vm0, %v574_v57  ;;  %4286 = vmatmul.mubr.msk.f32.gmra.mxu1 %vm599_vm0, %v574_v57  ;;  %v5556_v57 = vld [vmem:[#allocation10 + $0x30] sm:$0xff] }
  0xbb   : > { %904 = vmatprep.subr.mxu0 %v5461_v58  ;;  %975 = vmatprep.subr.mxu1 %v5463_v59  ;;  %7694 = vst [vmem:[#allocation46_spill] sm:$0xff] %v5556_v57 }
  0xbc   : > { %905 = vmatpush1.msra.mxu0 %v5467_v60  ;;  %976 = vmatpush1.msra.mxu1 %v5469_v61 }
  0xbd   : > { %906 = vmatprep.subr.mxu0 %v5473_v62  ;;  %977 = vmatprep.subr.mxu1 %v5475_v63 }
  0xbe   : > { %718 = vmatprep.mubr.f32.mxu0 %v7437_v21  ;;  %831 = vmatprep.mubr.f32.mxu1 %v7437_v21 }
  0xbf   : > { %907 = vmatpush1.msra.mxu0 %v5481_v0  ;;  %978 = vmatpush1.msra.mxu1 %v5483_v1 }
  0xc0   : > { %4279 = vmatmul.mubr.msk.f32.gmra.mxu0 %vm599_vm0, %v575_v2  ;;  %4287 = vmatmul.mubr.msk.f32.gmra.mxu1 %vm599_vm0, %v575_v2  ;;  %v5560_v2 = vld [vmem:[#allocation10 + $0x8] sm:$0xff] }
  0xc1   : > { %908 = vmatprep.subr.mxu0 %v5490_v3  ;;  %979 = vmatprep.subr.mxu1 %v5492_v4  ;;  %7695 = vst [vmem:[#allocation47_spill] sm:$0xff] %v5560_v2 }
  0xc2   : > { %909 = vmatpush1.msra.mxu0 %v5496_v5  ;;  %980 = vmatpush1.msra.mxu1 %v5498_v6 }
  0xc3   : > { %910 = vmatprep.subr.mxu0 %v5502_v7  ;;  %981 = vmatprep.subr.mxu1 %v5504_v8 }
  0xc4   : > { %724 = vmatprep.mubr.f32.mxu0 %v7437_v21  ;;  %837 = vmatprep.mubr.f32.mxu1 %v7437_v21 }
  0xc5   : > { %911 = vmatpush1.msra.mxu0 %v5510_v9  ;;  %982 = vmatpush1.msra.mxu1 %v5512_v10 }
  0xc6   : > { %4280 = vmatmul.mubr.msk.f32.gmra.mxu0 %vm599_vm0, %v576_v11  ;;  %4288 = vmatmul.mubr.msk.f32.gmra.mxu1 %vm599_vm0, %v576_v11  ;;  %v5562_v11 = vld [vmem:[#allocation10 + $0x18] sm:$0xff] }
  0xc7   : > { %912 = vmatprep.subr.mxu0 %v5519_v12  ;;  %983 = vmatprep.subr.mxu1 %v5521_v13  ;;  %7696 = vst [vmem:[#allocation48_spill] sm:$0xff] %v5562_v11 }
  0xc8   : > { %913 = vmatpush1.msra.mxu0 %v5525_v14  ;;  %984 = vmatpush1.msra.mxu1 %v5527_v15 }
  0xc9   : > { %914 = vmatprep.subr.mxu0 %v5531_v16  ;;  %985 = vmatprep.subr.mxu1 %v5533_v17 }
  0xca   : > { %730 = vmatprep.mubr.f32.mxu0 %v7437_v21  ;;  %843 = vmatprep.mubr.f32.mxu1 %v7437_v21  ;;  %v5566_v21 = vld [vmem:[#allocation10] sm:$0xff] }
  0xcb   : > { %915 = vmatpush1.msra.mxu0 %v5539_v18  ;;  %986 = vmatpush1.msra.mxu1 %v5541_v19  ;;  %7697 = vst [vmem:[#allocation49_spill] sm:$0xff] %v5566_v21  ;;  %v5570_v19 = vld [vmem:[#allocation10 + $0x10] sm:$0xff]  ;;  %v7699_v18 = vmov 0.0  }
  0xcc   : > { %4281 = vmatmul.mubr.msk.f32.gmra.mxu0 %vm599_vm0, %v577_v20  ;;  %4289 = vmatmul.mubr.msk.f32.gmra.mxu1 %vm599_vm0, %v577_v20  ;;  %7698 = vst [vmem:[#allocation50_spill] sm:$0xff] %v5570_v19  ;;  %v882_v20 = vld [vmem:[#allocation17] sm:$0xff] }
  0xcd   : > { %916 = vmatprep.subr.mxu0 %v5548_v30  ;;  %987 = vmatprep.subr.mxu1 %v5550_v39 }
  0xce   : > { %917 = vmatpush1.msra.mxu0 %v5554_v48  ;;  %988 = vmatpush1.msra.mxu1 %v5556_v57 }
  0xcf   : > { %918 = vmatprep.subr.mxu0 %v5560_v2  ;;  %989 = vmatprep.subr.mxu1 %v5562_v11 }
  0xd0   : > { %919 = vmatpush1.msra.mxu0 %v5566_v21  ;;  %952 = vmatprep.mubr.f32.mxu0 %v7699_v18 }
  0xd1   : > { %990 = vmatpush1.msra.mxu1 %v5570_v19  ;;  %1023 = vmatprep.mubr.f32.mxu1 %v7699_v18 }
  0xd2   : > { %953 = vmatmul.mubr.f32.vlgmr.msra.gmra.mxu0 %v882_v20  ;;  %1024 = vmatmul.mubr.f32.vlgmr.msra.gmra.mxu1 %v882_v20  ;;  %v7700_v20 = vld [vmem:[#allocation41_spill] sm:$0xff] }
  0xd3   : > { %1058 = vmatprep.subr.mxu0 %v5346_v22  ;;  %1129 = vmatprep.subr.mxu1 %v5348_v23 }
  0xd4   : > { %1059 = vmatpush1.msra.mxu0 %v5351_v24  ;;  %1130 = vmatpush1.msra.mxu1 %v5353_v25 }
  0xd5   : > { %1060 = vmatprep.subr.mxu0 %v5357_v26  ;;  %1131 = vmatprep.subr.mxu1 %v5359_v27 }
  0xd6   : > { %1061 = vmatpush1.msra.mxu0 %v5365_v28  ;;  %1132 = vmatpush1.msra.mxu1 %v5367_v29 }
  0xd7   : > { %1062 = vmatprep.subr.mxu0 %v5374_v31  ;;  %1133 = vmatprep.subr.mxu1 %v5376_v32 }
  0xd8   : > { %1063 = vmatpush1.msra.mxu0 %v5380_v33  ;;  %1134 = vmatpush1.msra.mxu1 %v5382_v34 }
  0xd9   : > { %1064 = vmatprep.subr.mxu0 %v5386_v35  ;;  %1135 = vmatprep.subr.mxu1 %v5388_v36 }
  0xda   : > { %1065 = vmatpush1.msra.mxu0 %v5394_v37  ;;  %1136 = vmatpush1.msra.mxu1 %v5396_v38 }
  0xdb   : > { %1066 = vmatprep.subr.mxu0 %v5403_v40  ;;  %1137 = vmatprep.subr.mxu1 %v5405_v41 }
  0xdc   : > { %1067 = vmatpush1.msra.mxu0 %v5409_v42  ;;  %1138 = vmatpush1.msra.mxu1 %v5411_v43 }
  0xdd   : > { %1068 = vmatprep.subr.mxu0 %v5415_v44  ;;  %1139 = vmatprep.subr.mxu1 %v5417_v45 }
  0xde   : > { %1069 = vmatpush1.msra.mxu0 %v5423_v46  ;;  %1140 = vmatpush1.msra.mxu1 %v5425_v47 }
  0xdf   : > { %1070 = vmatprep.subr.mxu0 %v5432_v49  ;;  %1141 = vmatprep.subr.mxu1 %v5434_v50 }
  0xe0   : > { %1071 = vmatpush1.msra.mxu0 %v5438_v51  ;;  %1142 = vmatpush1.msra.mxu1 %v5440_v52 }
  0xe1   : > { %1072 = vmatprep.subr.mxu0 %v5444_v53  ;;  %1143 = vmatprep.subr.mxu1 %v5446_v54 }
  0xe2   : > { %1073 = vmatpush1.msra.mxu0 %v5452_v55  ;;  %1144 = vmatpush1.msra.mxu1 %v5454_v56 }
  0xe3   : > { %1074 = vmatprep.subr.mxu0 %v5461_v58  ;;  %1145 = vmatprep.subr.mxu1 %v5463_v59 }
  0xe4   : > { %1075 = vmatpush1.msra.mxu0 %v5467_v60  ;;  %1146 = vmatpush1.msra.mxu1 %v5469_v61 }
  0xe5   : > { %1076 = vmatprep.subr.mxu0 %v5473_v62  ;;  %1147 = vmatprep.subr.mxu1 %v5475_v63 }
  0xe6   : > { %1077 = vmatpush1.msra.mxu0 %v5481_v0  ;;  %1148 = vmatpush1.msra.mxu1 %v5483_v1 }
  0xe7   : > { %1078 = vmatprep.subr.mxu0 %v5490_v3  ;;  %1149 = vmatprep.subr.mxu1 %v5492_v4 }
  0xe8   : > { %1079 = vmatpush1.msra.mxu0 %v5496_v5  ;;  %1150 = vmatpush1.msra.mxu1 %v5498_v6 }
  0xe9   : > { %1080 = vmatprep.subr.mxu0 %v5502_v7  ;;  %1151 = vmatprep.subr.mxu1 %v5504_v8  ;;  %v7701_v7 = vld [vmem:[#allocation42_spill] sm:$0xff] }
  0xea   : > { %1081 = vmatpush1.msra.mxu0 %v5510_v9  ;;  %1152 = vmatpush1.msra.mxu1 %v5512_v10 }
  0xeb   : > { %1082 = vmatprep.subr.mxu0 %v5519_v12  ;;  %1153 = vmatprep.subr.mxu1 %v5521_v13 }
  0xec   : > { %1083 = vmatpush1.msra.mxu0 %v5525_v14  ;;  %1154 = vmatpush1.msra.mxu1 %v5527_v15 }
  0xed   : > { %1084 = vmatprep.subr.mxu0 %v5531_v16  ;;  %1155 = vmatprep.subr.mxu1 %v5533_v17 }
  0xee   : > { %1085 = vmatpush1.msra.mxu0 %v7700_v20  ;;  %1156 = vmatpush1.msra.mxu1 %v7701_v7 }
  0xef   : > { %1086 = vmatprep.subr.mxu0 %v5548_v30  ;;  %1157 = vmatprep.subr.mxu1 %v5550_v39  ;;  %v579_v39 = vlaneseq  ;;  %v569_v30 = vld [vmem:[#allocation12] sm:$0xf] }
  0xf0   : > { %1087 = vmatpush1.msra.mxu0 %v5554_v48  ;;  %1158 = vmatpush1.msra.mxu1 %v5556_v57 }
  0xf1   : > { %1088 = vmatprep.subr.mxu0 %v5560_v2  ;;  %1159 = vmatprep.subr.mxu1 %v5562_v11  ;;  %v5646_v48 = vshrl.u32 %v579_v39, 7 }
  0xf2   : > { %1089 = vmatpush1.msra.mxu0 %v5566_v21  ;;  %1122 = vmatprep.mubr.f32.mxu0 %v7699_v18 }
  0xf3   : > { %1160 = vmatpush1.msra.mxu1 %v5570_v19  ;;  %1193 = vmatprep.mubr.f32.mxu1 %v7699_v18  ;;  %7702 = vst [vmem:[#allocation51_spill] sm:$0xff] %v5646_v48  ;;  %v7476_v11 = vsub.s32 0, %v5646_v48  ;;  %v7479_v21 = vsub.s32 2, %v5646_v48 }
  0xf4   : > { %1229 = vmatprep.subr.mxu0 %v5346_v22  ;;  %1300 = vmatprep.subr.mxu1 %v5348_v23  ;;  %v7486_v22 = vsub.s32 1, %v5646_v48  ;;  %v7487_v23 = vsub.s32 3, %v5646_v48 }
  0xf5   : > { %v582_v39 = vrot.slane %v569_v30, %v7476_v11  ;;  %v5664_v18 = vrot.slane %v569_v30, %v7479_v21 }
  0xf6   : > { %v586_v16 = vrot.slane %v569_v30, %v7486_v22  ;;  %v5670_v15 = vrot.slane %v569_v30, %v7487_v23 }
 0x162   : > { %v5648_v57 = vpop.f32.mrf.mxu0  ;;  %v5650_v2 = vpop.f32.mrf.mxu1 }
 0x164   : > { %v5654_v7 = vpop.f32.mrf.mxu0  ;;  %v5656_v19 = vpop.f32.mrf.mxu1 }
 0x168   : > { %v696_v20 = vpop.f32.mrf.mxu0  ;;  %v809_v17 = vpop.f32.mrf.mxu1 }
 0x169   : > { %v5672_v14 = vadd.f32 %v696_v20, %v582_v39  ;;  %v5675_v13 = vadd.f32 %v809_v17, %v5664_v18 }
 0x16a   : > { %v698_v12 = vpop.f32.mrf.mxu0  ;;  %v811_v11 = vpop.f32.mrf.mxu1 }
 0x16b   : > { %7703 = vst [vmem:[#allocation52_spill] sm:$0xff] %v5675_v13  ;;  %v5677_v10 = vadd.f32 %v698_v12, %v586_v16  ;;  %v5680_v21 = vadd.f32 %v811_v11, %v5670_v15 }
 0x16d   : > { %7704 = vst [vmem:[#allocation53_spill] sm:$0xff] %v5677_v10  ;;  %7705 = vst [vmem:[#allocation54_spill] sm:$0xff] %v5680_v21 }
 0x16e   : > { %v702_v9 = vpop.f32.mrf.mxu0  ;;  %v815_v8 = vpop.f32.mrf.mxu1 }
 0x16f   : > { %v5682_v6 = vadd.f32 %v702_v9, %v582_v39  ;;  %v5685_v22 = vadd.f32 %v815_v8, %v5664_v18 }
 0x170   : > { %v704_v30 = vpop.f32.mrf.mxu0  ;;  %v817_v20 = vpop.f32.mrf.mxu1 }
 0x171   : > { %7706 = vst [vmem:[#allocation55_spill] sm:$0xff] %v5682_v6  ;;  %7707 = vst [vmem:[#allocation56_spill] sm:$0xff] %v5685_v22  ;;  %v5687_v23 = vadd.f32 %v704_v30, %v586_v16  ;;  %v5690_v17 = vadd.f32 %v817_v20, %v5670_v15 }
 0x173   : > { %7708 = vst [vmem:[#allocation57_spill] sm:$0xff] %v5687_v23  ;;  %7709 = vst [vmem:[#allocation58_spill] sm:$0xff] %v5690_v17 }
 0x174   : > { %v708_v48 = vpop.f32.mrf.mxu0  ;;  %v821_v12 = vpop.f32.mrf.mxu1 }
 0x175   : > { %v5692_v13 = vadd.f32 %v708_v48, %v582_v39  ;;  %v5695_v11 = vadd.f32 %v821_v12, %v5664_v18 }
 0x176   : > { %v710_v21 = vpop.f32.mrf.mxu0  ;;  %v823_v9 = vpop.f32.mrf.mxu1 }
 0x177   : > { %7710 = vst [vmem:[#allocation59_spill] sm:$0xff] %v5692_v13  ;;  %7711 = vst [vmem:[#allocation60_spill] sm:$0xff] %v5695_v11  ;;  %v5697_v6 = vadd.f32 %v710_v21, %v586_v16  ;;  %v5700_v8 = vadd.f32 %v823_v9, %v5670_v15 }
 0x179   : > { %7712 = vst [vmem:[#allocation61_spill] sm:$0xff] %v5697_v6  ;;  %7713 = vst [vmem:[#allocation62_spill] sm:$0xff] %v5700_v8 }
 0x17a   : > { %v714_v22 = vpop.f32.mrf.mxu0  ;;  %v827_v30 = vpop.f32.mrf.mxu1 }
 0x17b   : > { %v5702_v23 = vadd.f32 %v714_v22, %v582_v39  ;;  %v5705_v20 = vadd.f32 %v827_v30, %v5664_v18 }
 0x17c   : > { %v716_v17 = vpop.f32.mrf.mxu0  ;;  %v829_v48 = vpop.f32.mrf.mxu1 }
 0x17d   : > { %7714 = vst [vmem:[#allocation63_spill] sm:$0xff] %v5702_v23  ;;  %7715 = vst [vmem:[#allocation64_spill] sm:$0xff] %v5705_v20  ;;  %v5707_v13 = vadd.f32 %v716_v17, %v586_v16  ;;  %v5710_v12 = vadd.f32 %v829_v48, %v5670_v15 }
 0x17f   : > { %7716 = vst [vmem:[#allocation65_spill] sm:$0xff] %v5707_v13  ;;  %7717 = vst [vmem:[#allocation66_spill] sm:$0xff] %v5710_v12 }
 0x180   : > { %v720_v11 = vpop.f32.mrf.mxu0  ;;  %v833_v21 = vpop.f32.mrf.mxu1 }
 0x181   : > { %v5712_v6 = vadd.f32 %v720_v11, %v582_v39  ;;  %v5715_v9 = vadd.f32 %v833_v21, %v5664_v18 }
 0x182   : > { %v722_v8 = vpop.f32.mrf.mxu0  ;;  %v835_v22 = vpop.f32.mrf.mxu1 }
 0x183   : > { %7718 = vst [vmem:[#allocation67_spill] sm:$0xff] %v5712_v6  ;;  %7719 = vst [vmem:[#allocation68_spill] sm:$0xff] %v5715_v9  ;;  %v5717_v23 = vadd.f32 %v722_v8, %v586_v16  ;;  %v5720_v30 = vadd.f32 %v835_v22, %v5670_v15 }
 0x185   : > { %7720 = vst [vmem:[#allocation69_spill] sm:$0xff] %v5717_v23  ;;  %7721 = vst [vmem:[#allocation70_spill] sm:$0xff] %v5720_v30 }
 0x186   : > { %v726_v20 = vpop.f32.mrf.mxu0  ;;  %v839_v17 = vpop.f32.mrf.mxu1 }
 0x187   : > { %v5722_v13 = vadd.f32 %v726_v20, %v582_v39  ;;  %v5725_v48 = vadd.f32 %v839_v17, %v5664_v18 }
 0x188   : > { %v728_v12 = vpop.f32.mrf.mxu0  ;;  %v841_v11 = vpop.f32.mrf.mxu1 }
 0x189   : > { %7722 = vst [vmem:[#allocation71_spill] sm:$0xff] %v5722_v13  ;;  %7723 = vst [vmem:[#allocation72_spill] sm:$0xff] %v5725_v48  ;;  %v5727_v6 = vadd.f32 %v728_v12, %v586_v16  ;;  %v5730_v21 = vadd.f32 %v841_v11, %v5670_v15  ;;  %v691_v12 = vadd.f32 %v5648_v57, %v582_v39 }
 0x18a   : > { %v693_v11 = vadd.f32 %v5654_v7, %v586_v16 }
 0x18b   : > { %7724 = vst [vmem:[#allocation73_spill] sm:$0xff] %v5727_v6  ;;  %7725 = vst [vmem:[#allocation74_spill] sm:$0xff] %v5730_v21 }
 0x18c   : > { %v732_v9 = vpop.f32.mrf.mxu0  ;;  %v845_v8 = vpop.f32.mrf.mxu1 }
 0x18d   : > { %v5732_v23 = vadd.f32 %v732_v9, %v582_v39  ;;  %v5735_v22 = vadd.f32 %v845_v8, %v5664_v18  ;;  %v804_v8 = vadd.f32 %v5650_v2, %v5664_v18 }
 0x18e   : > { %v734_v30 = vpop.f32.mrf.mxu0  ;;  %v847_v20 = vpop.f32.mrf.mxu1 }
 0x18f   : > { %7726 = vst [vmem:[#allocation75_spill] sm:$0xff] %v5732_v23  ;;  %7727 = vst [vmem:[#allocation76_spill] sm:$0xff] %v5735_v22  ;;  %v5737_v13 = vadd.f32 %v734_v30, %v586_v16  ;;  %v5740_v17 = vadd.f32 %v847_v20, %v5670_v15  ;;  %v806_v20 = vadd.f32 %v5656_v19, %v5670_v15 }
 0x191   : > { %7728 = vst [vmem:[#allocation77_spill] sm:$0xff] %v5737_v13  ;;  %7729 = vst [vmem:[#allocation78_spill] sm:$0xff] %v5740_v17  ;;  %v7750_v17 = vld [vmem:[#allocation49_spill] sm:$0xff] }
 0x192   : > { %v954_v48 = vpop.f32.mrf.mxu0  ;;  %v1025_v23 = vpop.f32.mrf.mxu1 }
 0x193   : > { %v1030_v21 = vadd.f32 %v954_v48, %v691_v12  ;;  %v1032_v30 = vadd.f32 %v1025_v23, %v804_v8  ;;  %v883_v12 = vld [vmem:[#allocation19] sm:$0xff] }
 0x194   : > { %v956_v6 = vpop.f32.mrf.mxu0  ;;  %v1027_v13 = vpop.f32.mrf.mxu1  ;;  %v7731_v8 = vld [vmem:[#allocation30_spill] sm:$0xff] }
 0x195   : > { %v1034_v10 = vmul.f32 0.5, %v1030_v21  ;;  %v1031_v9 = vadd.f32 %v956_v6, %v693_v11  ;;  %v1033_v57 = vadd.f32 %v1027_v13, %v806_v20  ;;  %v7733_v20 = vld [vmem:[#allocation32_spill] sm:$0xff] }
 0x197   : > { %4454 = vtanh.f32 %v1034_v10  ;;  %v1038_v22 = vmul.f32 0.5, %v1031_v9  ;;  %v1043_v39 = vmul.f32 0.5, %v1033_v57  ;;  %v7734_v57 = vld [vmem:[#allocation33_spill] sm:$0xff] }
 0x199   : > { %4456 = vtanh.f32 %v1038_v22 }
 0x19a   : > { %4458 = vtanh.f32 %v1032_v30  ;;  %v7732_v30 = vld [vmem:[#allocation31_spill] sm:$0xff] }
 0x19b   : > { %4460 = vtanh.f32 %v1043_v39  ;;  %v7735_v39 = vld [vmem:[#allocation34_spill] sm:$0xff] }
 0x1a4   : > { %v4455_v7 = vpop.eup %4454 }
 0x1a5   : > { %v1036_v16 = vmul.f32 0.5, %v4455_v7  ;;  %v7736_v7 = vld [vmem:[#allocation35_spill] sm:$0xff] }
 0x1a6   : > { %v4457_v48 = vpop.eup %4456 }
 0x1a7   : > { %v1037_v21 = vadd.f32 0.5, %v1036_v16  ;;  %v1040_v6 = vmul.f32 0.5, %v4457_v48  ;;  %v4459_v18 = vpop.eup %4458  ;;  %v7737_v16 = vld [vmem:[#allocation36_spill] sm:$0xff]  ;;  %v7738_v48 = vld [vmem:[#allocation37_spill] sm:$0xff] }
 0x1a8   : > { %v4461_v22 = vpop.eup %4460 }
 0x1a9   : > { %v1041_v11 = vadd.f32 0.5, %v1040_v6  ;;  %v1048_v2 = vmul.f32 %v4459_v18, %v1037_v21  ;;  %v1045_v15 = vmul.f32 0.5, %v4461_v22  ;;  %v7739_v21 = vld [vmem:[#allocation38_spill] sm:$0xff]  ;;  %v7740_v6 = vld [vmem:[#allocation39_spill] sm:$0xff]  ;;  %v7746_v22 = vld [vmem:[#allocation45_spill] sm:$0xff] }
 0x1aa   : > { %v7743_v18 = vld [vmem:[#allocation42_spill] sm:$0xff] }
 0x1ab   : > { %v1047_v10 = vmul.f32 %v1041_v11, %v883_v12  ;;  %v1046_v19 = vadd.f32 0.5, %v1045_v15  ;;  %v7741_v12 = vld [vmem:[#allocation40_spill] sm:$0xff]  ;;  %v7742_v11 = vld [vmem:[#allocation41_spill] sm:$0xff]  ;;  %v7747_v15 = vld [vmem:[#allocation46_spill] sm:$0xff] }
 0x1ad   : > { %v5748_v23 = vadd.f32 %v1048_v2, %v1047_v10  ;;  %v7744_v10 = vld [vmem:[#allocation43_spill] sm:$0xff]  ;;  %v7745_v2 = vld [vmem:[#allocation44_spill] sm:$0xff] }
 0x1af   : > { %4462 = vtanh.f32 %v5748_v23 }
 0x1bc   : > { %v4463_v13 = vpop.eup %4462 }
 0x1bd   : > { %v5751_v9 = vmul.f32 %v4463_v13, %v1046_v19  ;;  %v7748_v19 = vld [vmem:[#allocation47_spill] sm:$0xff]  ;;  %v7749_v13 = vld [vmem:[#allocation48_spill] sm:$0xff] }
 0x1bf   : > { %7730 = vst [vmem:[#allocation79_spill] sm:$0xff] %v5751_v9  ;;  %1123 = vmatmul.mubr.f32.vlgmr.msra.gmra.mxu0 %v5751_v9  ;;  %1194 = vmatmul.mubr.f32.vlgmr.msra.gmra.mxu1 %v5751_v9  ;;  %v7751_v9 = vmov 0.0  }
 0x1c0   : > { %1230 = vmatpush1.msra.mxu0 %v5351_v24  ;;  %1301 = vmatpush1.msra.mxu1 %v5353_v25 }
 0x1c1   : > { %1231 = vmatprep.subr.mxu0 %v5357_v26  ;;  %1302 = vmatprep.subr.mxu1 %v5359_v27 }
 0x1c2   : > { %1232 = vmatpush1.msra.mxu0 %v5365_v28  ;;  %1303 = vmatpush1.msra.mxu1 %v5367_v29 }
 0x1c3   : > { %1233 = vmatprep.subr.mxu0 %v5374_v31  ;;  %1304 = vmatprep.subr.mxu1 %v5376_v32 }
 0x1c4   : > { %1234 = vmatpush1.msra.mxu0 %v5380_v33  ;;  %1305 = vmatpush1.msra.mxu1 %v5382_v34 }
 0x1c5   : > { %1235 = vmatprep.subr.mxu0 %v5386_v35  ;;  %1306 = vmatprep.subr.mxu1 %v5388_v36 }
 0x1c6   : > { %1236 = vmatpush1.msra.mxu0 %v5394_v37  ;;  %1307 = vmatpush1.msra.mxu1 %v5396_v38 }
 0x1c7   : > { %1237 = vmatprep.subr.mxu0 %v5403_v40  ;;  %1308 = vmatprep.subr.mxu1 %v5405_v41 }
 0x1c8   : > { %1238 = vmatpush1.msra.mxu0 %v5409_v42  ;;  %1309 = vmatpush1.msra.mxu1 %v5411_v43 }
 0x1c9   : > { %1239 = vmatprep.subr.mxu0 %v5415_v44  ;;  %1310 = vmatprep.subr.mxu1 %v5417_v45 }
 0x1ca   : > { %1240 = vmatpush1.msra.mxu0 %v5423_v46  ;;  %1311 = vmatpush1.msra.mxu1 %v5425_v47 }
 0x1cb   : > { %1241 = vmatprep.subr.mxu0 %v5432_v49  ;;  %1312 = vmatprep.subr.mxu1 %v5434_v50 }
 0x1cc   : > { %1242 = vmatpush1.msra.mxu0 %v5438_v51  ;;  %1313 = vmatpush1.msra.mxu1 %v5440_v52 }
 0x1cd   : > { %1243 = vmatprep.subr.mxu0 %v5444_v53  ;;  %1314 = vmatprep.subr.mxu1 %v5446_v54 }
 0x1ce   : > { %1244 = vmatpush1.msra.mxu0 %v5452_v55  ;;  %1315 = vmatpush1.msra.mxu1 %v5454_v56 }
 0x1cf   : > { %1245 = vmatprep.subr.mxu0 %v5461_v58  ;;  %1316 = vmatprep.subr.mxu1 %v5463_v59 }
 0x1d0   : > { %1246 = vmatpush1.msra.mxu0 %v5467_v60  ;;  %1317 = vmatpush1.msra.mxu1 %v5469_v61 }
 0x1d1   : > { %1247 = vmatprep.subr.mxu0 %v5473_v62  ;;  %1318 = vmatprep.subr.mxu1 %v5475_v63 }
 0x1d2   : > { %1248 = vmatpush1.msra.mxu0 %v5481_v0  ;;  %1319 = vmatpush1.msra.mxu1 %v5483_v1 }
 0x1d3   : > { %1249 = vmatprep.subr.mxu0 %v5490_v3  ;;  %1320 = vmatprep.subr.mxu1 %v5492_v4 }
 0x1d4   : > { %1250 = vmatpush1.msra.mxu0 %v5496_v5  ;;  %1321 = vmatpush1.msra.mxu1 %v7731_v8 }
 0x1d5   : > { %1251 = vmatprep.subr.mxu0 %v7732_v30  ;;  %1322 = vmatprep.subr.mxu1 %v7733_v20 }
 0x1d6   : > { %1252 = vmatpush1.msra.mxu0 %v7734_v57  ;;  %1323 = vmatpush1.msra.mxu1 %v7735_v39 }
 0x1d7   : > { %1253 = vmatprep.subr.mxu0 %v7736_v7  ;;  %1324 = vmatprep.subr.mxu1 %v7737_v16 }
 0x1d8   : > { %1254 = vmatpush1.msra.mxu0 %v7738_v48  ;;  %1325 = vmatpush1.msra.mxu1 %v7739_v21 }
 0x1d9   : > { %1255 = vmatprep.subr.mxu0 %v7740_v6  ;;  %1326 = vmatprep.subr.mxu1 %v7741_v12  ;;  %v7752_v12 = vld [vmem:[#allocation50_spill] sm:$0xff]  ;;  %v7755_v6 = vld [vmem:[#allocation53_spill] sm:$0xff] }
 0x1da   : > { %1256 = vmatpush1.msra.mxu0 %v7742_v11  ;;  %1327 = vmatpush1.msra.mxu1 %v7743_v18  ;;  %v7753_v18 = vld [vmem:[#allocation28_spill] sm:$0xff] }
 0x1db   : > { %1257 = vmatprep.subr.mxu0 %v7744_v10  ;;  %1328 = vmatprep.subr.mxu1 %v7745_v2  ;;  %v7754_v10 = vld [vmem:[#allocation29_spill] sm:$0xff] }
 0x1dc   : > { %1258 = vmatpush1.msra.mxu0 %v7746_v22  ;;  %1329 = vmatpush1.msra.mxu1 %v7747_v15 }
 0x1dd   : > { %1259 = vmatprep.subr.mxu0 %v7748_v19  ;;  %1330 = vmatprep.subr.mxu1 %v7749_v13 }
 0x1de   : > { %1260 = vmatpush1.msra.mxu0 %v7750_v17  ;;  %1293 = vmatprep.mubr.f32.mxu0 %v7751_v9  ;;  %v7756_v17 = vld [vmem:[#allocation52_spill] sm:$0xff] }
 0x1df   : > { %1331 = vmatpush1.msra.mxu1 %v7752_v12  ;;  %1364 = vmatprep.mubr.f32.mxu1 %v7751_v9  ;;  %v7757_v9 = vld [vmem:[#allocation54_spill] sm:$0xff] }
 0x1e0   : > { %1400 = vmatprep.subr.mxu0 %v7753_v18  ;;  %1471 = vmatprep.subr.mxu1 %v7754_v10 }
 0x27f   : > { %v1124_v2 = vpop.f32.mrf.mxu0  ;;  %v1195_v15 = vpop.f32.mrf.mxu1 }
 0x280   : > { %v1200_v22 = vadd.f32 %v1124_v2, %v5672_v14  ;;  %v1202_v21 = vadd.f32 %v1195_v15, %v7756_v17 }
 0x281   : > { %v1126_v11 = vpop.f32.mrf.mxu0  ;;  %v1197_v12 = vpop.f32.mrf.mxu1 }
 0x282   : > { %v1204_v19 = vmul.f32 0.5, %v1200_v22  ;;  %v1201_v13 = vadd.f32 %v1126_v11, %v7755_v6  ;;  %v1203_v16 = vadd.f32 %v1197_v12, %v7757_v9 }
 0x284   : > { %4464 = vtanh.f32 %v1204_v19  ;;  %v1208_v48 = vmul.f32 0.5, %v1201_v13  ;;  %v1213_v18 = vmul.f32 0.5, %v1203_v16  ;;  %v7782_v13 = vld [vmem:[#allocation57_spill] sm:$0xff] }
 0x286   : > { %4466 = vtanh.f32 %v1208_v48 }
 0x287   : > { %4468 = vtanh.f32 %v1202_v21 }
 0x288   : > { %4470 = vtanh.f32 %v1213_v18 }
 0x291   : > { %v4465_v7 = vpop.eup %4464 }
 0x292   : > { %v1206_v10 = vmul.f32 0.5, %v4465_v7 }
 0x293   : > { %v4467_v39 = vpop.eup %4466 }
 0x294   : > { %v1207_v57 = vadd.f32 0.5, %v1206_v10  ;;  %v1210_v14 = vmul.f32 0.5, %v4467_v39  ;;  %v4469_v2 = vpop.eup %4468  ;;  %v7781_v39 = vld [vmem:[#allocation55_spill] sm:$0xff]  ;;  %v7783_v10 = vld [vmem:[#allocation56_spill] sm:$0xff] }
 0x295   : > { %v4471_v17 = vpop.eup %4470 }
 0x296   : > { %v1211_v22 = vadd.f32 0.5, %v1210_v14  ;;  %v1218_v20 = vmul.f32 %v4469_v2, %v1207_v57  ;;  %v1215_v48 = vmul.f32 0.5, %v4471_v17 }
 0x298   : > { %v1217_v6 = vmul.f32 %v1211_v22, %v5748_v23  ;;  %v1216_v21 = vadd.f32 0.5, %v1215_v48  ;;  %v5897_v23 = vld [vmem:[#allocation10 + $0x1e8] sm:$0xff] }
 0x299   : > { %7779 = vst [vmem:[#allocation31_spill] sm:$0xff] %v5897_v23 }
 0x29a   : > { %v5826_v11 = vadd.f32 %v1218_v20, %v1217_v6  ;;  %v5900_v20 = vld [vmem:[#allocation10 + $0x1f8] sm:$0xff] }
 0x29b   : > { %7780 = vst [vmem:[#allocation28_spill] sm:$0xff] %v5900_v20  ;;  %v7784_v6 = vld [vmem:[#allocation58_spill] sm:$0xff] }
 0x29c   : > { %4472 = vtanh.f32 %v5826_v11 }
 0x2a9   : > { %v4473_v9 = vpop.eup %4472 }
 0x2aa   : > { %v5829_v16 = vmul.f32 %v4473_v9, %v1216_v21 }
 0x2ac   : > { %7758 = vst [vmem:[#allocation30_spill] sm:$0xff] %v5829_v16  ;;  %1294 = vmatmul.mubr.f32.vlgmr.msra.gmra.mxu0 %v5829_v16  ;;  %1365 = vmatmul.mubr.f32.vlgmr.msra.gmra.mxu1 %v5829_v16 }
 0x2ad   : > { %1401 = vmatpush1.msra.mxu0 %v5351_v24  ;;  %1472 = vmatpush1.msra.mxu1 %v5353_v25  ;;  %v7759_v24 = vld [vmem:[#allocation32_spill] sm:$0xff]  ;;  %v7760_v25 = vld [vmem:[#allocation33_spill] sm:$0xff] }
 0x2ae   : > { %1402 = vmatprep.subr.mxu0 %v5357_v26  ;;  %1473 = vmatprep.subr.mxu1 %v5359_v27  ;;  %v7761_v26 = vld [vmem:[#allocation34_spill] sm:$0xff]  ;;  %v7762_v27 = vld [vmem:[#allocation35_spill] sm:$0xff] }
 0x2af   : > { %1403 = vmatpush1.msra.mxu0 %v5365_v28  ;;  %1474 = vmatpush1.msra.mxu1 %v5367_v29  ;;  %v7763_v28 = vld [vmem:[#allocation36_spill] sm:$0xff]  ;;  %v7764_v29 = vld [vmem:[#allocation37_spill] sm:$0xff] }
 0x2b0   : > { %1404 = vmatprep.subr.mxu0 %v5374_v31  ;;  %1475 = vmatprep.subr.mxu1 %v5376_v32  ;;  %v7765_v31 = vld [vmem:[#allocation38_spill] sm:$0xff]  ;;  %v7766_v32 = vld [vmem:[#allocation39_spill] sm:$0xff] }
 0x2b1   : > { %1405 = vmatpush1.msra.mxu0 %v5380_v33  ;;  %1476 = vmatpush1.msra.mxu1 %v5382_v34  ;;  %v7767_v33 = vld [vmem:[#allocation40_spill] sm:$0xff]  ;;  %v7768_v34 = vld [vmem:[#allocation41_spill] sm:$0xff] }
 0x2b2   : > { %1406 = vmatprep.subr.mxu0 %v5386_v35  ;;  %1477 = vmatprep.subr.mxu1 %v5388_v36  ;;  %v7769_v35 = vld [vmem:[#allocation42_spill] sm:$0xff]  ;;  %v7770_v36 = vld [vmem:[#allocation43_spill] sm:$0xff] }
 0x2b3   : > { %1407 = vmatpush1.msra.mxu0 %v5394_v37  ;;  %1478 = vmatpush1.msra.mxu1 %v5396_v38  ;;  %v7771_v37 = vld [vmem:[#allocation44_spill] sm:$0xff]  ;;  %v7772_v38 = vld [vmem:[#allocation45_spill] sm:$0xff] }
 0x2b4   : > { %1408 = vmatprep.subr.mxu0 %v5403_v40  ;;  %1479 = vmatprep.subr.mxu1 %v5405_v41  ;;  %v7773_v40 = vld [vmem:[#allocation46_spill] sm:$0xff]  ;;  %v7774_v41 = vld [vmem:[#allocation47_spill] sm:$0xff] }
 0x2b5   : > { %1409 = vmatpush1.msra.mxu0 %v5409_v42  ;;  %1480 = vmatpush1.msra.mxu1 %v5411_v43  ;;  %v7775_v42 = vld [vmem:[#allocation48_spill] sm:$0xff]  ;;  %v7776_v43 = vld [vmem:[#allocation49_spill] sm:$0xff] }
 0x2b6   : > { %1410 = vmatprep.subr.mxu0 %v5415_v44  ;;  %1481 = vmatprep.subr.mxu1 %v5417_v45  ;;  %v7777_v44 = vmov 0.0   ;;  %v7778_v45 = vld [vmem:[#allocation50_spill] sm:$0xff] }
 0x2b7   : > { %1411 = vmatpush1.msra.mxu0 %v5423_v46  ;;  %1482 = vmatpush1.msra.mxu1 %v5425_v47 }
 0x2b8   : > { %1412 = vmatprep.subr.mxu0 %v5432_v49  ;;  %1483 = vmatprep.subr.mxu1 %v5434_v50 }
 0x2b9   : > { %1413 = vmatpush1.msra.mxu0 %v5438_v51  ;;  %1484 = vmatpush1.msra.mxu1 %v5440_v52 }
 0x2ba   : > { %1414 = vmatprep.subr.mxu0 %v5444_v53  ;;  %1485 = vmatprep.subr.mxu1 %v5446_v54 }
 0x2bb   : > { %1415 = vmatpush1.msra.mxu0 %v5452_v55  ;;  %1486 = vmatpush1.msra.mxu1 %v5454_v56 }
 0x2bc   : > { %1416 = vmatprep.subr.mxu0 %v5461_v58  ;;  %1487 = vmatprep.subr.mxu1 %v5463_v59 }
 0x2bd   : > { %1417 = vmatpush1.msra.mxu0 %v5467_v60  ;;  %1488 = vmatpush1.msra.mxu1 %v5469_v61 }
 0x2be   : > { %1418 = vmatprep.subr.mxu0 %v5473_v62  ;;  %1489 = vmatprep.subr.mxu1 %v5475_v63 }
 0x2bf   : > { %1419 = vmatpush1.msra.mxu0 %v5481_v0  ;;  %1490 = vmatpush1.msra.mxu1 %v5483_v1 }
 0x2c0   : > { %1420 = vmatprep.subr.mxu0 %v5490_v3  ;;  %1491 = vmatprep.subr.mxu1 %v5492_v4 }
 0x2c1   : > { %1421 = vmatpush1.msra.mxu0 %v5496_v5  ;;  %1492 = vmatpush1.msra.mxu1 %v7731_v8 }
 0x2c2   : > { %1422 = vmatprep.subr.mxu0 %v7732_v30  ;;  %1493 = vmatprep.subr.mxu1 %v7759_v24 }
 0x2c3   : > { %1423 = vmatpush1.msra.mxu0 %v7760_v25  ;;  %1494 = vmatpush1.msra.mxu1 %v7761_v26 }
 0x2c4   : > { %1424 = vmatprep.subr.mxu0 %v7762_v27  ;;  %1495 = vmatprep.subr.mxu1 %v7763_v28 }
 0x2c5   : > { %1425 = vmatpush1.msra.mxu0 %v7764_v29  ;;  %1496 = vmatpush1.msra.mxu1 %v7765_v31 }
 0x2c6   : > { %1426 = vmatprep.subr.mxu0 %v7766_v32  ;;  %1497 = vmatprep.subr.mxu1 %v7767_v33 }
 0x2c7   : > { %1427 = vmatpush1.msra.mxu0 %v7768_v34  ;;  %1498 = vmatpush1.msra.mxu1 %v7769_v35 }
 0x2c8   : > { %1428 = vmatprep.subr.mxu0 %v7770_v36  ;;  %1499 = vmatprep.subr.mxu1 %v7771_v37 }
 0x2c9   : > { %1429 = vmatpush1.msra.mxu0 %v7772_v38  ;;  %1500 = vmatpush1.msra.mxu1 %v7773_v40 }
 0x2ca   : > { %1430 = vmatprep.subr.mxu0 %v7774_v41  ;;  %1501 = vmatprep.subr.mxu1 %v7775_v42 }
 0x2cb   : > { %1431 = vmatpush1.msra.mxu0 %v7776_v43  ;;  %1464 = vmatprep.mubr.f32.mxu0 %v7777_v44 }
 0x2cc   : > { %1502 = vmatpush1.msra.mxu1 %v7778_v45  ;;  %1535 = vmatprep.mubr.f32.mxu1 %v7777_v44 }
 0x2cd   : > { %1571 = vmatprep.subr.mxu0 %v5897_v23  ;;  %1642 = vmatprep.subr.mxu1 %v5900_v20 }
 0x36c   : > { %v1295_v57 = vpop.f32.mrf.mxu0  ;;  %v1366_v12 = vpop.f32.mrf.mxu1 }
 0x36d   : > { %v1371_v7 = vadd.f32 %v1295_v57, %v7781_v39  ;;  %v1373_v14 = vadd.f32 %v1366_v12, %v7783_v10 }
 0x36e   : > { %v1297_v15 = vpop.f32.mrf.mxu0  ;;  %v1368_v22 = vpop.f32.mrf.mxu1 }
 0x36f   : > { %v1375_v19 = vmul.f32 0.5, %v1371_v7  ;;  %v1372_v18 = vadd.f32 %v1297_v15, %v7782_v13  ;;  %v1374_v17 = vadd.f32 %v1368_v22, %v7784_v6  ;;  %v5930_v22 = vld [vmem:[#allocation10 + $0x1d0] sm:$0xff]  ;;  %v5933_v6 = vld [vmem:[#allocation10 + $0x1a8] sm:$0xff] }
 0x371   : > { %4474 = vtanh.f32 %v1375_v19  ;;  %v1379_v2 = vmul.f32 0.5, %v1372_v18  ;;  %v1384_v48 = vmul.f32 0.5, %v1374_v17  ;;  %v5936_v17 = vld [vmem:[#allocation10 + $0x1b8] sm:$0xff] }
 0x373   : > { %4476 = vtanh.f32 %v1379_v2  ;;  %v5927_v2 = vld [vmem:[#allocation10 + $0x1c0] sm:$0xff] }
 0x374   : > { %4478 = vtanh.f32 %v1373_v14 }
 0x375   : > { %4480 = vtanh.f32 %v1384_v48  ;;  %v5939_v48 = vld [vmem:[#allocation10 + $0x1a0] sm:$0xff] }
 0x37e   : > { %v4475_v21 = vpop.eup %4474 }
 0x37f   : > { %v1377_v9 = vmul.f32 0.5, %v4475_v21  ;;  %v5942_v21 = vld [vmem:[#allocation10 + $0x1b0] sm:$0xff] }
 0x380   : > { %v4477_v16 = vpop.eup %4476 }
 0x381   : > { %v1378_v20 = vadd.f32 0.5, %v1377_v9  ;;  %v1381_v57 = vmul.f32 0.5, %v4477_v16  ;;  %v4479_v39 = vpop.eup %4478  ;;  %v5915_v16 = vld [vmem:[#allocation10 + $0x1e0] sm:$0xff]  ;;  %v5945_v9 = vld [vmem:[#allocation10 + $0x188] sm:$0xff] }
 0x382   : > { %v4481_v12 = vpop.eup %4480 }
 0x383   : > { %v1382_v7 = vadd.f32 0.5, %v1381_v57  ;;  %v1389_v23 = vmul.f32 %v4479_v39, %v1378_v20  ;;  %v1386_v13 = vmul.f32 0.5, %v4481_v12  ;;  %v5918_v20 = vld [vmem:[#allocation10 + $0x1f0] sm:$0xff]  ;;  %v5948_v57 = vld [vmem:[#allocation10 + $0x198] sm:$0xff]  ;;  %v5951_v39 = vld [vmem:[#allocation10 + $0x180] sm:$0xff] }
 0x384   : > { %v5960_v12 = vld [vmem:[#allocation10 + $0x178] sm:$0xff] }
 0x385   : > { %v1388_v15 = vmul.f32 %v1382_v7, %v5826_v11  ;;  %v1387_v18 = vadd.f32 0.5, %v1386_v13  ;;  %v5921_v11 = vld [vmem:[#allocation10 + $0x1c8] sm:$0xff]  ;;  %v5954_v7 = vld [vmem:[#allocation10 + $0x190] sm:$0xff]  ;;  %v5963_v13 = vld [vmem:[#allocation10 + $0x160] sm:$0xff] }
 0x387   : > { %v5908_v19 = vadd.f32 %v1389_v23, %v1388_v15  ;;  %v5924_v23 = vld [vmem:[#allocation10 + $0x1d8] sm:$0xff]  ;;  %v5957_v15 = vld [vmem:[#allocation10 + $0x168] sm:$0xff] }
 0x389   : > { %4482 = vtanh.f32 %v5908_v19 }
 0x396   : > { %v4483_v10 = vpop.eup %4482 }
 0x397   : > { %v5911_v14 = vmul.f32 %v4483_v10, %v1387_v18  ;;  %v5966_v18 = vld [vmem:[#allocation10 + $0x170] sm:$0xff]  ;;  %v5969_v10 = vld [vmem:[#allocation10 + $0x148] sm:$0xff] }
 0x399   : > { %7785 = vst [vmem:[#allocation29_spill] sm:$0xff] %v5911_v14  ;;  %1465 = vmatmul.mubr.f32.vlgmr.msra.gmra.mxu0 %v5911_v14  ;;  %1536 = vmatmul.mubr.f32.vlgmr.msra.gmra.mxu1 %v5911_v14  ;;  %v5972_v14 = vld [vmem:[#allocation10 + $0x158] sm:$0xff] }
 0x39a   : > { %1572 = vmatpush1.msra.mxu0 %v5915_v16  ;;  %1643 = vmatpush1.msra.mxu1 %v5918_v20 }
 0x39b   : > { %1573 = vmatprep.subr.mxu0 %v5921_v11  ;;  %1644 = vmatprep.subr.mxu1 %v5924_v23 }
 0x39c   : > { %1574 = vmatpush1.msra.mxu0 %v5927_v2  ;;  %1645 = vmatpush1.msra.mxu1 %v5930_v22 }
 0x39d   : > { %1575 = vmatprep.subr.mxu0 %v5933_v6  ;;  %1646 = vmatprep.subr.mxu1 %v5936_v17 }
 0x39e   : > { %1576 = vmatpush1.msra.mxu0 %v5939_v48  ;;  %1647 = vmatpush1.msra.mxu1 %v5942_v21 }
 0x39f   : > { %1577 = vmatprep.subr.mxu0 %v5945_v9  ;;  %1648 = vmatprep.subr.mxu1 %v5948_v57 }
 0x3a0   : > { %1578 = vmatpush1.msra.mxu0 %v5951_v39  ;;  %1649 = vmatpush1.msra.mxu1 %v5954_v7 }
 0x3a1   : > { %1579 = vmatprep.subr.mxu0 %v5957_v15  ;;  %1650 = vmatprep.subr.mxu1 %v5960_v12 }
 0x3a2   : > { %1580 = vmatpush1.msra.mxu0 %v5963_v13  ;;  %1651 = vmatpush1.msra.mxu1 %v5966_v18 }
 0x3a3   : > { %1581 = vmatprep.subr.mxu0 %v5969_v10  ;;  %1652 = vmatprep.subr.mxu1 %v5972_v14 }
 0x3a4   : > { %1582 = vmatpush1.msra.mxu0 %v5423_v46  ;;  %1653 = vmatpush1.msra.mxu1 %v5425_v47  ;;  %v7786_v46 = vld [vmem:[#allocation31_spill] sm:$0xff]  ;;  %v7787_v47 = vld [vmem:[#allocation28_spill] sm:$0xff] }
 0x3a5   : > { %1583 = vmatprep.subr.mxu0 %v5432_v49  ;;  %1654 = vmatprep.subr.mxu1 %v5434_v50  ;;  %v7788_v50 = vld [vmem:[#allocation59_spill] sm:$0xff] }
 0x3a6   : > { %1584 = vmatpush1.msra.mxu0 %v5438_v51  ;;  %1655 = vmatpush1.msra.mxu1 %v5440_v52 }
 0x3a7   : > { %1585 = vmatprep.subr.mxu0 %v5444_v53  ;;  %1656 = vmatprep.subr.mxu1 %v5446_v54 }
 0x3a8   : > { %1586 = vmatpush1.msra.mxu0 %v5452_v55  ;;  %1657 = vmatpush1.msra.mxu1 %v5454_v56  ;;  %v7789_v55 = vld [vmem:[#allocation61_spill] sm:$0xff] }
 0x3a9   : > { %1587 = vmatprep.subr.mxu0 %v5461_v58  ;;  %1658 = vmatprep.subr.mxu1 %v5463_v59  ;;  %v7790_v58 = vld [vmem:[#allocation60_spill] sm:$0xff] }
 0x3aa   : > { %1588 = vmatpush1.msra.mxu0 %v5467_v60  ;;  %1659 = vmatpush1.msra.mxu1 %v5469_v61 }
 0x3ab   : > { %1589 = vmatprep.subr.mxu0 %v5473_v62  ;;  %1660 = vmatprep.subr.mxu1 %v5475_v63  ;;  %v7791_v62 = vld [vmem:[#allocation62_spill] sm:$0xff] }
 0x3ac   : > { %1590 = vmatpush1.msra.mxu0 %v5481_v0  ;;  %1661 = vmatpush1.msra.mxu1 %v5483_v1 }
 0x3ad   : > { %1591 = vmatprep.subr.mxu0 %v5490_v3  ;;  %1662 = vmatprep.subr.mxu1 %v5492_v4 }
 0x3ae   : > { %1592 = vmatpush1.msra.mxu0 %v5496_v5  ;;  %1663 = vmatpush1.msra.mxu1 %v7731_v8 }
 0x3af   : > { %1593 = vmatprep.subr.mxu0 %v7732_v30  ;;  %1664 = vmatprep.subr.mxu1 %v7759_v24 }
 0x3b0   : > { %1594 = vmatpush1.msra.mxu0 %v7760_v25  ;;  %1665 = vmatpush1.msra.mxu1 %v7761_v26 }
 0x3b1   : > { %1595 = vmatprep.subr.mxu0 %v7762_v27  ;;  %1666 = vmatprep.subr.mxu1 %v7763_v28 }
 0x3b2   : > { %1596 = vmatpush1.msra.mxu0 %v7764_v29  ;;  %1667 = vmatpush1.msra.mxu1 %v7765_v31 }
 0x3b3   : > { %1597 = vmatprep.subr.mxu0 %v7766_v32  ;;  %1668 = vmatprep.subr.mxu1 %v7767_v33 }
 0x3b4   : > { %1598 = vmatpush1.msra.mxu0 %v7768_v34  ;;  %1669 = vmatpush1.msra.mxu1 %v7769_v35  ;;  %v6053_v34 = vld [vmem:[#allocation10 + $0x140] sm:$0xff]  ;;  %v6056_v35 = vld [vmem:[#allocation10 + $0x150] sm:$0xff] }
 0x3b5   : > { %1599 = vmatprep.subr.mxu0 %v7770_v36  ;;  %1670 = vmatprep.subr.mxu1 %v7771_v37  ;;  %v6059_v36 = vld [vmem:[#allocation10 + $0x128] sm:$0xff]  ;;  %v6062_v37 = vld [vmem:[#allocation10 + $0x138] sm:$0xff] }
 0x3b6   : > { %1600 = vmatpush1.msra.mxu0 %v7772_v38  ;;  %1671 = vmatpush1.msra.mxu1 %v7773_v40  ;;  %v6065_v38 = vld [vmem:[#allocation10 + $0x120] sm:$0xff]  ;;  %v6068_v40 = vld [vmem:[#allocation10 + $0x130] sm:$0xff] }
 0x3b7   : > { %1601 = vmatprep.subr.mxu0 %v7774_v41  ;;  %1672 = vmatprep.subr.mxu1 %v7775_v42  ;;  %v6071_v41 = vld [vmem:[#allocation10 + $0x108] sm:$0xff]  ;;  %v6074_v42 = vld [vmem:[#allocation10 + $0x118] sm:$0xff] }
 0x3b8   : > { %1602 = vmatpush1.msra.mxu0 %v7776_v43  ;;  %1635 = vmatprep.mubr.f32.mxu0 %v7777_v44  ;;  %v6077_v43 = vld [vmem:[#allocation10 + $0x100] sm:$0xff] }
 0x3b9   : > { %1673 = vmatpush1.msra.mxu1 %v7778_v45  ;;  %1706 = vmatprep.mubr.f32.mxu1 %v7777_v44  ;;  %v6080_v45 = vld [vmem:[#allocation10 + $0x110] sm:$0xff] }
 0x3ba   : > { %1742 = vmatprep.subr.mxu0 %v7786_v46  ;;  %1813 = vmatprep.subr.mxu1 %v7787_v47 }
 0x459   : > { %v1466_v49 = vpop.f32.mrf.mxu0  ;;  %v1537_v52 = vpop.f32.mrf.mxu1 }
 0x45a   : > { %v1542_v51 = vadd.f32 %v1466_v49, %v7788_v50  ;;  %v1544_v59 = vadd.f32 %v1537_v52, %v7790_v58  ;;  %v6086_v49 = vld [vmem:[#allocation10 + $0xf8] sm:$0xff]  ;;  %v6089_v50 = vld [vmem:[#allocation10 + $0xe0] sm:$0xff]  ;;  %v6095_v52 = vld [vmem:[#allocation10 + $0xc8] sm:$0xff] }
 0x45b   : > { %v1468_v53 = vpop.f32.mrf.mxu0  ;;  %v1539_v61 = vpop.f32.mrf.mxu1  ;;  %v6110_v58 = vld [vmem:[#allocation10 + $0xb8] sm:$0xff] }
 0x45c   : > { %v1546_v54 = vmul.f32 0.5, %v1542_v51  ;;  %v1543_v56 = vadd.f32 %v1468_v53, %v7789_v55  ;;  %v1545_v63 = vadd.f32 %v1539_v61, %v7791_v62  ;;  %v6092_v51 = vld [vmem:[#allocation10 + $0xf0] sm:$0xff]  ;;  %v6098_v53 = vld [vmem:[#allocation10 + $0xd8] sm:$0xff]  ;;  %v6119_v61 = vld [vmem:[#allocation10 + $0x88] sm:$0xff] }
 0x45d   : > { %v6104_v55 = vld [vmem:[#allocation10 + $0xd0] sm:$0xff]  ;;  %v6122_v62 = vld [vmem:[#allocation10 + $0x98] sm:$0xff] }
 0x45e   : > { %4484 = vtanh.f32 %v1546_v54  ;;  %v1550_v60 = vmul.f32 0.5, %v1543_v56  ;;  %v1555_v0 = vmul.f32 0.5, %v1545_v63  ;;  %v6101_v54 = vld [vmem:[#allocation10 + $0xc0] sm:$0xff]  ;;  %v6107_v56 = vld [vmem:[#allocation10 + $0xa8] sm:$0xff]  ;;  %7793 = vst [vmem:[#allocation52_spill] sm:$0xff] %v6122_v62 }
 0x45f   : > { %v6125_v63 = vld [vmem:[#allocation10 + $0x80] sm:$0xff] }
 0x460   : > { %4486 = vtanh.f32 %v1550_v60  ;;  %v6116_v60 = vld [vmem:[#allocation10 + $0xb0] sm:$0xff]  ;;  %7794 = vst [vmem:[#allocation54_spill] sm:$0xff] %v6125_v63 }
 0x461   : > { %4488 = vtanh.f32 %v1544_v59  ;;  %v6113_v59 = vld [vmem:[#allocation10 + $0xa0] sm:$0xff] }
 0x462   : > { %4490 = vtanh.f32 %v1555_v0  ;;  %v6128_v0 = vld [vmem:[#allocation10 + $0x90] sm:$0xff] }
 0x463   : > { %7795 = vst [vmem:[#allocation32_spill] sm:$0xff] %v6128_v0 }
 0x46b   : > { %v4485_v1 = vpop.eup %4484 }
 0x46c   : > { %v1548_v3 = vmul.f32 0.5, %v4485_v1  ;;  %v6131_v1 = vld [vmem:[#allocation10 + $0x68] sm:$0xff] }
 0x46d   : > { %v4487_v4 = vpop.eup %4486  ;;  %7796 = vst [vmem:[#allocation33_spill] sm:$0xff] %v6131_v1 }
 0x46e   : > { %v1549_v5 = vadd.f32 0.5, %v1548_v3  ;;  %v1552_v8 = vmul.f32 0.5, %v4487_v4  ;;  %v4489_v30 = vpop.eup %4488  ;;  %v6134_v3 = vld [vmem:[#allocation10 + $0x78] sm:$0xff]  ;;  %v6137_v4 = vld [vmem:[#allocation10 + $0x60] sm:$0xff] }
 0x46f   : > { %v4491_v28 = vpop.eup %4490  ;;  %7797 = vst [vmem:[#allocation34_spill] sm:$0xff] %v6134_v3  ;;  %7798 = vst [vmem:[#allocation35_spill] sm:$0xff] %v6137_v4 }
 0x470   : > { %v1553_v24 = vadd.f32 0.5, %v1552_v8  ;;  %v1560_v25 = vmul.f32 %v4489_v30, %v1549_v5  ;;  %v1557_v29 = vmul.f32 0.5, %v4491_v28  ;;  %v6140_v5 = vld [vmem:[#allocation10 + $0x70] sm:$0xff]  ;;  %v6143_v8 = vld [vmem:[#allocation10 + $0x48] sm:$0xff]  ;;  %v6146_v30 = vld [vmem:[#allocation10 + $0x58] sm:$0xff] }
 0x471   : > { %7799 = vst [vmem:[#allocation36_spill] sm:$0xff] %v6140_v5  ;;  %7800 = vst [vmem:[#allocation37_spill] sm:$0xff] %v6143_v8  ;;  %v6158_v28 = vld [vmem:[#allocation10 + $0x38] sm:$0xff] }
 0x472   : > { %v1559_v26 = vmul.f32 %v1553_v24, %v5908_v19  ;;  %v1558_v31 = vadd.f32 0.5, %v1557_v29  ;;  %v6083_v19 = vld [vmem:[#allocation10 + $0xe8] sm:$0xff]  ;;  %7801 = vst [vmem:[#allocation38_spill] sm:$0xff] %v6146_v30  ;;  %v6149_v24 = vld [vmem:[#allocation10 + $0x40] sm:$0xff]  ;;  %7805 = vst [vmem:[#allocation42_spill] sm:$0xff] %v6158_v28 }
 0x473   : > { %7802 = vst [vmem:[#allocation39_spill] sm:$0xff] %v6149_v24  ;;  %v6161_v29 = vld [vmem:[#allocation10 + $0x20] sm:$0xff] }
 0x474   : > { %v6026_v27 = vadd.f32 %v1560_v25, %v1559_v26  ;;  %v6152_v25 = vld [vmem:[#allocation10 + $0x50] sm:$0xff]  ;;  %v6155_v26 = vld [vmem:[#allocation10 + $0x28] sm:$0xff]  ;;  %7806 = vst [vmem:[#allocation43_spill] sm:$0xff] %v6161_v29 }
 0x475   : > { %7803 = vst [vmem:[#allocation40_spill] sm:$0xff] %v6152_v25  ;;  %7804 = vst [vmem:[#allocation41_spill] sm:$0xff] %v6155_v26 }
 0x476   : > { %4492 = vtanh.f32 %v6026_v27 }
 0x483   : > { %v4493_v32 = vpop.eup %4492 }
 0x484   : > { %v6029_v33 = vmul.f32 %v4493_v32, %v1558_v31  ;;  %v6164_v31 = vld [vmem:[#allocation10 + $0x30] sm:$0xff]  ;;  %v6167_v32 = vld [vmem:[#allocation10 + $0x8] sm:$0xff] }
 0x485   : > { %7807 = vst [vmem:[#allocation44_spill] sm:$0xff] %v6164_v31  ;;  %7808 = vst [vmem:[#allocation45_spill] sm:$0xff] %v6167_v32 }
 0x486   : > { %7792 = vst [vmem:[#allocation53_spill] sm:$0xff] %v6029_v33  ;;  %1636 = vmatmul.mubr.f32.vlgmr.msra.gmra.mxu0 %v6029_v33  ;;  %1707 = vmatmul.mubr.f32.vlgmr.msra.gmra.mxu1 %v6029_v33  ;;  %v6170_v33 = vld [vmem:[#allocation10 + $0x18] sm:$0xff] }
 0x487   : > { %1743 = vmatpush1.msra.mxu0 %v5915_v16  ;;  %1814 = vmatpush1.msra.mxu1 %v5918_v20  ;;  %7809 = vst [vmem:[#allocation46_spill] sm:$0xff] %v6170_v33 }
 0x488   : > { %1744 = vmatprep.subr.mxu0 %v5921_v11  ;;  %1815 = vmatprep.subr.mxu1 %v5924_v23 }
 0x489   : > { %1745 = vmatpush1.msra.mxu0 %v5927_v2  ;;  %1816 = vmatpush1.msra.mxu1 %v5930_v22 }
 0x48a   : > { %1746 = vmatprep.subr.mxu0 %v5933_v6  ;;  %1817 = vmatprep.subr.mxu1 %v5936_v17 }
 0x48b   : > { %1747 = vmatpush1.msra.mxu0 %v5939_v48  ;;  %1818 = vmatpush1.msra.mxu1 %v5942_v21 }
 0x48c   : > { %1748 = vmatprep.subr.mxu0 %v5945_v9  ;;  %1819 = vmatprep.subr.mxu1 %v5948_v57 }
 0x48d   : > { %1749 = vmatpush1.msra.mxu0 %v5951_v39  ;;  %1820 = vmatpush1.msra.mxu1 %v5954_v7 }
 0x48e   : > { %1750 = vmatprep.subr.mxu0 %v5957_v15  ;;  %1821 = vmatprep.subr.mxu1 %v5960_v12 }
 0x48f   : > { %1751 = vmatpush1.msra.mxu0 %v5963_v13  ;;  %1822 = vmatpush1.msra.mxu1 %v5966_v18 }
 0x490   : > { %1752 = vmatprep.subr.mxu0 %v5969_v10  ;;  %1823 = vmatprep.subr.mxu1 %v5972_v14 }
 0x491   : > { %1753 = vmatpush1.msra.mxu0 %v6053_v34  ;;  %1824 = vmatpush1.msra.mxu1 %v6056_v35 }
 0x492   : > { %1754 = vmatprep.subr.mxu0 %v6059_v36  ;;  %1825 = vmatprep.subr.mxu1 %v6062_v37 }
 0x493   : > { %1755 = vmatpush1.msra.mxu0 %v6065_v38  ;;  %1826 = vmatpush1.msra.mxu1 %v6068_v40 }
 0x494   : > { %1756 = vmatprep.subr.mxu0 %v6071_v41  ;;  %1827 = vmatprep.subr.mxu1 %v6074_v42 }
 0x495   : > { %1757 = vmatpush1.msra.mxu0 %v6077_v43  ;;  %1828 = vmatpush1.msra.mxu1 %v6080_v45 }
 0x496   : > { %1758 = vmatprep.subr.mxu0 %v6083_v19  ;;  %1829 = vmatprep.subr.mxu1 %v6086_v49 }
 0x497   : > { %1759 = vmatpush1.msra.mxu0 %v6089_v50  ;;  %1830 = vmatpush1.msra.mxu1 %v6092_v51 }
 0x498   : > { %1760 = vmatprep.subr.mxu0 %v6095_v52  ;;  %1831 = vmatprep.subr.mxu1 %v6098_v53 }
 0x499   : > { %1761 = vmatpush1.msra.mxu0 %v6101_v54  ;;  %1832 = vmatpush1.msra.mxu1 %v6104_v55 }
 0x49a   : > { %1762 = vmatprep.subr.mxu0 %v6107_v56  ;;  %1833 = vmatprep.subr.mxu1 %v6110_v58 }
 0x49b   : > { %1763 = vmatpush1.msra.mxu0 %v6113_v59  ;;  %1834 = vmatpush1.msra.mxu1 %v6116_v60 }
 0x49c   : > { %1764 = vmatprep.subr.mxu0 %v6119_v61  ;;  %1835 = vmatprep.subr.mxu1 %v6122_v62 }
 0x49d   : > { %1765 = vmatpush1.msra.mxu0 %v6125_v63  ;;  %1836 = vmatpush1.msra.mxu1 %v6128_v0 }
 0x49e   : > { %1766 = vmatprep.subr.mxu0 %v6131_v1  ;;  %1837 = vmatprep.subr.mxu1 %v6134_v3 }
 0x49f   : > { %1767 = vmatpush1.msra.mxu0 %v6137_v4  ;;  %1838 = vmatpush1.msra.mxu1 %v6140_v5 }
 0x4a0   : > { %1768 = vmatprep.subr.mxu0 %v6143_v8  ;;  %1839 = vmatprep.subr.mxu1 %v6146_v30  ;;  %v7813_v30 = vld [vmem:[#allocation65_spill] sm:$0xff]  ;;  %v7814_v8 = vld [vmem:[#allocation64_spill] sm:$0xff] }
 0x4a1   : > { %1769 = vmatpush1.msra.mxu0 %v6149_v24  ;;  %1840 = vmatpush1.msra.mxu1 %v6152_v25 }
 0x4a2   : > { %1770 = vmatprep.subr.mxu0 %v6155_v26  ;;  %1841 = vmatprep.subr.mxu1 %v6158_v28  ;;  %v6173_v26 = vld [vmem:[#allocation10] sm:$0xff]  ;;  %v6177_v28 = vld [vmem:[#allocation10 + $0x10] sm:$0xff] }
 0x4a3   : > { %1771 = vmatpush1.msra.mxu0 %v6161_v29  ;;  %1842 = vmatpush1.msra.mxu1 %v6164_v31  ;;  %7810 = vst [vmem:[#allocation47_spill] sm:$0xff] %v6173_v26  ;;  %7811 = vst [vmem:[#allocation48_spill] sm:$0xff] %v6177_v28  ;;  %v7812_v31 = vld [vmem:[#allocation63_spill] sm:$0xff] }
 0x4a4   : > { %1772 = vmatprep.subr.mxu0 %v6167_v32  ;;  %1843 = vmatprep.subr.mxu1 %v6170_v33 }
 0x4a5   : > { %1773 = vmatpush1.msra.mxu0 %v6173_v26  ;;  %1806 = vmatprep.mubr.f32.mxu0 %v7777_v44 }
 0x4a6   : > { %1844 = vmatpush1.msra.mxu1 %v6177_v28  ;;  %1877 = vmatprep.mubr.f32.mxu1 %v7777_v44  ;;  %v7815_v44 = vld [vmem:[#allocation66_spill] sm:$0xff] }
 0x4a7   : > { %1913 = vmatprep.subr.mxu0 %v7786_v46  ;;  %1984 = vmatprep.subr.mxu1 %v7787_v47 }
 0x546   : > { %v1637_v32 = vpop.f32.mrf.mxu0  ;;  %v1708_v33 = vpop.f32.mrf.mxu1 }
 0x547   : > { %v1713_v29 = vadd.f32 %v1637_v32, %v7812_v31  ;;  %v1715_v5 = vadd.f32 %v1708_v33, %v7814_v8  ;;  %v7824_v8 = vld [vmem:[#allocation37_spill] sm:$0xff] }
 0x548   : > { %v1639_v25 = vpop.f32.mrf.mxu0  ;;  %v1710_v28 = vpop.f32.mrf.mxu1 }
 0x549   : > { %v1717_v24 = vmul.f32 0.5, %v1713_v29  ;;  %v1714_v26 = vadd.f32 %v1639_v25, %v7813_v30  ;;  %v1716_v3 = vadd.f32 %v1710_v28, %v7815_v44  ;;  %v7825_v25 = vld [vmem:[#allocation38_spill] sm:$0xff]  ;;  %v7827_v28 = vld [vmem:[#allocation40_spill] sm:$0xff] }
 0x54b   : > { %4494 = vtanh.f32 %v1717_v24  ;;  %v1721_v4 = vmul.f32 0.5, %v1714_v26  ;;  %v1726_v46 = vmul.f32 0.5, %v1716_v3  ;;  %v7826_v26 = vld [vmem:[#allocation39_spill] sm:$0xff] }
 0x54d   : > { %4496 = vtanh.f32 %v1721_v4 }
 0x54e   : > { %4498 = vtanh.f32 %v1715_v5 }
 0x54f   : > { %4500 = vtanh.f32 %v1726_v46  ;;  %v7817_v46 = vld [vmem:[#allocation52_spill] sm:$0xff] }
 0x558   : > { %v4495_v1 = vpop.eup %4494 }
 0x559   : > { %v1719_v47 = vmul.f32 0.5, %v4495_v1  ;;  %v7823_v1 = vld [vmem:[#allocation36_spill] sm:$0xff] }
 0x55a   : > { %v4497_v0 = vpop.eup %4496 }
 0x55b   : > { %v1720_v63 = vadd.f32 0.5, %v1719_v47  ;;  %v1723_v31 = vmul.f32 0.5, %v4497_v0  ;;  %v4499_v32 = vpop.eup %4498  ;;  %v7818_v47 = vld [vmem:[#allocation54_spill] sm:$0xff]  ;;  %v7822_v0 = vld [vmem:[#allocation35_spill] sm:$0xff] }
 0x55c   : > { %v4501_v33 = vpop.eup %4500 }
 0x55d   : > { %v1724_v29 = vadd.f32 0.5, %v1723_v31  ;;  %v1731_v62 = vmul.f32 %v4499_v32, %v1720_v63  ;;  %v1728_v4 = vmul.f32 0.5, %v4501_v33  ;;  %v7821_v63 = vld [vmem:[#allocation34_spill] sm:$0xff]  ;;  %v7828_v31 = vld [vmem:[#allocation41_spill] sm:$0xff] }
 0x55e   : > { %v7829_v32 = vld [vmem:[#allocation42_spill] sm:$0xff]  ;;  %v7832_v33 = vld [vmem:[#allocation45_spill] sm:$0xff] }
 0x55f   : > { %v1730_v30 = vmul.f32 %v1724_v29, %v6026_v27  ;;  %v1729_v5 = vadd.f32 0.5, %v1728_v4  ;;  %v7819_v27 = vld [vmem:[#allocation32_spill] sm:$0xff]  ;;  %v7830_v29 = vld [vmem:[#allocation43_spill] sm:$0xff]  ;;  %v7833_v4 = vld [vmem:[#allocation46_spill] sm:$0xff] }
 0x561   : > { %v6188_v24 = vadd.f32 %v1731_v62, %v1730_v30  ;;  %v7820_v62 = vld [vmem:[#allocation33_spill] sm:$0xff]  ;;  %v7831_v30 = vld [vmem:[#allocation44_spill] sm:$0xff] }
 0x563   : > { %4502 = vtanh.f32 %v6188_v24 }
 0x570   : > { %v4503_v44 = vpop.eup %4502 }
 0x571   : > { %v6191_v3 = vmul.f32 %v4503_v44, %v1729_v5  ;;  %v7834_v5 = vld [vmem:[#allocation47_spill] sm:$0xff]  ;;  %v7835_v44 = vmov 0.0  }
 0x573   : > { %7816 = vst [vmem:[#allocation49_spill] sm:$0xff] %v6191_v3  ;;  %1807 = vmatmul.mubr.f32.vlgmr.msra.gmra.mxu0 %v6191_v3  ;;  %1878 = vmatmul.mubr.f32.vlgmr.msra.gmra.mxu1 %v6191_v3  ;;  %v7836_v3 = vld [vmem:[#allocation48_spill] sm:$0xff] }
 0x574   : > { %1914 = vmatpush1.msra.mxu0 %v5915_v16  ;;  %1985 = vmatpush1.msra.mxu1 %v5918_v20 }
 0x575   : > { %1915 = vmatprep.subr.mxu0 %v5921_v11  ;;  %1986 = vmatprep.subr.mxu1 %v5924_v23 }
 0x576   : > { %1916 = vmatpush1.msra.mxu0 %v5927_v2  ;;  %1987 = vmatpush1.msra.mxu1 %v5930_v22 }
 0x577   : > { %1917 = vmatprep.subr.mxu0 %v5933_v6  ;;  %1988 = vmatprep.subr.mxu1 %v5936_v17 }
 0x578   : > { %1918 = vmatpush1.msra.mxu0 %v5939_v48  ;;  %1989 = vmatpush1.msra.mxu1 %v5942_v21 }
 0x579   : > { %1919 = vmatprep.subr.mxu0 %v5945_v9  ;;  %1990 = vmatprep.subr.mxu1 %v5948_v57 }
 0x57a   : > { %1920 = vmatpush1.msra.mxu0 %v5951_v39  ;;  %1991 = vmatpush1.msra.mxu1 %v5954_v7 }
 0x57b   : > { %1921 = vmatprep.subr.mxu0 %v5957_v15  ;;  %1992 = vmatprep.subr.mxu1 %v5960_v12 }
 0x57c   : > { %1922 = vmatpush1.msra.mxu0 %v5963_v13  ;;  %1993 = vmatpush1.msra.mxu1 %v5966_v18 }
 0x57d   : > { %1923 = vmatprep.subr.mxu0 %v5969_v10  ;;  %1994 = vmatprep.subr.mxu1 %v5972_v14 }
 0x57e   : > { %1924 = vmatpush1.msra.mxu0 %v6053_v34  ;;  %1995 = vmatpush1.msra.mxu1 %v6056_v35 }
 0x57f   : > { %1925 = vmatprep.subr.mxu0 %v6059_v36  ;;  %1996 = vmatprep.subr.mxu1 %v6062_v37 }
 0x580   : > { %1926 = vmatpush1.msra.mxu0 %v6065_v38  ;;  %1997 = vmatpush1.msra.mxu1 %v6068_v40 }
 0x581   : > { %1927 = vmatprep.subr.mxu0 %v6071_v41  ;;  %1998 = vmatprep.subr.mxu1 %v6074_v42 }
 0x582   : > { %1928 = vmatpush1.msra.mxu0 %v6077_v43  ;;  %1999 = vmatpush1.msra.mxu1 %v6080_v45 }
 0x583   : > { %1929 = vmatprep.subr.mxu0 %v6083_v19  ;;  %2000 = vmatprep.subr.mxu1 %v6086_v49 }
 0x584   : > { %1930 = vmatpush1.msra.mxu0 %v6089_v50  ;;  %2001 = vmatpush1.msra.mxu1 %v6092_v51 }
 0x585   : > { %1931 = vmatprep.subr.mxu0 %v6095_v52  ;;  %2002 = vmatprep.subr.mxu1 %v6098_v53 }
 0x586   : > { %1932 = vmatpush1.msra.mxu0 %v6101_v54  ;;  %2003 = vmatpush1.msra.mxu1 %v6104_v55 }
 0x587   : > { %1933 = vmatprep.subr.mxu0 %v6107_v56  ;;  %2004 = vmatprep.subr.mxu1 %v6110_v58 }
 0x588   : > { %1934 = vmatpush1.msra.mxu0 %v6113_v59  ;;  %2005 = vmatpush1.msra.mxu1 %v6116_v60 }
 0x589   : > { %1935 = vmatprep.subr.mxu0 %v6119_v61  ;;  %2006 = vmatprep.subr.mxu1 %v7817_v46 }
 0x58a   : > { %1936 = vmatpush1.msra.mxu0 %v7818_v47  ;;  %2007 = vmatpush1.msra.mxu1 %v7819_v27 }
 0x58b   : > { %1937 = vmatprep.subr.mxu0 %v7820_v62  ;;  %2008 = vmatprep.subr.mxu1 %v7821_v63 }
 0x58c   : > { %1938 = vmatpush1.msra.mxu0 %v7822_v0  ;;  %2009 = vmatpush1.msra.mxu1 %v7823_v1 }
 0x58d   : > { %1939 = vmatprep.subr.mxu0 %v7824_v8  ;;  %2010 = vmatprep.subr.mxu1 %v7825_v25  ;;  %v7840_v8 = vld [vmem:[#allocation69_spill] sm:$0xff] }
 0x58e   : > { %1940 = vmatpush1.msra.mxu0 %v7826_v26  ;;  %2011 = vmatpush1.msra.mxu1 %v7827_v28  ;;  %v7837_v28 = vld [vmem:[#allocation31_spill] sm:$0xff] }
 0x58f   : > { %1941 = vmatprep.subr.mxu0 %v7828_v31  ;;  %2012 = vmatprep.subr.mxu1 %v7829_v32  ;;  %v7838_v31 = vld [vmem:[#allocation28_spill] sm:$0xff] }
 0x590   : > { %1942 = vmatpush1.msra.mxu0 %v7830_v29  ;;  %2013 = vmatpush1.msra.mxu1 %v7831_v30  ;;  %v7839_v29 = vld [vmem:[#allocation67_spill] sm:$0xff] }
 0x591   : > { %1943 = vmatprep.subr.mxu0 %v7832_v33  ;;  %2014 = vmatprep.subr.mxu1 %v7833_v4 }
 0x592   : > { %1944 = vmatpush1.msra.mxu0 %v7834_v5  ;;  %1977 = vmatprep.mubr.f32.mxu0 %v7835_v44  ;;  %v7841_v5 = vld [vmem:[#allocation68_spill] sm:$0xff] }
 0x593   : > { %2015 = vmatpush1.msra.mxu1 %v7836_v3  ;;  %2048 = vmatprep.mubr.f32.mxu1 %v7835_v44  ;;  %v7842_v44 = vld [vmem:[#allocation70_spill] sm:$0xff] }
 0x594   : > { %2084 = vmatprep.subr.mxu0 %v7837_v28  ;;  %2155 = vmatprep.subr.mxu1 %v7838_v31 }
 0x633   : > { %v1808_v32 = vpop.f32.mrf.mxu0  ;;  %v1879_v30 = vpop.f32.mrf.mxu1 }
 0x634   : > { %v1884_v26 = vadd.f32 %v1808_v32, %v7839_v29  ;;  %v1886_v1 = vadd.f32 %v1879_v30, %v7841_v5 }
 0x635   : > { %v1810_v25 = vpop.f32.mrf.mxu0  ;;  %v1881_v3 = vpop.f32.mrf.mxu1 }
 0x636   : > { %v1888_v33 = vmul.f32 0.5, %v1884_v26  ;;  %v1885_v4 = vadd.f32 %v1810_v25, %v7840_v8  ;;  %v1887_v63 = vadd.f32 %v1881_v3, %v7842_v44 }
 0x638   : > { %4504 = vtanh.f32 %v1888_v33  ;;  %v1892_v0 = vmul.f32 0.5, %v1885_v4  ;;  %v1897_v28 = vmul.f32 0.5, %v1887_v63 }
 0x63a   : > { %4506 = vtanh.f32 %v1892_v0 }
 0x63b   : > { %4508 = vtanh.f32 %v1886_v1 }
 0x63c   : > { %4510 = vtanh.f32 %v1897_v28  ;;  %v2312_v28 = vld [vmem:[#allocation15 + $0x1e0] sm:$0xff] }
 0x645   : > { %v4505_v62 = vpop.eup %4504 }
 0x646   : > { %v1890_v31 = vmul.f32 0.5, %v4505_v62 }
 0x647   : > { %v4507_v27 = vpop.eup %4506 }
 0x648   : > { %v1891_v47 = vadd.f32 0.5, %v1890_v31  ;;  %v1894_v32 = vmul.f32 0.5, %v4507_v27  ;;  %v4509_v29 = vpop.eup %4508  ;;  %v2314_v31 = vld [vmem:[#allocation15 + $0x1f0] sm:$0xff] }
 0x649   : > { %v4511_v0 = vpop.eup %4510 }
 0x64a   : > { %v1895_v26 = vadd.f32 0.5, %v1894_v32  ;;  %v1902_v46 = vmul.f32 %v4509_v29, %v1891_v47  ;;  %v1899_v1 = vmul.f32 0.5, %v4511_v0  ;;  %v2309_v32 = vld [vmem:[#allocation15 + $0x1c8] sm:$0xff]  ;;  %v2311_v29 = vld [vmem:[#allocation15 + $0x1d8] sm:$0xff] }
 0x64b   : > { %v2307_v0 = vld [vmem:[#allocation15 + $0x1b8] sm:$0xff] }
 0x64c   : > { %v1901_v8 = vmul.f32 %v1895_v26, %v6188_v24  ;;  %v1900_v30 = vadd.f32 0.5, %v1899_v1  ;;  %v2308_v26 = vld [vmem:[#allocation15 + $0x1c0] sm:$0xff] }
 0x64d   : > { %v2304_v1 = vld [vmem:[#allocation15 + $0x1a0] sm:$0xff] }
 0x64e   : > { %v6266_v25 = vadd.f32 %v1902_v46, %v1901_v8  ;;  %v2310_v8 = vld [vmem:[#allocation15 + $0x1d0] sm:$0xff] }
 0x650   : > { %4512 = vtanh.f32 %v6266_v25 }
 0x65d   : > { %v4513_v3 = vpop.eup %4512 }
 0x65e   : > { %v6269_v63 = vmul.f32 %v4513_v3, %v1900_v30  ;;  %v2306_v30 = vld [vmem:[#allocation15 + $0x1b0] sm:$0xff]  ;;  %v2301_v3 = vld [vmem:[#allocation15 + $0x188] sm:$0xff] }
 0x660   : > { %1978 = vmatmul.mubr.f32.vlgmr.msra.gmra.mxu0 %v6269_v63  ;;  %2049 = vmatmul.mubr.f32.vlgmr.msra.gmra.mxu1 %v6269_v63 }
 0x661   : > { %2085 = vmatpush1.msra.mxu0 %v5915_v16  ;;  %2156 = vmatpush1.msra.mxu1 %v5918_v20  ;;  %v7844_v16 = vld [vmem:[#allocation54_spill] sm:$0xff]  ;;  %v7845_v20 = vld [vmem:[#allocation32_spill] sm:$0xff] }
 0x662   : > { %2086 = vmatprep.subr.mxu0 %v5921_v11  ;;  %2157 = vmatprep.subr.mxu1 %v5924_v23  ;;  %v7846_v11 = vld [vmem:[#allocation33_spill] sm:$0xff]  ;;  %v7847_v23 = vld [vmem:[#allocation34_spill] sm:$0xff] }
 0x663   : > { %2087 = vmatpush1.msra.mxu0 %v5927_v2  ;;  %2158 = vmatpush1.msra.mxu1 %v5930_v22  ;;  %v7848_v2 = vld [vmem:[#allocation35_spill] sm:$0xff]  ;;  %v7849_v22 = vld [vmem:[#allocation36_spill] sm:$0xff] }
 0x664   : > { %2088 = vmatprep.subr.mxu0 %v5933_v6  ;;  %2159 = vmatprep.subr.mxu1 %v5936_v17  ;;  %v7850_v6 = vld [vmem:[#allocation37_spill] sm:$0xff]  ;;  %v7851_v17 = vld [vmem:[#allocation38_spill] sm:$0xff] }
 0x665   : > { %2089 = vmatpush1.msra.mxu0 %v5939_v48  ;;  %2160 = vmatpush1.msra.mxu1 %v5942_v21  ;;  %v7852_v48 = vld [vmem:[#allocation39_spill] sm:$0xff]  ;;  %v7853_v21 = vld [vmem:[#allocation40_spill] sm:$0xff] }
 0x666   : > { %2090 = vmatprep.subr.mxu0 %v5945_v9  ;;  %2161 = vmatprep.subr.mxu1 %v5948_v57  ;;  %v7854_v9 = vld [vmem:[#allocation41_spill] sm:$0xff]  ;;  %v7855_v57 = vld [vmem:[#allocation42_spill] sm:$0xff] }
 0x667   : > { %2091 = vmatpush1.msra.mxu0 %v5951_v39  ;;  %2162 = vmatpush1.msra.mxu1 %v5954_v7  ;;  %v7856_v39 = vld [vmem:[#allocation43_spill] sm:$0xff]  ;;  %v7857_v7 = vld [vmem:[#allocation44_spill] sm:$0xff] }
 0x668   : > { %2092 = vmatprep.subr.mxu0 %v5957_v15  ;;  %2163 = vmatprep.subr.mxu1 %v5960_v12  ;;  %v7858_v15 = vld [vmem:[#allocation45_spill] sm:$0xff]  ;;  %v7859_v12 = vld [vmem:[#allocation46_spill] sm:$0xff] }
 0x669   : > { %2093 = vmatpush1.msra.mxu0 %v5963_v13  ;;  %2164 = vmatpush1.msra.mxu1 %v5966_v18  ;;  %v7860_v13 = vld [vmem:[#allocation47_spill] sm:$0xff]  ;;  %v7861_v18 = vld [vmem:[#allocation48_spill] sm:$0xff] }
 0x66a   : > { %2094 = vmatprep.subr.mxu0 %v5969_v10  ;;  %2165 = vmatprep.subr.mxu1 %v5972_v14  ;;  %v7843_v14 = vld [vmem:[#allocation52_spill] sm:$0xff]  ;;  %v7862_v10 = vmov 0.0  }
 0x66b   : > { %2095 = vmatpush1.msra.mxu0 %v6053_v34  ;;  %2166 = vmatpush1.msra.mxu1 %v6056_v35  ;;  %v2313_v34 = vld [vmem:[#allocation15 + $0x1e8] sm:$0xff]  ;;  %v2315_v35 = vld [vmem:[#allocation15 + $0x1f8] sm:$0xff] }
 0x66c   : > { %2096 = vmatprep.subr.mxu0 %v6059_v36  ;;  %2167 = vmatprep.subr.mxu1 %v6062_v37  ;;  %v7863_v37 = vld [vmem:[#allocation71_spill] sm:$0xff] }
 0x66d   : > { %2097 = vmatpush1.msra.mxu0 %v6065_v38  ;;  %2168 = vmatpush1.msra.mxu1 %v6068_v40 }
 0x66e   : > { %2098 = vmatprep.subr.mxu0 %v6071_v41  ;;  %2169 = vmatprep.subr.mxu1 %v6074_v42 }
 0x66f   : > { %2099 = vmatpush1.msra.mxu0 %v6077_v43  ;;  %2170 = vmatpush1.msra.mxu1 %v6080_v45  ;;  %v7864_v43 = vld [vmem:[#allocation73_spill] sm:$0xff] }
 0x670   : > { %2100 = vmatprep.subr.mxu0 %v6083_v19  ;;  %2171 = vmatprep.subr.mxu1 %v6086_v49  ;;  %v7865_v19 = vld [vmem:[#allocation72_spill] sm:$0xff] }
 0x671   : > { %2101 = vmatpush1.msra.mxu0 %v6089_v50  ;;  %2172 = vmatpush1.msra.mxu1 %v6092_v51 }
 0x672   : > { %2102 = vmatprep.subr.mxu0 %v6095_v52  ;;  %2173 = vmatprep.subr.mxu1 %v6098_v53  ;;  %v7866_v52 = vld [vmem:[#allocation74_spill] sm:$0xff] }
 0x673   : > { %2103 = vmatpush1.msra.mxu0 %v6101_v54  ;;  %2174 = vmatpush1.msra.mxu1 %v6104_v55 }
 0x674   : > { %2104 = vmatprep.subr.mxu0 %v6107_v56  ;;  %2175 = vmatprep.subr.mxu1 %v6110_v58 }
 0x675   : > { %2105 = vmatpush1.msra.mxu0 %v6113_v59  ;;  %2176 = vmatpush1.msra.mxu1 %v6116_v60 }
 0x676   : > { %2106 = vmatprep.subr.mxu0 %v6119_v61  ;;  %2177 = vmatprep.subr.mxu1 %v7843_v14  ;;  %v2303_v14 = vld [vmem:[#allocation15 + $0x198] sm:$0xff] }
 0x677   : > { %2107 = vmatpush1.msra.mxu0 %v7844_v16  ;;  %2178 = vmatpush1.msra.mxu1 %v7845_v20  ;;  %v2300_v16 = vld [vmem:[#allocation15 + $0x180] sm:$0xff]  ;;  %v2302_v20 = vld [vmem:[#allocation15 + $0x190] sm:$0xff] }
 0x678   : > { %2108 = vmatprep.subr.mxu0 %v7846_v11  ;;  %2179 = vmatprep.subr.mxu1 %v7847_v23  ;;  %v2297_v11 = vld [vmem:[#allocation15 + $0x168] sm:$0xff]  ;;  %v2299_v23 = vld [vmem:[#allocation15 + $0x178] sm:$0xff] }
 0x679   : > { %2109 = vmatpush1.msra.mxu0 %v7848_v2  ;;  %2180 = vmatpush1.msra.mxu1 %v7849_v22  ;;  %v2296_v2 = vld [vmem:[#allocation15 + $0x160] sm:$0xff]  ;;  %v2298_v22 = vld [vmem:[#allocation15 + $0x170] sm:$0xff] }
 0x67a   : > { %2110 = vmatprep.subr.mxu0 %v7850_v6  ;;  %2181 = vmatprep.subr.mxu1 %v7851_v17  ;;  %v2293_v6 = vld [vmem:[#allocation15 + $0x148] sm:$0xff]  ;;  %v2295_v17 = vld [vmem:[#allocation15 + $0x158] sm:$0xff] }
 0x67b   : > { %2111 = vmatpush1.msra.mxu0 %v7852_v48  ;;  %2182 = vmatpush1.msra.mxu1 %v7853_v21  ;;  %v2292_v48 = vld [vmem:[#allocation15 + $0x140] sm:$0xff]  ;;  %v2294_v21 = vld [vmem:[#allocation15 + $0x150] sm:$0xff] }
 0x67c   : > { %2112 = vmatprep.subr.mxu0 %v7854_v9  ;;  %2183 = vmatprep.subr.mxu1 %v7855_v57  ;;  %v2289_v9 = vld [vmem:[#allocation15 + $0x128] sm:$0xff]  ;;  %v2291_v57 = vld [vmem:[#allocation15 + $0x138] sm:$0xff] }
 0x67d   : > { %2113 = vmatpush1.msra.mxu0 %v7856_v39  ;;  %2184 = vmatpush1.msra.mxu1 %v7857_v7  ;;  %v2288_v39 = vld [vmem:[#allocation15 + $0x120] sm:$0xff]  ;;  %v2290_v7 = vld [vmem:[#allocation15 + $0x130] sm:$0xff] }
 0x67e   : > { %2114 = vmatprep.subr.mxu0 %v7858_v15  ;;  %2185 = vmatprep.subr.mxu1 %v7859_v12  ;;  %v2285_v15 = vld [vmem:[#allocation15 + $0x108] sm:$0xff]  ;;  %v2287_v12 = vld [vmem:[#allocation15 + $0x118] sm:$0xff] }
 0x67f   : > { %2115 = vmatpush1.msra.mxu0 %v7860_v13  ;;  %2186 = vmatpush1.msra.mxu1 %v7861_v18  ;;  %v2284_v13 = vld [vmem:[#allocation15 + $0x100] sm:$0xff]  ;;  %v2286_v18 = vld [vmem:[#allocation15 + $0x110] sm:$0xff] }
 0x680   : > { %2148 = vmatprep.mubr.f32.mxu0 %v7862_v10  ;;  %2219 = vmatprep.mubr.f32.mxu1 %v7862_v10 }
 0x681   : > { %2412 = vmatprep.subr.mxu0 %v2313_v34  ;;  %2525 = vmatprep.subr.mxu1 %v2315_v35  ;;  %v2281_v34 = vld [vmem:[#allocation15 + $0xe8] sm:$0xff]  ;;  %v2283_v35 = vld [vmem:[#allocation15 + $0xf8] sm:$0xff] }
 0x720   : > { %v1979_v36 = vpop.f32.mrf.mxu0  ;;  %v2050_v40 = vpop.f32.mrf.mxu1 }
 0x721   : > { %v2055_v38 = vadd.f32 %v1979_v36, %v7863_v37  ;;  %v2057_v49 = vadd.f32 %v2050_v40, %v7865_v19  ;;  %v2280_v36 = vld [vmem:[#allocation15 + $0xe0] sm:$0xff]  ;;  %v2282_v37 = vld [vmem:[#allocation15 + $0xf0] sm:$0xff]  ;;  %v2279_v40 = vld [vmem:[#allocation15 + $0xd8] sm:$0xff] }
 0x722   : > { %v1981_v41 = vpop.f32.mrf.mxu0  ;;  %v2052_v51 = vpop.f32.mrf.mxu1  ;;  %v2272_v19 = vld [vmem:[#allocation15 + $0xa0] sm:$0xff] }
 0x723   : > { %v2059_v42 = vmul.f32 0.5, %v2055_v38  ;;  %v2056_v45 = vadd.f32 %v1981_v41, %v7864_v43  ;;  %v2058_v53 = vadd.f32 %v2052_v51, %v7866_v52  ;;  %v2277_v38 = vld [vmem:[#allocation15 + $0xc8] sm:$0xff]  ;;  %v2276_v41 = vld [vmem:[#allocation15 + $0xc0] sm:$0xff]  ;;  %v2271_v51 = vld [vmem:[#allocation15 + $0x98] sm:$0xff] }
 0x724   : > { %v2273_v43 = vld [vmem:[#allocation15 + $0xa8] sm:$0xff]  ;;  %v2268_v52 = vld [vmem:[#allocation15 + $0x80] sm:$0xff] }
 0x725   : > { %4514 = vtanh.f32 %v2059_v42  ;;  %v2063_v50 = vmul.f32 0.5, %v2056_v45  ;;  %v2068_v54 = vmul.f32 0.5, %v2058_v53  ;;  %v2278_v42 = vld [vmem:[#allocation15 + $0xd0] sm:$0xff]  ;;  %v2275_v45 = vld [vmem:[#allocation15 + $0xb8] sm:$0xff] }
 0x726   : > { %v2270_v53 = vld [vmem:[#allocation15 + $0x90] sm:$0xff] }
 0x727   : > { %4516 = vtanh.f32 %v2063_v50  ;;  %v2269_v50 = vld [vmem:[#allocation15 + $0x88] sm:$0xff] }
 0x728   : > { %4518 = vtanh.f32 %v2057_v49  ;;  %v2274_v49 = vld [vmem:[#allocation15 + $0xb0] sm:$0xff] }
 0x729   : > { %4520 = vtanh.f32 %v2068_v54  ;;  %v2265_v54 = vld [vmem:[#allocation15 + $0x68] sm:$0xff] }
 0x732   : > { %v4515_v55 = vpop.eup %4514 }
 0x733   : > { %v2061_v56 = vmul.f32 0.5, %v4515_v55  ;;  %v2267_v55 = vld [vmem:[#allocation15 + $0x78] sm:$0xff] }
 0x734   : > { %v4517_v58 = vpop.eup %4516 }
 0x735   : > { %v2062_v59 = vadd.f32 0.5, %v2061_v56  ;;  %v2065_v60 = vmul.f32 0.5, %v4517_v58  ;;  %v4519_v61 = vpop.eup %4518  ;;  %v2264_v56 = vld [vmem:[#allocation15 + $0x60] sm:$0xff]  ;;  %v2266_v58 = vld [vmem:[#allocation15 + $0x70] sm:$0xff] }
 0x736   : > { %v4521_v62 = vpop.eup %4520 }
 0x737   : > { %v2066_v24 = vadd.f32 0.5, %v2065_v60  ;;  %v2073_v46 = vmul.f32 %v4519_v61, %v2062_v59  ;;  %v2070_v33 = vmul.f32 0.5, %v4521_v62  ;;  %v2261_v59 = vld [vmem:[#allocation15 + $0x48] sm:$0xff]  ;;  %v2263_v60 = vld [vmem:[#allocation15 + $0x58] sm:$0xff]  ;;  %v2260_v61 = vld [vmem:[#allocation15 + $0x40] sm:$0xff] }
 0x738   : > { %v2256_v62 = vld [vmem:[#allocation15 + $0x20] sm:$0xff] }
 0x739   : > { %v2072_v47 = vmul.f32 %v2066_v24, %v6266_v25  ;;  %v2071_v4 = vadd.f32 0.5, %v2070_v33  ;;  %v2305_v25 = vld [vmem:[#allocation15 + $0x1a8] sm:$0xff]  ;;  %v2262_v24 = vld [vmem:[#allocation15 + $0x50] sm:$0xff] }
 0x73a   : > { %v2258_v33 = vld [vmem:[#allocation15 + $0x30] sm:$0xff] }
 0x73b   : > { %v6342_v27 = vadd.f32 %v2073_v46, %v2072_v47  ;;  %v2257_v46 = vld [vmem:[#allocation15 + $0x28] sm:$0xff]  ;;  %v2259_v47 = vld [vmem:[#allocation15 + $0x38] sm:$0xff] }
 0x73d   : > { %4522 = vtanh.f32 %v6342_v27 }
 0x74a   : > { %v4523_v5 = vpop.eup %4522 }
 0x74b   : > { %v6345_v44 = vmul.f32 %v4523_v5, %v2071_v4  ;;  %v2253_v4 = vld [vmem:[#allocation15 + $0x8] sm:$0xff]  ;;  %v2255_v5 = vld [vmem:[#allocation15 + $0x18] sm:$0xff] }
 0x74d   : > { %2149 = vmatmul.mubr.f32.vlgmr.msra.gmra.mxu0 %v6345_v44  ;;  %2220 = vmatmul.mubr.f32.vlgmr.msra.gmra.mxu1 %v6345_v44 }
 0x74e   : > { %2413 = vmatpush1.msra.mxu0 %v2312_v28  ;;  %2526 = vmatpush1.msra.mxu1 %v2314_v31  ;;  %v2252_v28 = vld [vmem:[#allocation15] sm:$0xff]  ;;  %v2254_v31 = vld [vmem:[#allocation15 + $0x10] sm:$0xff] }
 0x74f   : > { %2414 = vmatprep.subr.mxu0 %v2309_v32  ;;  %2527 = vmatprep.subr.mxu1 %v2311_v29  ;;  %v7867_v32 = vld [vmem:[#allocation79_spill] sm:$0xff]  ;;  %v7868_v29 = vld [vmem:[#allocation30_spill] sm:$0xff] }
 0x750   : > { %2415 = vmatpush1.msra.mxu0 %v2308_v26  ;;  %2528 = vmatpush1.msra.mxu1 %v2310_v8  ;;  %v7869_v26 = vld [vmem:[#allocation29_spill] sm:$0xff] }
 0x751   : > { %2416 = vmatprep.subr.mxu0 %v2305_v25  ;;  %2529 = vmatprep.subr.mxu1 %v2307_v0  ;;  %v7870_v8 = vld [vmem:[#allocation53_spill] sm:$0xff]  ;;  %v6379_v0 = vld [vmem:[#allocation10 + $0x3e8] sm:$0xff] }
 0x752   : > { %2417 = vmatpush1.msra.mxu0 %v2304_v1  ;;  %2530 = vmatpush1.msra.mxu1 %v2306_v30  ;;  %v7871_v25 = vld [vmem:[#allocation49_spill] sm:$0xff]  ;;  %7872 = vst [vmem:[#allocation50_spill] sm:$0xff] %v6379_v0  ;;  %v6381_v1 = vld [vmem:[#allocation10 + $0x3f8] sm:$0xff] }
 0x753   : > { %2418 = vmatprep.subr.mxu0 %v2301_v3  ;;  %2531 = vmatprep.subr.mxu1 %v2303_v14  ;;  %7873 = vst [vmem:[#allocation55_spill] sm:$0xff] %v6381_v1  ;;  %v6387_v30 = vld [vmem:[#allocation10 + $0x3f0] sm:$0xff]  ;;  %v6393_v3 = vld [vmem:[#allocation10 + $0x3d8] sm:$0xff]  ;;  %v6397_v14 = vld [vmem:[#allocation10 + $0x3c0] sm:$0xff] }
 0x754   : > { %2419 = vmatpush1.msra.mxu0 %v2300_v16  ;;  %2532 = vmatpush1.msra.mxu1 %v2302_v20  ;;  %v6399_v16 = vld [vmem:[#allocation10 + $0x3d0] sm:$0xff]  ;;  %v6403_v20 = vld [vmem:[#allocation10 + $0x3a8] sm:$0xff] }
 0x755   : > { %2420 = vmatprep.subr.mxu0 %v2297_v11  ;;  %2533 = vmatprep.subr.mxu1 %v2299_v23  ;;  %v6405_v11 = vld [vmem:[#allocation10 + $0x3b8] sm:$0xff]  ;;  %v6409_v23 = vld [vmem:[#allocation10 + $0x3a0] sm:$0xff] }
 0x756   : > { %2421 = vmatpush1.msra.mxu0 %v2296_v2  ;;  %2534 = vmatpush1.msra.mxu1 %v2298_v22  ;;  %v6411_v2 = vld [vmem:[#allocation10 + $0x3b0] sm:$0xff]  ;;  %v6415_v22 = vld [vmem:[#allocation10 + $0x388] sm:$0xff] }
 0x757   : > { %2422 = vmatprep.subr.mxu0 %v2293_v6  ;;  %2535 = vmatprep.subr.mxu1 %v2295_v17  ;;  %v6417_v6 = vld [vmem:[#allocation10 + $0x398] sm:$0xff]  ;;  %v6421_v17 = vld [vmem:[#allocation10 + $0x380] sm:$0xff] }
 0x758   : > { %2423 = vmatpush1.msra.mxu0 %v2292_v48  ;;  %2536 = vmatpush1.msra.mxu1 %v2294_v21  ;;  %v6423_v48 = vld [vmem:[#allocation10 + $0x390] sm:$0xff]  ;;  %v6427_v21 = vld [vmem:[#allocation10 + $0x368] sm:$0xff] }
 0x759   : > { %2424 = vmatprep.subr.mxu0 %v2289_v9  ;;  %2537 = vmatprep.subr.mxu1 %v2291_v57  ;;  %v6429_v9 = vld [vmem:[#allocation10 + $0x378] sm:$0xff]  ;;  %v6433_v57 = vld [vmem:[#allocation10 + $0x360] sm:$0xff] }
 0x75a   : > { %2425 = vmatpush1.msra.mxu0 %v2288_v39  ;;  %2538 = vmatpush1.msra.mxu1 %v2290_v7  ;;  %v6435_v39 = vld [vmem:[#allocation10 + $0x370] sm:$0xff]  ;;  %v6439_v7 = vld [vmem:[#allocation10 + $0x348] sm:$0xff] }
 0x75b   : > { %2426 = vmatprep.subr.mxu0 %v2285_v15  ;;  %2539 = vmatprep.subr.mxu1 %v2287_v12  ;;  %v6441_v15 = vld [vmem:[#allocation10 + $0x358] sm:$0xff]  ;;  %v6445_v12 = vld [vmem:[#allocation10 + $0x340] sm:$0xff] }
 0x75c   : > { %2427 = vmatpush1.msra.mxu0 %v2284_v13  ;;  %2540 = vmatpush1.msra.mxu1 %v2286_v18  ;;  %v6447_v13 = vld [vmem:[#allocation10 + $0x350] sm:$0xff]  ;;  %v6449_v18 = vld [vmem:[#allocation10 + $0x328] sm:$0xff] }
 0x75d   : > { %2428 = vmatprep.subr.mxu0 %v2281_v34  ;;  %2541 = vmatprep.subr.mxu1 %v2283_v35  ;;  %v6453_v34 = vld [vmem:[#allocation10 + $0x338] sm:$0xff]  ;;  %v6455_v35 = vld [vmem:[#allocation10 + $0x320] sm:$0xff] }
 0x75e   : > { %2429 = vmatpush1.msra.mxu0 %v2280_v36  ;;  %2542 = vmatpush1.msra.mxu1 %v2282_v37  ;;  %v6457_v36 = vld [vmem:[#allocation10 + $0x330] sm:$0xff]  ;;  %v6463_v37 = vld [vmem:[#allocation10 + $0x308] sm:$0xff] }
 0x75f   : > { %2430 = vmatprep.subr.mxu0 %v2277_v38  ;;  %2543 = vmatprep.subr.mxu1 %v2279_v40  ;;  %v6465_v38 = vld [vmem:[#allocation10 + $0x318] sm:$0xff]  ;;  %v6469_v40 = vld [vmem:[#allocation10 + $0x300] sm:$0xff] }
 0x760   : > { %2431 = vmatpush1.msra.mxu0 %v2276_v41  ;;  %2544 = vmatpush1.msra.mxu1 %v2278_v42  ;;  %v6471_v41 = vld [vmem:[#allocation10 + $0x310] sm:$0xff]  ;;  %v6475_v42 = vld [vmem:[#allocation10 + $0x2e8] sm:$0xff] }
 0x761   : > { %2432 = vmatprep.subr.mxu0 %v2273_v43  ;;  %2545 = vmatprep.subr.mxu1 %v2275_v45  ;;  %v6477_v43 = vld [vmem:[#allocation10 + $0x2f8] sm:$0xff]  ;;  %v6481_v45 = vld [vmem:[#allocation10 + $0x2e0] sm:$0xff] }
 0x762   : > { %2433 = vmatpush1.msra.mxu0 %v2272_v19  ;;  %2546 = vmatpush1.msra.mxu1 %v2274_v49  ;;  %v6483_v19 = vld [vmem:[#allocation10 + $0x2f0] sm:$0xff]  ;;  %v6487_v49 = vld [vmem:[#allocation10 + $0x2c8] sm:$0xff] }
 0x763   : > { %2434 = vmatprep.subr.mxu0 %v2269_v50  ;;  %2547 = vmatprep.subr.mxu1 %v2271_v51  ;;  %v6489_v50 = vld [vmem:[#allocation10 + $0x2d8] sm:$0xff]  ;;  %v6493_v51 = vld [vmem:[#allocation10 + $0x2c0] sm:$0xff] }
 0x764   : > { %2435 = vmatpush1.msra.mxu0 %v2268_v52  ;;  %2548 = vmatpush1.msra.mxu1 %v2270_v53  ;;  %v6495_v52 = vld [vmem:[#allocation10 + $0x2d0] sm:$0xff]  ;;  %v6499_v53 = vld [vmem:[#allocation10 + $0x2a8] sm:$0xff] }
 0x765   : > { %2436 = vmatprep.subr.mxu0 %v2265_v54  ;;  %2549 = vmatprep.subr.mxu1 %v2267_v55  ;;  %v6501_v54 = vld [vmem:[#allocation10 + $0x2b8] sm:$0xff]  ;;  %v6505_v55 = vld [vmem:[#allocation10 + $0x2a0] sm:$0xff] }
 0x766   : > { %2437 = vmatpush1.msra.mxu0 %v2264_v56  ;;  %2550 = vmatpush1.msra.mxu1 %v2266_v58  ;;  %v6507_v56 = vld [vmem:[#allocation10 + $0x2b0] sm:$0xff]  ;;  %v6511_v58 = vld [vmem:[#allocation10 + $0x288] sm:$0xff] }
 0x767   : > { %2438 = vmatprep.subr.mxu0 %v2261_v59  ;;  %2551 = vmatprep.subr.mxu1 %v2263_v60  ;;  %7874 = vst [vmem:[#allocation57_spill] sm:$0xff] %v6507_v56  ;;  %7875 = vst [vmem:[#allocation56_spill] sm:$0xff] %v6511_v58  ;;  %v6513_v59 = vld [vmem:[#allocation10 + $0x298] sm:$0xff]  ;;  %v6517_v60 = vld [vmem:[#allocation10 + $0x280] sm:$0xff] }
 0x768   : > { %2439 = vmatpush1.msra.mxu0 %v2260_v61  ;;  %2552 = vmatpush1.msra.mxu1 %v2262_v24  ;;  %7876 = vst [vmem:[#allocation58_spill] sm:$0xff] %v6513_v59  ;;  %7877 = vst [vmem:[#allocation59_spill] sm:$0xff] %v6517_v60  ;;  %v6519_v61 = vld [vmem:[#allocation10 + $0x290] sm:$0xff]  ;;  %v6523_v24 = vld [vmem:[#allocation10 + $0x268] sm:$0xff] }
 0x769   : > { %2440 = vmatprep.subr.mxu0 %v2257_v46  ;;  %2553 = vmatprep.subr.mxu1 %v2259_v47  ;;  %7878 = vst [vmem:[#allocation61_spill] sm:$0xff] %v6519_v61  ;;  %7879 = vst [vmem:[#allocation60_spill] sm:$0xff] %v6523_v24  ;;  %v6525_v46 = vld [vmem:[#allocation10 + $0x278] sm:$0xff]  ;;  %v6529_v47 = vld [vmem:[#allocation10 + $0x260] sm:$0xff] }
 0x76a   : > { %2441 = vmatpush1.msra.mxu0 %v2256_v62  ;;  %2554 = vmatpush1.msra.mxu1 %v2258_v33  ;;  %7880 = vst [vmem:[#allocation62_spill] sm:$0xff] %v6525_v46  ;;  %7881 = vst [vmem:[#allocation63_spill] sm:$0xff] %v6529_v47  ;;  %v6531_v62 = vld [vmem:[#allocation10 + $0x270] sm:$0xff]  ;;  %v6535_v33 = vld [vmem:[#allocation10 + $0x248] sm:$0xff] }
 0x76b   : > { %2442 = vmatprep.subr.mxu0 %v2253_v4  ;;  %2555 = vmatprep.subr.mxu1 %v2255_v5  ;;  %7882 = vst [vmem:[#allocation65_spill] sm:$0xff] %v6531_v62  ;;  %7883 = vst [vmem:[#allocation64_spill] sm:$0xff] %v6535_v33  ;;  %v6537_v4 = vld [vmem:[#allocation10 + $0x258] sm:$0xff]  ;;  %v6541_v5 = vld [vmem:[#allocation10 + $0x240] sm:$0xff] }
 0x76c   : > { %2443 = vmatpush1.msra.mxu0 %v2252_v28  ;;  %2476 = vmatprep.mubr.f32.mxu0 %v7862_v10  ;;  %7884 = vst [vmem:[#allocation66_spill] sm:$0xff] %v6537_v4  ;;  %7885 = vst [vmem:[#allocation31_spill] sm:$0xff] %v6541_v5  ;;  %v6543_v28 = vld [vmem:[#allocation10 + $0x250] sm:$0xff] }
 0x76d   : > { %2556 = vmatpush1.msra.mxu1 %v2254_v31  ;;  %2589 = vmatprep.mubr.f32.mxu1 %v7862_v10  ;;  %7886 = vst [vmem:[#allocation28_spill] sm:$0xff] %v6543_v28  ;;  %v6547_v31 = vld [vmem:[#allocation10 + $0x228] sm:$0xff] }
 0x76e   : > { %2477 = vmatmul.mubr.f32.vlgmr.msra.gmra.mxu0 %v7867_v32  ;;  %2590 = vmatmul.mubr.f32.vlgmr.msra.gmra.mxu1 %v7867_v32  ;;  %7887 = vst [vmem:[#allocation67_spill] sm:$0xff] %v6547_v31  ;;  %v6549_v32 = vld [vmem:[#allocation10 + $0x238] sm:$0xff] }
 0x76f   : > { %2482 = vmatprep.mubr.f32.mxu0 %v7862_v10  ;;  %2595 = vmatprep.mubr.f32.mxu1 %v7862_v10  ;;  %7888 = vst [vmem:[#allocation69_spill] sm:$0xff] %v6549_v32 }
 0x770   : > { %2678 = vmatprep.subr.mxu0 %v6379_v0  ;;  %2749 = vmatprep.subr.mxu1 %v6381_v1 }
 0x771   : > { %2750 = vmatpush1.msra.mxu1 %v6387_v30 }
 0x772   : > { %2483 = vmatmul.mubr.f32.gmra.mxu0 %v7868_v29  ;;  %2596 = vmatmul.mubr.f32.gmra.mxu1 %v7868_v29  ;;  %v6553_v29 = vld [vmem:[#allocation10 + $0x220] sm:$0xff] }
 0x773   : > { %2488 = vmatprep.mubr.f32.mxu0 %v7862_v10  ;;  %2601 = vmatprep.mubr.f32.mxu1 %v7862_v10  ;;  %7889 = vst [vmem:[#allocation68_spill] sm:$0xff] %v6553_v29 }
 0x774   : > { %2751 = vmatprep.subr.mxu1 %v6393_v3 }
 0x775   : > { %2752 = vmatpush1.msra.mxu1 %v6399_v16 }
 0x776   : > { %2489 = vmatmul.mubr.f32.gmra.mxu0 %v7869_v26  ;;  %2602 = vmatmul.mubr.f32.gmra.mxu1 %v7869_v26  ;;  %v6555_v26 = vld [vmem:[#allocation10 + $0x230] sm:$0xff] }
 0x777   : > { %2494 = vmatprep.mubr.f32.mxu0 %v7862_v10  ;;  %2607 = vmatprep.mubr.f32.mxu1 %v7862_v10  ;;  %7890 = vst [vmem:[#allocation70_spill] sm:$0xff] %v6555_v26 }
 0x778   : > { %2753 = vmatprep.subr.mxu1 %v6405_v11 }
 0x779   : > { %2754 = vmatpush1.msra.mxu1 %v6411_v2 }
 0x77a   : > { %2495 = vmatmul.mubr.f32.gmra.mxu0 %v7870_v8  ;;  %2608 = vmatmul.mubr.f32.gmra.mxu1 %v7870_v8  ;;  %v6559_v8 = vld [vmem:[#allocation10 + $0x208] sm:$0xff] }
 0x77b   : > { %2500 = vmatprep.mubr.f32.mxu0 %v7862_v10  ;;  %2613 = vmatprep.mubr.f32.mxu1 %v7862_v10  ;;  %7891 = vst [vmem:[#allocation52_spill] sm:$0xff] %v6559_v8 }
 0x77c   : > { %2755 = vmatprep.subr.mxu1 %v6417_v6 }
 0x77d   : > { %2756 = vmatpush1.msra.mxu1 %v6423_v48 }
 0x77e   : > { %2501 = vmatmul.mubr.f32.gmra.mxu0 %v7871_v25  ;;  %2614 = vmatmul.mubr.f32.gmra.mxu1 %v7871_v25  ;;  %v6561_v25 = vld [vmem:[#allocation10 + $0x218] sm:$0xff] }
 0x77f   : > { %2506 = vmatprep.mubr.f32.mxu0 %v7862_v10  ;;  %2619 = vmatprep.mubr.f32.mxu1 %v7862_v10  ;;  %7892 = vst [vmem:[#allocation54_spill] sm:$0xff] %v6561_v25 }
 0x780   : > { %2757 = vmatprep.subr.mxu1 %v6429_v9 }
 0x781   : > { %2758 = vmatpush1.msra.mxu1 %v6435_v39 }
 0x782   : > { %2507 = vmatmul.mubr.f32.gmra.mxu0 %v6269_v63  ;;  %2620 = vmatmul.mubr.f32.gmra.mxu1 %v6269_v63  ;;  %v6385_v63 = vld [vmem:[#allocation10 + $0x3e0] sm:$0xff] }
 0x783   : > { %2512 = vmatprep.mubr.f32.mxu0 %v7862_v10  ;;  %2625 = vmatprep.mubr.f32.mxu1 %v7862_v10 }
 0x784   : > { %2679 = vmatpush1.msra.mxu0 %v6385_v63  ;;  %2759 = vmatprep.subr.mxu1 %v6441_v15 }
 0x785   : > { %2760 = vmatpush1.msra.mxu1 %v6447_v13 }
 0x786   : > { %2513 = vmatmul.mubr.f32.gmra.mxu0 %v6345_v44  ;;  %2626 = vmatmul.mubr.f32.gmra.mxu1 %v6345_v44  ;;  %v6391_v44 = vld [vmem:[#allocation10 + $0x3c8] sm:$0xff] }
 0x787   : > { %2518 = vmatprep.mubr.f32.mxu0 %v7862_v10  ;;  %2631 = vmatprep.mubr.f32.mxu1 %v7862_v10 }
 0x788   : > { %2680 = vmatprep.subr.mxu0 %v6391_v44  ;;  %2761 = vmatprep.subr.mxu1 %v6453_v34 }
 0x789   : > { %2681 = vmatpush1.msra.mxu0 %v6397_v14  ;;  %2762 = vmatpush1.msra.mxu1 %v6457_v36 }
 0x78a   : > { %2682 = vmatprep.subr.mxu0 %v6403_v20  ;;  %2763 = vmatprep.subr.mxu1 %v6465_v38 }
 0x78b   : > { %2683 = vmatpush1.msra.mxu0 %v6409_v23  ;;  %2764 = vmatpush1.msra.mxu1 %v6471_v41 }
 0x78c   : > { %2684 = vmatprep.subr.mxu0 %v6415_v22  ;;  %2765 = vmatprep.subr.mxu1 %v6477_v43 }
 0x78d   : > { %2685 = vmatpush1.msra.mxu0 %v6421_v17  ;;  %2766 = vmatpush1.msra.mxu1 %v6483_v19 }
 0x78e   : > { %2686 = vmatprep.subr.mxu0 %v6427_v21  ;;  %2767 = vmatprep.subr.mxu1 %v6489_v50 }
 0x78f   : > { %2687 = vmatpush1.msra.mxu0 %v6433_v57  ;;  %2768 = vmatpush1.msra.mxu1 %v6495_v52 }
 0x790   : > { %2688 = vmatprep.subr.mxu0 %v6439_v7  ;;  %2769 = vmatprep.subr.mxu1 %v6501_v54 }
 0x791   : > { %2689 = vmatpush1.msra.mxu0 %v6445_v12  ;;  %2770 = vmatpush1.msra.mxu1 %v6507_v56 }
 0x792   : > { %2690 = vmatprep.subr.mxu0 %v6449_v18  ;;  %2771 = vmatprep.subr.mxu1 %v6513_v59 }
 0x793   : > { %2691 = vmatpush1.msra.mxu0 %v6455_v35  ;;  %2772 = vmatpush1.msra.mxu1 %v6519_v61 }
 0x794   : > { %2692 = vmatprep.subr.mxu0 %v6463_v37  ;;  %2773 = vmatprep.subr.mxu1 %v6525_v46 }
 0x795   : > { %2693 = vmatpush1.msra.mxu0 %v6469_v40  ;;  %2774 = vmatpush1.msra.mxu1 %v6531_v62  ;;  %v7897_v62 = vld [vmem:[#allocation76_spill] sm:$0xff] }
 0x796   : > { %2694 = vmatprep.subr.mxu0 %v6475_v42  ;;  %2775 = vmatprep.subr.mxu1 %v6537_v4 }
 0x797   : > { %2695 = vmatpush1.msra.mxu0 %v6481_v45  ;;  %2776 = vmatpush1.msra.mxu1 %v6543_v28  ;;  %v6565_v28 = vld [vmem:[#allocation10 + $0x200] sm:$0xff] }
 0x798   : > { %2696 = vmatprep.subr.mxu0 %v6487_v49  ;;  %2777 = vmatprep.subr.mxu1 %v6549_v32  ;;  %7893 = vst [vmem:[#allocation32_spill] sm:$0xff] %v6565_v28 }
 0x799   : > { %2697 = vmatpush1.msra.mxu0 %v6493_v51  ;;  %2778 = vmatpush1.msra.mxu1 %v6555_v26 }
 0x79a   : > { %2698 = vmatprep.subr.mxu0 %v6499_v53  ;;  %2779 = vmatprep.subr.mxu1 %v6561_v25 }
 0x79b   : > { %2699 = vmatpush1.msra.mxu0 %v6505_v55 }
 0x79c   : > { %2700 = vmatprep.subr.mxu0 %v6511_v58 }
 0x79d   : > { %2701 = vmatpush1.msra.mxu0 %v6517_v60 }
 0x79e   : > { %2702 = vmatprep.subr.mxu0 %v6523_v24 }
 0x79f   : > { %2703 = vmatpush1.msra.mxu0 %v6529_v47 }
 0x7a0   : > { %2704 = vmatprep.subr.mxu0 %v6535_v33  ;;  %v7896_v33 = vld [vmem:[#allocation77_spill] sm:$0xff] }
 0x7a1   : > { %2705 = vmatpush1.msra.mxu0 %v6541_v5 }
 0x7a2   : > { %2706 = vmatprep.subr.mxu0 %v6547_v31  ;;  %v6567_v31 = vld [vmem:[#allocation10 + $0x210] sm:$0xff] }
 0x7a3   : > { %2707 = vmatpush1.msra.mxu0 %v6553_v29  ;;  %7894 = vst [vmem:[#allocation33_spill] sm:$0xff] %v6567_v31  ;;  %2780 = vmatpush1.msra.mxu1 %v6567_v31  ;;  %v7895_v29 = vld [vmem:[#allocation75_spill] sm:$0xff]  ;;  %v7898_v31 = vld [vmem:[#allocation78_spill] sm:$0xff] }
 0x7a4   : > { %2708 = vmatprep.subr.mxu0 %v6559_v8  ;;  %2918 = vmatprep.subr.mxu1 %v6381_v1 }
 0x7a5   : > { %2709 = vmatpush1.msra.mxu0 %v6565_v28 }
 0x7a6   : > { %2847 = vmatprep.subr.mxu0 %v6379_v0 }
 0x80d   : > { %v2150_v26 = vpop.f32.mrf.mxu0  ;;  %v2221_v5 = vpop.f32.mrf.mxu1 }
 0x80e   : > { %v2226_v32 = vadd.f32 %v2150_v26, %v7895_v29  ;;  %v2228_v47 = vadd.f32 %v2221_v5, %v7897_v62 }
 0x80f   : > { %v2152_v4 = vpop.f32.mrf.mxu0  ;;  %v2223_v28 = vpop.f32.mrf.mxu1 }
 0x810   : > { %v2230_v8 = vmul.f32 0.5, %v2226_v32  ;;  %v2227_v25 = vadd.f32 %v2152_v4, %v7896_v33  ;;  %v2229_v24 = vadd.f32 %v2223_v28, %v7898_v31  ;;  %v7906_v31 = vld [vmem:[#allocation65_spill] sm:$0xff] }
 0x812   : > { %4524 = vtanh.f32 %v2230_v8  ;;  %v2234_v46 = vmul.f32 0.5, %v2227_v25  ;;  %v2239_v0 = vmul.f32 0.5, %v2229_v24  ;;  %v7905_v24 = vld [vmem:[#allocation63_spill] sm:$0xff]  ;;  %v7907_v8 = vld [vmem:[#allocation64_spill] sm:$0xff]  ;;  %v7908_v25 = vld [vmem:[#allocation66_spill] sm:$0xff] }
 0x814   : > { %4526 = vtanh.f32 %v2234_v46 }
 0x815   : > { %4528 = vtanh.f32 %v2228_v47 }
 0x816   : > { %4530 = vtanh.f32 %v2239_v0  ;;  %v2671_v0 = vld [vmem:[#allocation17 + $0x8] sm:$0xff] }
 0x81f   : > { %v4525_v61 = vpop.eup %4524 }
 0x820   : > { %v2232_v1 = vmul.f32 0.5, %v4525_v61  ;;  %v7904_v61 = vld [vmem:[#allocation62_spill] sm:$0xff] }
 0x821   : > { %v4527_v60 = vpop.eup %4526 }
 0x822   : > { %v2233_v59 = vadd.f32 0.5, %v2232_v1  ;;  %v2236_v29 = vmul.f32 0.5, %v4527_v60  ;;  %v4529_v26 = vpop.eup %4528  ;;  %v7900_v1 = vld [vmem:[#allocation58_spill] sm:$0xff]  ;;  %v7903_v60 = vld [vmem:[#allocation60_spill] sm:$0xff] }
 0x823   : > { %v4531_v46 = vpop.eup %4530 }
 0x824   : > { %v2237_v32 = vadd.f32 0.5, %v2236_v29  ;;  %v2244_v58 = vmul.f32 %v4529_v26, %v2233_v59  ;;  %v2241_v47 = vmul.f32 0.5, %v4531_v46  ;;  %v7902_v59 = vld [vmem:[#allocation61_spill] sm:$0xff]  ;;  %v7909_v29 = vld [vmem:[#allocation31_spill] sm:$0xff]  ;;  %v7910_v26 = vld [vmem:[#allocation28_spill] sm:$0xff] }
 0x825   : > { %v7914_v46 = vld [vmem:[#allocation70_spill] sm:$0xff] }
 0x826   : > { %v2243_v33 = vmul.f32 %v2237_v32, %v6342_v27  ;;  %v2242_v62 = vadd.f32 0.5, %v2241_v47  ;;  %v7899_v27 = vld [vmem:[#allocation56_spill] sm:$0xff]  ;;  %v7911_v32 = vld [vmem:[#allocation67_spill] sm:$0xff] }
 0x827   : > { %v7915_v47 = vld [vmem:[#allocation52_spill] sm:$0xff] }
 0x828   : > { %v2245_v4 = vadd.f32 %v2244_v58, %v2243_v33  ;;  %v7901_v58 = vld [vmem:[#allocation59_spill] sm:$0xff]  ;;  %v7912_v33 = vld [vmem:[#allocation69_spill] sm:$0xff] }
 0x82a   : > { %4532 = vtanh.f32 %v2245_v4  ;;  %2251 = vst [vmem:[#allocation19] sm:$0xff] %v2245_v4  ;;  %v7913_v4 = vld [vmem:[#allocation68_spill] sm:$0xff] }
 0x837   : > { %v4533_v5 = vpop.eup %4532 }
 0x838   : > { %v2247_v28 = vmul.f32 %v4533_v5, %v2242_v62  ;;  %v7916_v62 = vld [vmem:[#allocation54_spill] sm:$0xff]  ;;  %v7917_v5 = vld [vmem:[#allocation32_spill] sm:$0xff] }
 0x83a   : > { %2519 = vmatmul.mubr.f32.gmra.mxu0 %v2247_v28  ;;  %2250 = vst [vmem:[#allocation17] sm:$0xff] %v2247_v28  ;;  %2632 = vmatmul.mubr.f32.gmra.mxu1 %v2247_v28  ;;  %v7918_v28 = vld [vmem:[#allocation33_spill] sm:$0xff] }
 0x83b   : > { %2742 = vmatprep.mubr.f32.mxu0 %v7862_v10  ;;  %2813 = vmatprep.mubr.f32.mxu1 %v7862_v10 }
 0x83e   : > { %2743 = vmatmul.mubr.f32.vlgmr.msra.gmra.mxu0 %v2671_v0  ;;  %2814 = vmatmul.mubr.f32.vlgmr.msra.gmra.mxu1 %v2671_v0  ;;  %v7919_v0 = vld [vmem:[#allocation50_spill] sm:$0xff] }
 0x83f   : > { %2848 = vmatpush1.msra.mxu0 %v6385_v63  ;;  %2919 = vmatpush1.msra.mxu1 %v6387_v30 }
 0x840   : > { %2849 = vmatprep.subr.mxu0 %v6391_v44  ;;  %2920 = vmatprep.subr.mxu1 %v6393_v3 }
 0x841   : > { %2850 = vmatpush1.msra.mxu0 %v6397_v14  ;;  %2921 = vmatpush1.msra.mxu1 %v6399_v16 }
 0x842   : > { %2851 = vmatprep.subr.mxu0 %v6403_v20  ;;  %2922 = vmatprep.subr.mxu1 %v6405_v11 }
 0x843   : > { %2852 = vmatpush1.msra.mxu0 %v6409_v23  ;;  %2923 = vmatpush1.msra.mxu1 %v6411_v2 }
 0x844   : > { %2853 = vmatprep.subr.mxu0 %v6415_v22  ;;  %2924 = vmatprep.subr.mxu1 %v6417_v6 }
 0x845   : > { %2854 = vmatpush1.msra.mxu0 %v6421_v17  ;;  %2925 = vmatpush1.msra.mxu1 %v6423_v48 }
 0x846   : > { %2855 = vmatprep.subr.mxu0 %v6427_v21  ;;  %2926 = vmatprep.subr.mxu1 %v6429_v9 }
 0x847   : > { %2856 = vmatpush1.msra.mxu0 %v6433_v57  ;;  %2927 = vmatpush1.msra.mxu1 %v6435_v39 }
 0x848   : > { %2857 = vmatprep.subr.mxu0 %v6439_v7  ;;  %2928 = vmatprep.subr.mxu1 %v6441_v15 }
 0x849   : > { %2858 = vmatpush1.msra.mxu0 %v6445_v12  ;;  %2929 = vmatpush1.msra.mxu1 %v6447_v13 }
 0x84a   : > { %2859 = vmatprep.subr.mxu0 %v6449_v18  ;;  %2930 = vmatprep.subr.mxu1 %v6453_v34 }
 0x84b   : > { %2860 = vmatpush1.msra.mxu0 %v6455_v35  ;;  %2931 = vmatpush1.msra.mxu1 %v6457_v36 }
 0x84c   : > { %2861 = vmatprep.subr.mxu0 %v6463_v37  ;;  %2932 = vmatprep.subr.mxu1 %v6465_v38 }
 0x84d   : > { %2862 = vmatpush1.msra.mxu0 %v6469_v40  ;;  %2933 = vmatpush1.msra.mxu1 %v6471_v41 }
 0x84e   : > { %2863 = vmatprep.subr.mxu0 %v6475_v42  ;;  %2934 = vmatprep.subr.mxu1 %v6477_v43 }
 0x84f   : > { %2864 = vmatpush1.msra.mxu0 %v6481_v45  ;;  %2935 = vmatpush1.msra.mxu1 %v6483_v19 }
 0x850   : > { %2865 = vmatprep.subr.mxu0 %v6487_v49  ;;  %2936 = vmatprep.subr.mxu1 %v6489_v50 }
 0x851   : > { %2866 = vmatpush1.msra.mxu0 %v6493_v51  ;;  %2937 = vmatpush1.msra.mxu1 %v6495_v52 }
 0x852   : > { %2867 = vmatprep.subr.mxu0 %v6499_v53  ;;  %2938 = vmatprep.subr.mxu1 %v6501_v54 }
 0x853   : > { %2868 = vmatpush1.msra.mxu0 %v6505_v55  ;;  %2939 = vmatpush1.msra.mxu1 %v6507_v56 }
 0x854   : > { %2869 = vmatprep.subr.mxu0 %v7899_v27  ;;  %2940 = vmatprep.subr.mxu1 %v7900_v1 }
 0x855   : > { %2870 = vmatpush1.msra.mxu0 %v7901_v58  ;;  %2941 = vmatpush1.msra.mxu1 %v7902_v59 }
 0x856   : > { %2871 = vmatprep.subr.mxu0 %v7903_v60  ;;  %2942 = vmatprep.subr.mxu1 %v7904_v61 }
 0x857   : > { %2872 = vmatpush1.msra.mxu0 %v7905_v24  ;;  %2943 = vmatpush1.msra.mxu1 %v7906_v31 }
 0x858   : > { %2873 = vmatprep.subr.mxu0 %v7907_v8  ;;  %2944 = vmatprep.subr.mxu1 %v7908_v25 }
 0x859   : > { %2874 = vmatpush1.msra.mxu0 %v7909_v29  ;;  %2945 = vmatpush1.msra.mxu1 %v7910_v26 }
 0x85a   : > { %2875 = vmatprep.subr.mxu0 %v7911_v32  ;;  %2946 = vmatprep.subr.mxu1 %v7912_v33  ;;  %v7920_v32 = vld [vmem:[#allocation55_spill] sm:$0xff]  ;;  %v2478_v33 = vpop.f32.mrf.mxu0 }
 0x85b   : > { %2876 = vmatpush1.msra.mxu0 %v7913_v4  ;;  %2947 = vmatpush1.msra.mxu1 %v7914_v46  ;;  %v2591_v4 = vpop.f32.mrf.mxu1 }
 0x85c   : > { %2877 = vmatprep.subr.mxu0 %v7915_v47  ;;  %2948 = vmatprep.subr.mxu1 %v7916_v62  ;;  %v2480_v26 = vpop.f32.mrf.mxu0 }
 0x85d   : > { %2878 = vmatpush1.msra.mxu0 %v7917_v5  ;;  %2911 = vmatprep.mubr.f32.mxu0 %v7862_v10  ;;  %v2593_v46 = vpop.f32.mrf.mxu1 }
 0x85e   : > { %2949 = vmatpush1.msra.mxu1 %v7918_v28  ;;  %2982 = vmatprep.mubr.f32.mxu1 %v7862_v10  ;;  %v6646_v29 = vpop.f32.mrf.mxu0 }
 0x85f   : > { %3017 = vmatprep.subr.mxu0 %v7919_v0  ;;  %3088 = vmatprep.subr.mxu1 %v7920_v32  ;;  %7921 = vst [vmem:[#allocation34_spill] sm:$0xff] %v6646_v29  ;;  %v6648_v47 = vpop.f32.mrf.mxu1 }
 0x860   : > { %7922 = vst [vmem:[#allocation35_spill] sm:$0xff] %v6648_v47  ;;  %v6650_v62 = vpop.f32.mrf.mxu0 }
 0x861   : > { %7923 = vst [vmem:[#allocation36_spill] sm:$0xff] %v6650_v62  ;;  %v6652_v5 = vpop.f32.mrf.mxu1 }
 0x862   : > { %7924 = vst [vmem:[#allocation37_spill] sm:$0xff] %v6652_v5  ;;  %v6654_v25 = vpop.f32.mrf.mxu0 }
 0x863   : > { %7925 = vst [vmem:[#allocation38_spill] sm:$0xff] %v6654_v25  ;;  %v6656_v28 = vpop.f32.mrf.mxu1 }
 0x864   : > { %7926 = vst [vmem:[#allocation39_spill] sm:$0xff] %v6656_v28  ;;  %v6658_v10 = vpop.f32.mrf.mxu0 }
 0x865   : > { %7927 = vst [vmem:[#allocation40_spill] sm:$0xff] %v6658_v10  ;;  %v6660_v0 = vpop.f32.mrf.mxu1 }
 0x866   : > { %7928 = vst [vmem:[#allocation41_spill] sm:$0xff] %v6660_v0  ;;  %v6662_v32 = vpop.f32.mrf.mxu0 }
 0x867   : > { %7929 = vst [vmem:[#allocation42_spill] sm:$0xff] %v6662_v32  ;;  %v6664_v8 = vpop.f32.mrf.mxu1 }
 0x868   : > { %7930 = vst [vmem:[#allocation43_spill] sm:$0xff] %v6664_v8  ;;  %v6666_v31 = vpop.f32.mrf.mxu0 }
 0x869   : > { %7931 = vst [vmem:[#allocation44_spill] sm:$0xff] %v6666_v31  ;;  %v6668_v29 = vpop.f32.mrf.mxu1 }
 0x86a   : > { %7932 = vst [vmem:[#allocation45_spill] sm:$0xff] %v6668_v29  ;;  %v6670_v47 = vpop.f32.mrf.mxu0  ;;  %v2382_v29 = vld [vmem:[#allocation12 + $0x4] sm:$0xf] }
 0x86b   : > { %7933 = vst [vmem:[#allocation46_spill] sm:$0xff] %v6670_v47  ;;  %v6672_v62 = vpop.f32.mrf.mxu1 }
 0x86c   : > { %7934 = vst [vmem:[#allocation47_spill] sm:$0xff] %v6672_v62  ;;  %v6674_v5 = vpop.f32.mrf.mxu0 }
 0x86d   : > { %7935 = vst [vmem:[#allocation48_spill] sm:$0xff] %v6674_v5  ;;  %v6676_v25 = vpop.f32.mrf.mxu1  ;;  %v7945_v5 = vld [vmem:[#allocation51_spill] sm:$0xff] }
 0x86e   : > { %7936 = vst [vmem:[#allocation71_spill] sm:$0xff] %v6676_v25  ;;  %v6678_v28 = vpop.f32.mrf.mxu0  ;;  %v7946_v24 = vsub.s32 0, %v7945_v5 }
 0x86f   : > { %7937 = vst [vmem:[#allocation73_spill] sm:$0xff] %v6678_v28  ;;  %v6680_v10 = vpop.f32.mrf.mxu1 }
 0x870   : > { %7938 = vst [vmem:[#allocation72_spill] sm:$0xff] %v6680_v10  ;;  %v6682_v0 = vpop.f32.mrf.mxu0  ;;  %v6696_v25 = vrot.slane %v2382_v29, %v7946_v24 }
 0x871   : > { %7939 = vst [vmem:[#allocation74_spill] sm:$0xff] %v6682_v0  ;;  %v6684_v32 = vpop.f32.mrf.mxu1  ;;  %v7950_v0 = vsub.s32 1, %v7945_v5 }
 0x872   : > { %7940 = vst [vmem:[#allocation79_spill] sm:$0xff] %v6684_v32  ;;  %v6686_v8 = vpop.f32.mrf.mxu0  ;;  %7947 = vst [vmem:[#allocation75_spill] sm:$0xff] %v6696_v25 }
 0x873   : > { %7941 = vst [vmem:[#allocation30_spill] sm:$0xff] %v6686_v8  ;;  %v6688_v31 = vpop.f32.mrf.mxu1  ;;  %v6704_v32 = vrot.slane %v2382_v29, %v7950_v0 }
 0x874   : > { %7942 = vst [vmem:[#allocation29_spill] sm:$0xff] %v6688_v31  ;;  %v6690_v47 = vpop.f32.mrf.mxu0  ;;  %v2479_v31 = vadd.f32 %v2478_v33, %v6696_v25  ;;  %v7955_v33 = vsub.s32 3, %v7945_v5 }
 0x875   : > { %7943 = vst [vmem:[#allocation53_spill] sm:$0xff] %v6690_v47  ;;  %v6692_v62 = vpop.f32.mrf.mxu1  ;;  %7951 = vst [vmem:[#allocation78_spill] sm:$0xff] %v6704_v32  ;;  %v2481_v24 = vadd.f32 %v2480_v26, %v6704_v32 }
 0x876   : > { %7944 = vst [vmem:[#allocation49_spill] sm:$0xff] %v6692_v62  ;;  %v7954_v62 = vsub.s32 2, %v7945_v5  ;;  %v6719_v25 = vrot.slane %v2382_v29, %v7955_v33 }
 0x878   : > { %v6713_v60 = vrot.slane %v2382_v29, %v7954_v62  ;;  %v2594_v62 = vadd.f32 %v2593_v46, %v6719_v25 }
 0x87a   : > { %v2592_v0 = vadd.f32 %v2591_v4, %v6713_v60 }
 0x8fa   : > { %v6698_v28 = vpop.f32.mrf.mxu0  ;;  %v6700_v10 = vpop.f32.mrf.mxu1 }
 0x8fb   : > { %7948 = vst [vmem:[#allocation77_spill] sm:$0xff] %v6698_v28  ;;  %7949 = vst [vmem:[#allocation76_spill] sm:$0xff] %v6700_v10 }
 0x8fc   : > { %v6706_v8 = vpop.f32.mrf.mxu0  ;;  %v6709_v61 = vpop.f32.mrf.mxu1 }
 0x8fd   : > { %7952 = vst [vmem:[#allocation51_spill] sm:$0xff] %v6706_v8  ;;  %7953 = vst [vmem:[#allocation80_spill] sm:$0xff] %v6709_v61 }
 0x8fe   : > { %v2744_v47 = vpop.f32.mrf.mxu0  ;;  %v2815_v1 = vpop.f32.mrf.mxu1 }
 0x8ff   : > { %v2820_v28 = vadd.f32 %v2744_v47, %v2479_v31  ;;  %v2822_v61 = vadd.f32 %v2815_v1, %v2592_v0 }
 0x900   : > { %v2746_v59 = vpop.f32.mrf.mxu0  ;;  %v2817_v27 = vpop.f32.mrf.mxu1 }
 0x901   : > { %v2824_v10 = vmul.f32 0.5, %v2820_v28  ;;  %v2821_v58 = vadd.f32 %v2746_v59, %v2481_v24  ;;  %v2823_v26 = vadd.f32 %v2817_v27, %v2594_v62  ;;  %v7956_v62 = vld [vmem:[#allocation56_spill] sm:$0xff] }
 0x903   : > { %4534 = vtanh.f32 %v2824_v10  ;;  %v2828_v8 = vmul.f32 0.5, %v2821_v58  ;;  %v2833_v31 = vmul.f32 0.5, %v2823_v26  ;;  %v2673_v10 = vld [vmem:[#allocation19 + $0x8] sm:$0xff]  ;;  %v7957_v26 = vld [vmem:[#allocation58_spill] sm:$0xff] }
 0x905   : > { %4536 = vtanh.f32 %v2828_v8 }
 0x906   : > { %4538 = vtanh.f32 %v2822_v61 }
 0x907   : > { %4540 = vtanh.f32 %v2833_v31  ;;  %v7958_v31 = vld [vmem:[#allocation59_spill] sm:$0xff] }
 0x910   : > { %v4535_v47 = vpop.eup %4534 }
 0x911   : > { %v2826_v28 = vmul.f32 0.5, %v4535_v47  ;;  %v7959_v47 = vld [vmem:[#allocation61_spill] sm:$0xff] }
 0x912   : > { %v4537_v59 = vpop.eup %4536 }
 0x913   : > { %v2827_v24 = vadd.f32 0.5, %v2826_v28  ;;  %v2830_v4 = vmul.f32 0.5, %v4537_v59  ;;  %v4539_v5 = vpop.eup %4538  ;;  %v7960_v28 = vld [vmem:[#allocation60_spill] sm:$0xff]  ;;  %v7961_v59 = vld [vmem:[#allocation62_spill] sm:$0xff] }
 0x914   : > { %v4541_v8 = vpop.eup %4540 }
 0x915   : > { %v2831_v58 = vadd.f32 0.5, %v2830_v4  ;;  %v2838_v33 = vmul.f32 %v4539_v5, %v2827_v24  ;;  %v2835_v61 = vmul.f32 0.5, %v4541_v8  ;;  %v7962_v24 = vld [vmem:[#allocation63_spill] sm:$0xff]  ;;  %v7963_v4 = vld [vmem:[#allocation65_spill] sm:$0xff] }
 0x916   : > { %v7966_v5 = vld [vmem:[#allocation31_spill] sm:$0xff]  ;;  %v7969_v8 = vld [vmem:[#allocation69_spill] sm:$0xff] }
 0x917   : > { %v2837_v29 = vmul.f32 %v2831_v58, %v2673_v10  ;;  %v2836_v27 = vadd.f32 0.5, %v2835_v61  ;;  %v7964_v10 = vld [vmem:[#allocation64_spill] sm:$0xff]  ;;  %v7965_v58 = vld [vmem:[#allocation66_spill] sm:$0xff] }
 0x918   : > { %v7970_v61 = vld [vmem:[#allocation68_spill] sm:$0xff] }
 0x919   : > { %v6722_v1 = vadd.f32 %v2838_v33, %v2837_v29  ;;  %v7967_v29 = vld [vmem:[#allocation28_spill] sm:$0xff]  ;;  %v7968_v33 = vld [vmem:[#allocation67_spill] sm:$0xff] }
 0x91b   : > { %4542 = vtanh.f32 %v6722_v1 }
 0x928   : > { %v4543_v46 = vpop.eup %4542 }
 0x929   : > { %v2841_v0 = vmul.f32 %v4543_v46, %v2836_v27  ;;  %v7971_v27 = vld [vmem:[#allocation70_spill] sm:$0xff]  ;;  %v7972_v46 = vld [vmem:[#allocation52_spill] sm:$0xff] }
 0x92b   : > { %2842 = vst [vmem:[%s5341_s3] sm:$0xff] %v2841_v0  ;;  %2912 = vmatmul.mubr.f32.vlgmr.msra.gmra.mxu0 %v2841_v0  ;;  %2983 = vmatmul.mubr.f32.vlgmr.msra.gmra.mxu1 %v2841_v0  ;;  %v7973_v0 = vld [vmem:[#allocation54_spill] sm:$0xff] }
 0x92c   : > { %3018 = vmatpush1.msra.mxu0 %v6385_v63  ;;  %3089 = vmatpush1.msra.mxu1 %v6387_v30 }
 0x92d   : > { %3019 = vmatprep.subr.mxu0 %v6391_v44  ;;  %3090 = vmatprep.subr.mxu1 %v6393_v3 }
 0x92e   : > { %3020 = vmatpush1.msra.mxu0 %v6397_v14  ;;  %3091 = vmatpush1.msra.mxu1 %v6399_v16 }
 0x92f   : > { %3021 = vmatprep.subr.mxu0 %v6403_v20  ;;  %3092 = vmatprep.subr.mxu1 %v6405_v11 }
 0x930   : > { %3022 = vmatpush1.msra.mxu0 %v6409_v23  ;;  %3093 = vmatpush1.msra.mxu1 %v6411_v2 }
 0x931   : > { %3023 = vmatprep.subr.mxu0 %v6415_v22  ;;  %3094 = vmatprep.subr.mxu1 %v6417_v6 }
 0x932   : > { %3024 = vmatpush1.msra.mxu0 %v6421_v17  ;;  %3095 = vmatpush1.msra.mxu1 %v6423_v48 }
 0x933   : > { %3025 = vmatprep.subr.mxu0 %v6427_v21  ;;  %3096 = vmatprep.subr.mxu1 %v6429_v9 }
 0x934   : > { %3026 = vmatpush1.msra.mxu0 %v6433_v57  ;;  %3097 = vmatpush1.msra.mxu1 %v6435_v39 }
 0x935   : > { %3027 = vmatprep.subr.mxu0 %v6439_v7  ;;  %3098 = vmatprep.subr.mxu1 %v6441_v15 }
 0x936   : > { %3028 = vmatpush1.msra.mxu0 %v6445_v12  ;;  %3099 = vmatpush1.msra.mxu1 %v6447_v13 }
 0x937   : > { %3029 = vmatprep.subr.mxu0 %v6449_v18  ;;  %3100 = vmatprep.subr.mxu1 %v6453_v34 }
 0x938   : > { %3030 = vmatpush1.msra.mxu0 %v6455_v35  ;;  %3101 = vmatpush1.msra.mxu1 %v6457_v36 }
 0x939   : > { %3031 = vmatprep.subr.mxu0 %v6463_v37  ;;  %3102 = vmatprep.subr.mxu1 %v6465_v38 }
 0x93a   : > { %3032 = vmatpush1.msra.mxu0 %v6469_v40  ;;  %3103 = vmatpush1.msra.mxu1 %v6471_v41 }
 0x93b   : > { %3033 = vmatprep.subr.mxu0 %v6475_v42  ;;  %3104 = vmatprep.subr.mxu1 %v6477_v43 }
 0x93c   : > { %3034 = vmatpush1.msra.mxu0 %v6481_v45  ;;  %3105 = vmatpush1.msra.mxu1 %v6483_v19 }
 0x93d   : > { %3035 = vmatprep.subr.mxu0 %v6487_v49  ;;  %3106 = vmatprep.subr.mxu1 %v6489_v50 }
 0x93e   : > { %3036 = vmatpush1.msra.mxu0 %v6493_v51  ;;  %3107 = vmatpush1.msra.mxu1 %v6495_v52 }
 0x93f   : > { %3037 = vmatprep.subr.mxu0 %v6499_v53  ;;  %3108 = vmatprep.subr.mxu1 %v6501_v54 }
 0x940   : > { %3038 = vmatpush1.msra.mxu0 %v6505_v55  ;;  %3109 = vmatpush1.msra.mxu1 %v6507_v56 }
 0x941   : > { %3039 = vmatprep.subr.mxu0 %v7956_v62  ;;  %3110 = vmatprep.subr.mxu1 %v7957_v26 }
 0x942   : > { %3040 = vmatpush1.msra.mxu0 %v7958_v31  ;;  %3111 = vmatpush1.msra.mxu1 %v7959_v47 }
 0x943   : > { %3041 = vmatprep.subr.mxu0 %v7960_v28  ;;  %3112 = vmatprep.subr.mxu1 %v7961_v59  ;;  %v7982_v28 = vld [vmem:[#allocation35_spill] sm:$0xff] }
 0x944   : > { %3042 = vmatpush1.msra.mxu0 %v7962_v24  ;;  %3113 = vmatpush1.msra.mxu1 %v7963_v4  ;;  %v7974_v4 = vld [vmem:[#allocation32_spill] sm:$0xff]  ;;  %v2598_v47 = vadd.f32 %v7982_v28, %v6713_v60 }
 0x945   : > { %3043 = vmatprep.subr.mxu0 %v7964_v10  ;;  %3114 = vmatprep.subr.mxu1 %v7965_v58  ;;  %v7975_v10 = vmov 0.0   ;;  %v7976_v58 = vld [vmem:[#allocation33_spill] sm:$0xff] }
 0x946   : > { %3044 = vmatpush1.msra.mxu0 %v7966_v5  ;;  %3115 = vmatpush1.msra.mxu1 %v7967_v29  ;;  %v7977_v29 = vld [vmem:[#allocation50_spill] sm:$0xff] }
 0x947   : > { %3045 = vmatprep.subr.mxu0 %v7968_v33  ;;  %3116 = vmatprep.subr.mxu1 %v7969_v8  ;;  %v7978_v33 = vld [vmem:[#allocation55_spill] sm:$0xff] }
 0x948   : > { %3046 = vmatpush1.msra.mxu0 %v7970_v61  ;;  %3117 = vmatpush1.msra.mxu1 %v7971_v27  ;;  %v7979_v8 = vld [vmem:[#allocation75_spill] sm:$0xff]  ;;  %v7980_v61 = vld [vmem:[#allocation34_spill] sm:$0xff] }
 0x949   : > { %3047 = vmatprep.subr.mxu0 %v7972_v46  ;;  %3118 = vmatprep.subr.mxu1 %v7973_v0  ;;  %v2485_v5 = vadd.f32 %v7980_v61, %v7979_v8  ;;  %v7981_v46 = vld [vmem:[#allocation36_spill] sm:$0xff]  ;;  %v7983_v61 = vld [vmem:[#allocation37_spill] sm:$0xff] }
 0x94a   : > { %3048 = vmatpush1.msra.mxu0 %v7974_v4  ;;  %3081 = vmatprep.mubr.f32.mxu0 %v7975_v10  ;;  %v2487_v24 = vadd.f32 %v7981_v46, %v6704_v32  ;;  %v2600_v8 = vadd.f32 %v7983_v61, %v6719_v25  ;;  %v7997_v61 = vld [vmem:[#allocation67_spill] sm:$0xff] }
 0x94b   : > { %3119 = vmatpush1.msra.mxu1 %v7976_v58  ;;  %3152 = vmatprep.mubr.f32.mxu1 %v7975_v10 }
 0x94c   : > { %3187 = vmatprep.subr.mxu0 %v7977_v29  ;;  %3258 = vmatprep.subr.mxu1 %v7978_v33 }
 0x9eb   : > { %v2913_v27 = vpop.f32.mrf.mxu0  ;;  %v2984_v59 = vpop.f32.mrf.mxu1 }
 0x9ec   : > { %v2989_v0 = vadd.f32 %v2913_v27, %v2485_v5  ;;  %v2991_v10 = vadd.f32 %v2984_v59, %v2598_v47 }
 0x9ed   : > { %v2915_v4 = vpop.f32.mrf.mxu0  ;;  %v2986_v33 = vpop.f32.mrf.mxu1 }
 0x9ee   : > { %v2993_v58 = vmul.f32 0.5, %v2989_v0  ;;  %v2990_v31 = vadd.f32 %v2915_v4, %v2487_v24  ;;  %v2992_v26 = vadd.f32 %v2986_v33, %v2600_v8  ;;  %v7994_v33 = vld [vmem:[#allocation66_spill] sm:$0xff]  ;;  %v7995_v8 = vld [vmem:[#allocation31_spill] sm:$0xff]  ;;  %v7996_v0 = vld [vmem:[#allocation28_spill] sm:$0xff] }
 0x9f0   : > { %4544 = vtanh.f32 %v2993_v58  ;;  %v2997_v29 = vmul.f32 0.5, %v2990_v31  ;;  %v3002_v62 = vmul.f32 0.5, %v2992_v26 }
 0x9f2   : > { %4546 = vtanh.f32 %v2997_v29 }
 0x9f3   : > { %4548 = vtanh.f32 %v2991_v10 }
 0x9f4   : > { %4550 = vtanh.f32 %v3002_v62  ;;  %v7993_v62 = vld [vmem:[#allocation64_spill] sm:$0xff] }
 0x9fd   : > { %v4545_v46 = vpop.eup %4544 }
 0x9fe   : > { %v2995_v5 = vmul.f32 0.5, %v4545_v46  ;;  %v7998_v46 = vld [vmem:[#allocation69_spill] sm:$0xff] }
 0x9ff   : > { %v4547_v27 = vpop.eup %4546 }
 0xa00   : > { %v2996_v32 = vadd.f32 0.5, %v2995_v5  ;;  %v2999_v56 = vmul.f32 0.5, %v4547_v27  ;;  %v4549_v28 = vpop.eup %4548  ;;  %v7999_v5 = vld [vmem:[#allocation68_spill] sm:$0xff]  ;;  %v8000_v27 = vld [vmem:[#allocation70_spill] sm:$0xff] }
 0xa01   : > { %v4551_v59 = vpop.eup %4550 }
 0xa02   : > { %v3000_v24 = vadd.f32 0.5, %v2999_v56  ;;  %v3007_v4 = vmul.f32 %v4549_v28, %v2996_v32  ;;  %v3004_v10 = vmul.f32 0.5, %v4551_v59  ;;  %v7990_v56 = vld [vmem:[#allocation62_spill] sm:$0xff]  ;;  %v7991_v32 = vld [vmem:[#allocation63_spill] sm:$0xff]  ;;  %v8001_v28 = vld [vmem:[#allocation52_spill] sm:$0xff] }
 0xa03   : > { %v8005_v59 = vld [vmem:[#allocation33_spill] sm:$0xff] }
 0xa04   : > { %v3006_v31 = vmul.f32 %v3000_v24, %v6722_v1  ;;  %v3005_v58 = vadd.f32 0.5, %v3004_v10  ;;  %v7992_v1 = vld [vmem:[#allocation65_spill] sm:$0xff]  ;;  %v8002_v24 = vld [vmem:[#allocation54_spill] sm:$0xff] }
 0xa05   : > { %v8006_v10 = vld [vmem:[#allocation50_spill] sm:$0xff] }
 0xa06   : > { %v6801_v47 = vadd.f32 %v3007_v4, %v3006_v31  ;;  %v8003_v4 = vld [vmem:[#allocation32_spill] sm:$0xff]  ;;  %v8004_v31 = vmov 0.0  }
 0xa08   : > { %4552 = vtanh.f32 %v6801_v47 }
 0xa15   : > { %v4553_v26 = vpop.eup %4552 }
 0xa16   : > { %v3010_v29 = vmul.f32 %v4553_v26, %v3005_v58  ;;  %v8007_v58 = vld [vmem:[#allocation55_spill] sm:$0xff] }
 0xa17   : > { %v8008_v26 = vld [vmem:[#allocation75_spill] sm:$0xff] }
 0xa18   : > { %4290 = vst [vmem:[%s5341_s3 + $0x8] sm:$0xff] %v3010_v29  ;;  %3082 = vmatmul.mubr.f32.vlgmr.msra.gmra.mxu0 %v3010_v29  ;;  %3153 = vmatmul.mubr.f32.vlgmr.msra.gmra.mxu1 %v3010_v29  ;;  %v8009_v29 = vld [vmem:[#allocation38_spill] sm:$0xff] }
 0xa19   : > { %3188 = vmatpush1.msra.mxu0 %v6385_v63  ;;  %3259 = vmatpush1.msra.mxu1 %v6387_v30  ;;  %v7984_v63 = vld [vmem:[#allocation57_spill] sm:$0xff]  ;;  %v7985_v30 = vld [vmem:[#allocation56_spill] sm:$0xff] }
 0xa1a   : > { %3189 = vmatprep.subr.mxu0 %v6391_v44  ;;  %3260 = vmatprep.subr.mxu1 %v6393_v3  ;;  %v7986_v44 = vld [vmem:[#allocation58_spill] sm:$0xff]  ;;  %v7987_v3 = vld [vmem:[#allocation59_spill] sm:$0xff] }
 0xa1b   : > { %3190 = vmatpush1.msra.mxu0 %v6397_v14  ;;  %3261 = vmatpush1.msra.mxu1 %v6399_v16  ;;  %v7988_v14 = vld [vmem:[#allocation61_spill] sm:$0xff]  ;;  %v7989_v16 = vld [vmem:[#allocation60_spill] sm:$0xff] }
 0xa1c   : > { %3191 = vmatprep.subr.mxu0 %v6403_v20  ;;  %3262 = vmatprep.subr.mxu1 %v6405_v11 }
 0xa1d   : > { %3192 = vmatpush1.msra.mxu0 %v6409_v23  ;;  %3263 = vmatpush1.msra.mxu1 %v6411_v2 }
 0xa1e   : > { %3193 = vmatprep.subr.mxu0 %v6415_v22  ;;  %3264 = vmatprep.subr.mxu1 %v6417_v6 }
 0xa1f   : > { %3194 = vmatpush1.msra.mxu0 %v6421_v17  ;;  %3265 = vmatpush1.msra.mxu1 %v6423_v48 }
 0xa20   : > { %3195 = vmatprep.subr.mxu0 %v6427_v21  ;;  %3266 = vmatprep.subr.mxu1 %v6429_v9 }
 0xa21   : > { %3196 = vmatpush1.msra.mxu0 %v6433_v57  ;;  %3267 = vmatpush1.msra.mxu1 %v6435_v39 }
 0xa22   : > { %3197 = vmatprep.subr.mxu0 %v6439_v7  ;;  %3268 = vmatprep.subr.mxu1 %v6441_v15 }
 0xa23   : > { %3198 = vmatpush1.msra.mxu0 %v6445_v12  ;;  %3269 = vmatpush1.msra.mxu1 %v6447_v13 }
 0xa24   : > { %3199 = vmatprep.subr.mxu0 %v6449_v18  ;;  %3270 = vmatprep.subr.mxu1 %v6453_v34 }
 0xa25   : > { %3200 = vmatpush1.msra.mxu0 %v6455_v35  ;;  %3271 = vmatpush1.msra.mxu1 %v6457_v36 }
 0xa26   : > { %3201 = vmatprep.subr.mxu0 %v6463_v37  ;;  %3272 = vmatprep.subr.mxu1 %v6465_v38 }
 0xa27   : > { %3202 = vmatpush1.msra.mxu0 %v6469_v40  ;;  %3273 = vmatpush1.msra.mxu1 %v6471_v41 }
 0xa28   : > { %3203 = vmatprep.subr.mxu0 %v6475_v42  ;;  %3274 = vmatprep.subr.mxu1 %v6477_v43 }
 0xa29   : > { %3204 = vmatpush1.msra.mxu0 %v6481_v45  ;;  %3275 = vmatpush1.msra.mxu1 %v6483_v19 }
 0xa2a   : > { %3205 = vmatprep.subr.mxu0 %v6487_v49  ;;  %3276 = vmatprep.subr.mxu1 %v6489_v50 }
 0xa2b   : > { %3206 = vmatpush1.msra.mxu0 %v6493_v51  ;;  %3277 = vmatpush1.msra.mxu1 %v6495_v52 }
 0xa2c   : > { %3207 = vmatprep.subr.mxu0 %v6499_v53  ;;  %3278 = vmatprep.subr.mxu1 %v6501_v54 }
 0xa2d   : > { %3208 = vmatpush1.msra.mxu0 %v6505_v55  ;;  %3279 = vmatpush1.msra.mxu1 %v7984_v63 }
 0xa2e   : > { %3209 = vmatprep.subr.mxu0 %v7985_v30  ;;  %3280 = vmatprep.subr.mxu1 %v7986_v44 }
 0xa2f   : > { %3210 = vmatpush1.msra.mxu0 %v7987_v3  ;;  %3281 = vmatpush1.msra.mxu1 %v7988_v14 }
 0xa30   : > { %3211 = vmatprep.subr.mxu0 %v7989_v16  ;;  %3282 = vmatprep.subr.mxu1 %v7990_v56 }
 0xa31   : > { %3212 = vmatpush1.msra.mxu0 %v7991_v32  ;;  %3283 = vmatpush1.msra.mxu1 %v7992_v1 }
 0xa32   : > { %3213 = vmatprep.subr.mxu0 %v7993_v62  ;;  %3284 = vmatprep.subr.mxu1 %v7994_v33 }
 0xa33   : > { %3214 = vmatpush1.msra.mxu0 %v7995_v8  ;;  %3285 = vmatpush1.msra.mxu1 %v7996_v0  ;;  %v8012_v8 = vld [vmem:[#allocation39_spill] sm:$0xff] }
 0xa34   : > { %3215 = vmatprep.subr.mxu0 %v7997_v61  ;;  %3286 = vmatprep.subr.mxu1 %v7998_v46  ;;  %v8010_v46 = vld [vmem:[#allocation78_spill] sm:$0xff]  ;;  %v2604_v33 = vadd.f32 %v8012_v8, %v6713_v60 }
 0xa35   : > { %3216 = vmatpush1.msra.mxu0 %v7999_v5  ;;  %3287 = vmatpush1.msra.mxu1 %v8000_v27  ;;  %v2491_v5 = vadd.f32 %v8009_v29, %v8008_v26  ;;  %v8013_v29 = vld [vmem:[#allocation41_spill] sm:$0xff] }
 0xa36   : > { %3217 = vmatprep.subr.mxu0 %v8001_v28  ;;  %3288 = vmatprep.subr.mxu1 %v8002_v24  ;;  %v8011_v28 = vld [vmem:[#allocation40_spill] sm:$0xff]  ;;  %v2606_v26 = vadd.f32 %v8013_v29, %v6719_v25 }
 0xa37   : > { %3218 = vmatpush1.msra.mxu0 %v8003_v4  ;;  %3251 = vmatprep.mubr.f32.mxu0 %v8004_v31  ;;  %v2493_v61 = vadd.f32 %v8011_v28, %v8010_v46 }
 0xa38   : > { %3289 = vmatpush1.msra.mxu1 %v8005_v59  ;;  %3322 = vmatprep.mubr.f32.mxu1 %v8004_v31 }
 0xa39   : > { %3357 = vmatprep.subr.mxu0 %v8006_v10  ;;  %3428 = vmatprep.subr.mxu1 %v8007_v58 }
 0xad8   : > { %v3083_v27 = vpop.f32.mrf.mxu0  ;;  %v3154_v0 = vpop.f32.mrf.mxu1 }
 0xad9   : > { %v3159_v24 = vadd.f32 %v3083_v27, %v2491_v5  ;;  %v3161_v31 = vadd.f32 %v3154_v0, %v2604_v33 }
 0xada   : > { %v3085_v4 = vpop.f32.mrf.mxu0  ;;  %v3156_v58 = vpop.f32.mrf.mxu1 }
 0xadb   : > { %v3163_v59 = vmul.f32 0.5, %v3159_v24  ;;  %v3160_v62 = vadd.f32 %v3085_v4, %v2493_v61  ;;  %v3162_v1 = vadd.f32 %v3156_v58, %v2606_v26  ;;  %v6884_v26 = vld [vmem:[#allocation10 + $0x3e0] sm:$0xff] }
 0xadd   : > { %4554 = vtanh.f32 %v3163_v59  ;;  %v3167_v10 = vmul.f32 0.5, %v3160_v62  ;;  %v3172_v32 = vmul.f32 0.5, %v3162_v1 }
 0xadf   : > { %4556 = vtanh.f32 %v3167_v10  ;;  %v6899_v10 = vld [vmem:[#allocation10 + $0x3d0] sm:$0xff] }
 0xae0   : > { %4558 = vtanh.f32 %v3161_v31 }
 0xae1   : > { %4560 = vtanh.f32 %v3172_v32  ;;  %v6893_v32 = vld [vmem:[#allocation10 + $0x3d8] sm:$0xff] }
 0xaea   : > { %v4555_v28 = vpop.eup %4554 }
 0xaeb   : > { %v3165_v5 = vmul.f32 0.5, %v4555_v28 }
 0xaec   : > { %v4557_v27 = vpop.eup %4556 }
 0xaed   : > { %v3166_v46 = vadd.f32 0.5, %v3165_v5  ;;  %v3169_v56 = vmul.f32 0.5, %v4557_v27  ;;  %v4559_v8 = vpop.eup %4558 }
 0xaee   : > { %v4561_v0 = vpop.eup %4560 }
 0xaef   : > { %v3170_v61 = vadd.f32 0.5, %v3169_v56  ;;  %v3177_v24 = vmul.f32 %v4559_v8, %v3166_v46  ;;  %v3174_v4 = vmul.f32 0.5, %v4561_v0  ;;  %v6887_v56 = vld [vmem:[#allocation10 + $0x3f0] sm:$0xff]  ;;  %v6896_v46 = vld [vmem:[#allocation10 + $0x3c0] sm:$0xff] }
 0xaf1   : > { %v3176_v62 = vmul.f32 %v3170_v61, %v6801_v47  ;;  %v3175_v31 = vadd.f32 0.5, %v3174_v4  ;;  %v6890_v47 = vld [vmem:[#allocation10 + $0x3c8] sm:$0xff] }
 0xaf3   : > { %v6880_v33 = vadd.f32 %v3177_v24, %v3176_v62 }
 0xaf5   : > { %4562 = vtanh.f32 %v6880_v33 }
 0xb02   : > { %v4563_v1 = vpop.eup %4562 }
 0xb03   : > { %v3180_v59 = vmul.f32 %v4563_v1, %v3175_v31 }
 0xb05   : > { %4291 = vst [vmem:[%s5341_s3 + $0x10] sm:$0xff] %v3180_v59  ;;  %3252 = vmatmul.mubr.f32.vlgmr.msra.gmra.mxu0 %v3180_v59  ;;  %3323 = vmatmul.mubr.f32.vlgmr.msra.gmra.mxu1 %v3180_v59  ;;  %v6988_v59 = vld [vmem:[#allocation10 + $0x3b8] sm:$0xff] }
 0xb06   : > { %3358 = vmatpush1.msra.mxu0 %v6884_v26  ;;  %3429 = vmatpush1.msra.mxu1 %v6887_v56 }
 0xb07   : > { %3359 = vmatprep.subr.mxu0 %v6890_v47  ;;  %3430 = vmatprep.subr.mxu1 %v6893_v32 }
 0xb08   : > { %3360 = vmatpush1.msra.mxu0 %v6896_v46  ;;  %3431 = vmatpush1.msra.mxu1 %v6899_v10 }
 0xb09   : > { %3361 = vmatprep.subr.mxu0 %v6403_v20  ;;  %3432 = vmatprep.subr.mxu1 %v6405_v11  ;;  %v8014_v20 = vld [vmem:[#allocation62_spill] sm:$0xff]  ;;  %v8015_v11 = vld [vmem:[#allocation63_spill] sm:$0xff] }
 0xb0a   : > { %3362 = vmatpush1.msra.mxu0 %v6409_v23  ;;  %3433 = vmatpush1.msra.mxu1 %v6411_v2  ;;  %v8016_v23 = vld [vmem:[#allocation65_spill] sm:$0xff]  ;;  %v8017_v2 = vld [vmem:[#allocation64_spill] sm:$0xff] }
 0xb0b   : > { %3363 = vmatprep.subr.mxu0 %v6415_v22  ;;  %3434 = vmatprep.subr.mxu1 %v6417_v6  ;;  %v8018_v22 = vld [vmem:[#allocation66_spill] sm:$0xff]  ;;  %v8019_v6 = vld [vmem:[#allocation31_spill] sm:$0xff] }
 0xb0c   : > { %3364 = vmatpush1.msra.mxu0 %v6421_v17  ;;  %3435 = vmatpush1.msra.mxu1 %v6423_v48  ;;  %v8020_v17 = vld [vmem:[#allocation28_spill] sm:$0xff]  ;;  %v8021_v48 = vld [vmem:[#allocation67_spill] sm:$0xff] }
 0xb0d   : > { %3365 = vmatprep.subr.mxu0 %v6427_v21  ;;  %3436 = vmatprep.subr.mxu1 %v6429_v9  ;;  %v8022_v21 = vld [vmem:[#allocation69_spill] sm:$0xff]  ;;  %v8023_v9 = vld [vmem:[#allocation68_spill] sm:$0xff] }
 0xb0e   : > { %3366 = vmatpush1.msra.mxu0 %v6433_v57  ;;  %3437 = vmatpush1.msra.mxu1 %v6435_v39  ;;  %v8024_v57 = vld [vmem:[#allocation70_spill] sm:$0xff]  ;;  %v8025_v39 = vld [vmem:[#allocation52_spill] sm:$0xff] }
 0xb0f   : > { %3367 = vmatprep.subr.mxu0 %v6439_v7  ;;  %3438 = vmatprep.subr.mxu1 %v6441_v15  ;;  %v8026_v7 = vld [vmem:[#allocation54_spill] sm:$0xff]  ;;  %v8027_v15 = vld [vmem:[#allocation32_spill] sm:$0xff] }
 0xb10   : > { %3368 = vmatpush1.msra.mxu0 %v6445_v12  ;;  %3439 = vmatpush1.msra.mxu1 %v6447_v13  ;;  %v8028_v12 = vmov 0.0   ;;  %v8029_v13 = vld [vmem:[#allocation33_spill] sm:$0xff] }
 0xb11   : > { %3369 = vmatprep.subr.mxu0 %v6449_v18  ;;  %3440 = vmatprep.subr.mxu1 %v6453_v34  ;;  %v6960_v18 = vld [vmem:[#allocation10 + $0x3e8] sm:$0xff]  ;;  %v6963_v34 = vld [vmem:[#allocation10 + $0x3f8] sm:$0xff] }
 0xb12   : > { %3370 = vmatpush1.msra.mxu0 %v6455_v35  ;;  %3441 = vmatpush1.msra.mxu1 %v6457_v36  ;;  %8030 = vst [vmem:[#allocation34_spill] sm:$0xff] %v6960_v18  ;;  %8031 = vst [vmem:[#allocation36_spill] sm:$0xff] %v6963_v34  ;;  %v8032_v35 = vld [vmem:[#allocation75_spill] sm:$0xff]  ;;  %v8033_v36 = vld [vmem:[#allocation42_spill] sm:$0xff] }
 0xb13   : > { %3371 = vmatprep.subr.mxu0 %v6463_v37  ;;  %3442 = vmatprep.subr.mxu1 %v6465_v38  ;;  %v2497_v37 = vadd.f32 %v8033_v36, %v8032_v35  ;;  %v7036_v36 = vld [vmem:[#allocation10 + $0x338] sm:$0xff] }
 0xb14   : > { %3372 = vmatpush1.msra.mxu0 %v6469_v40  ;;  %3443 = vmatpush1.msra.mxu1 %v6471_v41  ;;  %v8034_v40 = vld [vmem:[#allocation78_spill] sm:$0xff]  ;;  %v8035_v41 = vld [vmem:[#allocation44_spill] sm:$0xff] }
 0xb15   : > { %3373 = vmatprep.subr.mxu0 %v6475_v42  ;;  %3444 = vmatprep.subr.mxu1 %v6477_v43  ;;  %v2499_v42 = vadd.f32 %v8035_v41, %v8034_v40  ;;  %v7045_v41 = vld [vmem:[#allocation10 + $0x308] sm:$0xff] }
 0xb16   : > { %3374 = vmatpush1.msra.mxu0 %v6481_v45  ;;  %3445 = vmatpush1.msra.mxu1 %v6483_v19 }
 0xb17   : > { %3375 = vmatprep.subr.mxu0 %v6487_v49  ;;  %3446 = vmatprep.subr.mxu1 %v6489_v50  ;;  %v8036_v49 = vld [vmem:[#allocation43_spill] sm:$0xff] }
 0xb18   : > { %3376 = vmatpush1.msra.mxu0 %v6493_v51  ;;  %3447 = vmatpush1.msra.mxu1 %v6495_v52  ;;  %v2610_v50 = vadd.f32 %v8036_v49, %v6713_v60  ;;  %v7060_v49 = vld [vmem:[#allocation10 + $0x2f8] sm:$0xff] }
 0xb19   : > { %3377 = vmatprep.subr.mxu0 %v6499_v53  ;;  %3448 = vmatprep.subr.mxu1 %v6501_v54 }
 0xb1a   : > { %3378 = vmatpush1.msra.mxu0 %v6505_v55  ;;  %3449 = vmatpush1.msra.mxu1 %v7984_v63  ;;  %v8037_v63 = vld [vmem:[#allocation45_spill] sm:$0xff] }
 0xb1b   : > { %3379 = vmatprep.subr.mxu0 %v7985_v30  ;;  %3450 = vmatprep.subr.mxu1 %v7986_v44  ;;  %v2612_v30 = vadd.f32 %v8037_v63, %v6719_v25  ;;  %v7081_v63 = vld [vmem:[#allocation10 + $0x2a8] sm:$0xff] }
 0xb1c   : > { %3380 = vmatpush1.msra.mxu0 %v7987_v3  ;;  %3451 = vmatpush1.msra.mxu1 %v7988_v14 }
 0xb1d   : > { %3381 = vmatprep.subr.mxu0 %v7989_v16  ;;  %3452 = vmatprep.subr.mxu1 %v8014_v20  ;;  %v6991_v20 = vld [vmem:[#allocation10 + $0x3a0] sm:$0xff] }
 0xb1e   : > { %3382 = vmatpush1.msra.mxu0 %v8015_v11  ;;  %3453 = vmatpush1.msra.mxu1 %v8016_v23  ;;  %v6994_v11 = vld [vmem:[#allocation10 + $0x3b0] sm:$0xff]  ;;  %v6997_v23 = vld [vmem:[#allocation10 + $0x388] sm:$0xff] }
 0xb1f   : > { %3383 = vmatprep.subr.mxu0 %v8017_v2  ;;  %3454 = vmatprep.subr.mxu1 %v8018_v22  ;;  %v7000_v2 = vld [vmem:[#allocation10 + $0x398] sm:$0xff]  ;;  %v7003_v22 = vld [vmem:[#allocation10 + $0x380] sm:$0xff] }
 0xb20   : > { %3384 = vmatpush1.msra.mxu0 %v8019_v6  ;;  %3455 = vmatpush1.msra.mxu1 %v8020_v17  ;;  %v7006_v6 = vld [vmem:[#allocation10 + $0x390] sm:$0xff]  ;;  %v7009_v17 = vld [vmem:[#allocation10 + $0x368] sm:$0xff] }
 0xb21   : > { %3385 = vmatprep.subr.mxu0 %v8021_v48  ;;  %3456 = vmatprep.subr.mxu1 %v8022_v21  ;;  %v7012_v48 = vld [vmem:[#allocation10 + $0x378] sm:$0xff]  ;;  %v7015_v21 = vld [vmem:[#allocation10 + $0x360] sm:$0xff] }
 0xb22   : > { %3386 = vmatpush1.msra.mxu0 %v8023_v9  ;;  %3457 = vmatpush1.msra.mxu1 %v8024_v57  ;;  %v7018_v9 = vld [vmem:[#allocation10 + $0x370] sm:$0xff]  ;;  %v7021_v57 = vld [vmem:[#allocation10 + $0x348] sm:$0xff] }
 0xb23   : > { %3387 = vmatprep.subr.mxu0 %v8025_v39  ;;  %3458 = vmatprep.subr.mxu1 %v8026_v7  ;;  %v7024_v39 = vld [vmem:[#allocation10 + $0x358] sm:$0xff]  ;;  %v7027_v7 = vld [vmem:[#allocation10 + $0x340] sm:$0xff] }
 0xb24   : > { %3388 = vmatpush1.msra.mxu0 %v8027_v15  ;;  %3421 = vmatprep.mubr.f32.mxu0 %v8028_v12  ;;  %v7030_v15 = vld [vmem:[#allocation10 + $0x350] sm:$0xff] }
 0xb25   : > { %3459 = vmatpush1.msra.mxu1 %v8029_v13  ;;  %3492 = vmatprep.mubr.f32.mxu1 %v8028_v12  ;;  %v7033_v13 = vld [vmem:[#allocation10 + $0x328] sm:$0xff] }
 0xb26   : > { %3527 = vmatprep.subr.mxu0 %v6960_v18  ;;  %3598 = vmatprep.subr.mxu1 %v6963_v34 }
 0xbc5   : > { %v3253_v38 = vpop.f32.mrf.mxu0  ;;  %v3324_v45 = vpop.f32.mrf.mxu1 }
 0xbc6   : > { %v3329_v43 = vadd.f32 %v3253_v38, %v2497_v37  ;;  %v3331_v53 = vadd.f32 %v3324_v45, %v2610_v50  ;;  %v7039_v37 = vld [vmem:[#allocation10 + $0x320] sm:$0xff]  ;;  %v7042_v38 = vld [vmem:[#allocation10 + $0x330] sm:$0xff] }
 0xbc7   : > { %v3255_v19 = vpop.f32.mrf.mxu0  ;;  %v3326_v55 = vpop.f32.mrf.mxu1  ;;  %v7054_v45 = vld [vmem:[#allocation10 + $0x310] sm:$0xff]  ;;  %v7063_v50 = vld [vmem:[#allocation10 + $0x2e0] sm:$0xff] }
 0xbc8   : > { %v3333_v51 = vmul.f32 0.5, %v3329_v43  ;;  %v3330_v52 = vadd.f32 %v3255_v19, %v2499_v42  ;;  %v3332_v44 = vadd.f32 %v3326_v55, %v2612_v30  ;;  %v7048_v42 = vld [vmem:[#allocation10 + $0x318] sm:$0xff]  ;;  %v7051_v43 = vld [vmem:[#allocation10 + $0x300] sm:$0xff]  ;;  %v7057_v19 = vld [vmem:[#allocation10 + $0x2e8] sm:$0xff] }
 0xbc9   : > { %v7078_v55 = vld [vmem:[#allocation10 + $0x2d0] sm:$0xff]  ;;  %v7084_v30 = vld [vmem:[#allocation10 + $0x2b8] sm:$0xff] }
 0xbca   : > { %4564 = vtanh.f32 %v3333_v51  ;;  %v3337_v54 = vmul.f32 0.5, %v3330_v52  ;;  %v3342_v3 = vmul.f32 0.5, %v3332_v44  ;;  %v7066_v51 = vld [vmem:[#allocation10 + $0x2f0] sm:$0xff]  ;;  %v7069_v52 = vld [vmem:[#allocation10 + $0x2c8] sm:$0xff]  ;;  %v7087_v44 = vld [vmem:[#allocation10 + $0x2a0] sm:$0xff] }
 0xbcc   : > { %4566 = vtanh.f32 %v3337_v54  ;;  %v7075_v54 = vld [vmem:[#allocation10 + $0x2c0] sm:$0xff] }
 0xbcd   : > { %4568 = vtanh.f32 %v3331_v53  ;;  %v7072_v53 = vld [vmem:[#allocation10 + $0x2d8] sm:$0xff] }
 0xbce   : > { %4570 = vtanh.f32 %v3342_v3  ;;  %v7090_v3 = vld [vmem:[#allocation10 + $0x2b0] sm:$0xff] }
 0xbcf   : > { %8038 = vst [vmem:[#allocation35_spill] sm:$0xff] %v7090_v3 }
 0xbd7   : > { %v4565_v14 = vpop.eup %4564 }
 0xbd8   : > { %v3335_v16 = vmul.f32 0.5, %v4565_v14  ;;  %v7093_v14 = vld [vmem:[#allocation10 + $0x288] sm:$0xff] }
 0xbd9   : > { %v4567_v58 = vpop.eup %4566  ;;  %8039 = vst [vmem:[#allocation37_spill] sm:$0xff] %v7093_v14 }
 0xbda   : > { %v3336_v29 = vadd.f32 0.5, %v3335_v16  ;;  %v3339_v28 = vmul.f32 0.5, %v4567_v58  ;;  %v4569_v5 = vpop.eup %4568  ;;  %v7096_v16 = vld [vmem:[#allocation10 + $0x298] sm:$0xff]  ;;  %v7099_v58 = vld [vmem:[#allocation10 + $0x280] sm:$0xff] }
 0xbdb   : > { %v4571_v62 = vpop.eup %4570  ;;  %8040 = vst [vmem:[#allocation57_spill] sm:$0xff] %v7096_v16  ;;  %8041 = vst [vmem:[#allocation56_spill] sm:$0xff] %v7099_v58 }
 0xbdc   : > { %v3340_v27 = vadd.f32 0.5, %v3339_v28  ;;  %v3347_v8 = vmul.f32 %v4569_v5, %v3336_v29  ;;  %v3344_v0 = vmul.f32 0.5, %v4571_v62  ;;  %v7102_v29 = vld [vmem:[#allocation10 + $0x290] sm:$0xff]  ;;  %v7105_v28 = vld [vmem:[#allocation10 + $0x268] sm:$0xff]  ;;  %v7108_v5 = vld [vmem:[#allocation10 + $0x278] sm:$0xff] }
 0xbdd   : > { %8042 = vst [vmem:[#allocation58_spill] sm:$0xff] %v7102_v29  ;;  %8043 = vst [vmem:[#allocation59_spill] sm:$0xff] %v7105_v28  ;;  %v7120_v62 = vld [vmem:[#allocation10 + $0x258] sm:$0xff] }
 0xbde   : > { %v3346_v61 = vmul.f32 %v3340_v27, %v6880_v33  ;;  %v3345_v4 = vadd.f32 0.5, %v3344_v0  ;;  %v6985_v33 = vld [vmem:[#allocation10 + $0x3a8] sm:$0xff]  ;;  %8044 = vst [vmem:[#allocation61_spill] sm:$0xff] %v7108_v5  ;;  %v7111_v27 = vld [vmem:[#allocation10 + $0x260] sm:$0xff]  ;;  %8048 = vst [vmem:[#allocation38_spill] sm:$0xff] %v7120_v62 }
 0xbdf   : > { %8045 = vst [vmem:[#allocation60_spill] sm:$0xff] %v7111_v27  ;;  %v7123_v0 = vld [vmem:[#allocation10 + $0x240] sm:$0xff] }
 0xbe0   : > { %v6975_v24 = vadd.f32 %v3347_v8, %v3346_v61  ;;  %v7114_v8 = vld [vmem:[#allocation10 + $0x270] sm:$0xff]  ;;  %v7117_v61 = vld [vmem:[#allocation10 + $0x248] sm:$0xff]  ;;  %8049 = vst [vmem:[#allocation40_spill] sm:$0xff] %v7123_v0 }
 0xbe1   : > { %8046 = vst [vmem:[#allocation50_spill] sm:$0xff] %v7114_v8  ;;  %8047 = vst [vmem:[#allocation55_spill] sm:$0xff] %v7117_v61 }
 0xbe2   : > { %4572 = vtanh.f32 %v6975_v24 }
 0xbef   : > { %v4573_v31 = vpop.eup %4572 }
 0xbf0   : > { %v3350_v1 = vmul.f32 %v4573_v31, %v3345_v4  ;;  %v7126_v4 = vld [vmem:[#allocation10 + $0x250] sm:$0xff]  ;;  %v7129_v31 = vld [vmem:[#allocation10 + $0x228] sm:$0xff] }
 0xbf1   : > { %8050 = vst [vmem:[#allocation39_spill] sm:$0xff] %v7126_v4  ;;  %8051 = vst [vmem:[#allocation41_spill] sm:$0xff] %v7129_v31 }
 0xbf2   : > { %4292 = vst [vmem:[%s5341_s3 + $0x18] sm:$0xff] %v3350_v1  ;;  %3422 = vmatmul.mubr.f32.vlgmr.msra.gmra.mxu0 %v3350_v1  ;;  %3493 = vmatmul.mubr.f32.vlgmr.msra.gmra.mxu1 %v3350_v1  ;;  %v7132_v1 = vld [vmem:[#allocation10 + $0x238] sm:$0xff] }
 0xbf3   : > { %3528 = vmatpush1.msra.mxu0 %v6884_v26  ;;  %3599 = vmatpush1.msra.mxu1 %v6887_v56  ;;  %8052 = vst [vmem:[#allocation62_spill] sm:$0xff] %v7132_v1 }
 0xbf4   : > { %3529 = vmatprep.subr.mxu0 %v6890_v47  ;;  %3600 = vmatprep.subr.mxu1 %v6893_v32 }
 0xbf5   : > { %3530 = vmatpush1.msra.mxu0 %v6896_v46  ;;  %3601 = vmatpush1.msra.mxu1 %v6899_v10 }
 0xbf6   : > { %3531 = vmatprep.subr.mxu0 %v6985_v33  ;;  %3602 = vmatprep.subr.mxu1 %v6988_v59 }
 0xbf7   : > { %3532 = vmatpush1.msra.mxu0 %v6991_v20  ;;  %3603 = vmatpush1.msra.mxu1 %v6994_v11 }
 0xbf8   : > { %3533 = vmatprep.subr.mxu0 %v6997_v23  ;;  %3604 = vmatprep.subr.mxu1 %v7000_v2 }
 0xbf9   : > { %3534 = vmatpush1.msra.mxu0 %v7003_v22  ;;  %3605 = vmatpush1.msra.mxu1 %v7006_v6 }
 0xbfa   : > { %3535 = vmatprep.subr.mxu0 %v7009_v17  ;;  %3606 = vmatprep.subr.mxu1 %v7012_v48 }
 0xbfb   : > { %3536 = vmatpush1.msra.mxu0 %v7015_v21  ;;  %3607 = vmatpush1.msra.mxu1 %v7018_v9 }
 0xbfc   : > { %3537 = vmatprep.subr.mxu0 %v7021_v57  ;;  %3608 = vmatprep.subr.mxu1 %v7024_v39 }
 0xbfd   : > { %3538 = vmatpush1.msra.mxu0 %v7027_v7  ;;  %3609 = vmatpush1.msra.mxu1 %v7030_v15 }
 0xbfe   : > { %3539 = vmatprep.subr.mxu0 %v7033_v13  ;;  %3610 = vmatprep.subr.mxu1 %v7036_v36 }
 0xbff   : > { %3540 = vmatpush1.msra.mxu0 %v7039_v37  ;;  %3611 = vmatpush1.msra.mxu1 %v7042_v38 }
 0xc00   : > { %3541 = vmatprep.subr.mxu0 %v7045_v41  ;;  %3612 = vmatprep.subr.mxu1 %v7048_v42 }
 0xc01   : > { %3542 = vmatpush1.msra.mxu0 %v7051_v43  ;;  %3613 = vmatpush1.msra.mxu1 %v7054_v45 }
 0xc02   : > { %3543 = vmatprep.subr.mxu0 %v7057_v19  ;;  %3614 = vmatprep.subr.mxu1 %v7060_v49 }
 0xc03   : > { %3544 = vmatpush1.msra.mxu0 %v7063_v50  ;;  %3615 = vmatpush1.msra.mxu1 %v7066_v51 }
 0xc04   : > { %3545 = vmatprep.subr.mxu0 %v7069_v52  ;;  %3616 = vmatprep.subr.mxu1 %v7072_v53 }
 0xc05   : > { %3546 = vmatpush1.msra.mxu0 %v7075_v54  ;;  %3617 = vmatpush1.msra.mxu1 %v7078_v55 }
 0xc06   : > { %3547 = vmatprep.subr.mxu0 %v7081_v63  ;;  %3618 = vmatprep.subr.mxu1 %v7084_v30 }
 0xc07   : > { %3548 = vmatpush1.msra.mxu0 %v7087_v44  ;;  %3619 = vmatpush1.msra.mxu1 %v7090_v3 }
 0xc08   : > { %3549 = vmatprep.subr.mxu0 %v7093_v14  ;;  %3620 = vmatprep.subr.mxu1 %v7096_v16 }
 0xc09   : > { %3550 = vmatpush1.msra.mxu0 %v7099_v58  ;;  %3621 = vmatpush1.msra.mxu1 %v7102_v29 }
 0xc0a   : > { %3551 = vmatprep.subr.mxu0 %v7105_v28  ;;  %3622 = vmatprep.subr.mxu1 %v7108_v5  ;;  %v8061_v28 = vld [vmem:[#allocation47_spill] sm:$0xff] }
 0xc0b   : > { %3552 = vmatpush1.msra.mxu0 %v7111_v27  ;;  %3623 = vmatpush1.msra.mxu1 %v7114_v8  ;;  %v2616_v29 = vadd.f32 %v8061_v28, %v6713_v60 }
 0xc0c   : > { %3553 = vmatprep.subr.mxu0 %v7117_v61  ;;  %3624 = vmatprep.subr.mxu1 %v7120_v62  ;;  %v7135_v61 = vld [vmem:[#allocation10 + $0x220] sm:$0xff]  ;;  %v7138_v62 = vld [vmem:[#allocation10 + $0x230] sm:$0xff] }
 0xc0d   : > { %3554 = vmatpush1.msra.mxu0 %v7123_v0  ;;  %3625 = vmatpush1.msra.mxu1 %v7126_v4  ;;  %8053 = vst [vmem:[#allocation63_spill] sm:$0xff] %v7135_v61  ;;  %8054 = vst [vmem:[#allocation65_spill] sm:$0xff] %v7138_v62  ;;  %v7141_v0 = vld [vmem:[#allocation10 + $0x208] sm:$0xff]  ;;  %v7144_v4 = vld [vmem:[#allocation10 + $0x218] sm:$0xff] }
 0xc0e   : > { %3555 = vmatprep.subr.mxu0 %v7129_v31  ;;  %3626 = vmatprep.subr.mxu1 %v7132_v1  ;;  %8055 = vst [vmem:[#allocation64_spill] sm:$0xff] %v7141_v0  ;;  %8056 = vst [vmem:[#allocation66_spill] sm:$0xff] %v7144_v4  ;;  %v7147_v31 = vld [vmem:[#allocation10 + $0x200] sm:$0xff]  ;;  %v7151_v1 = vld [vmem:[#allocation10 + $0x210] sm:$0xff] }
 0xc0f   : > { %3556 = vmatpush1.msra.mxu0 %v7135_v61  ;;  %3627 = vmatpush1.msra.mxu1 %v7138_v62  ;;  %8057 = vst [vmem:[#allocation31_spill] sm:$0xff] %v7147_v31  ;;  %8058 = vst [vmem:[#allocation28_spill] sm:$0xff] %v7151_v1  ;;  %v8060_v61 = vld [vmem:[#allocation48_spill] sm:$0xff] }
 0xc10   : > { %3557 = vmatprep.subr.mxu0 %v7141_v0  ;;  %3628 = vmatprep.subr.mxu1 %v7144_v4  ;;  %v8059_v0 = vld [vmem:[#allocation46_spill] sm:$0xff]  ;;  %v2505_v8 = vadd.f32 %v8060_v61, %v8034_v40 }
 0xc11   : > { %3558 = vmatpush1.msra.mxu0 %v7147_v31  ;;  %3591 = vmatprep.mubr.f32.mxu0 %v8028_v12  ;;  %v2503_v62 = vadd.f32 %v8059_v0, %v8032_v35  ;;  %v8062_v0 = vld [vmem:[#allocation71_spill] sm:$0xff] }
 0xc12   : > { %3629 = vmatpush1.msra.mxu1 %v7151_v1  ;;  %3662 = vmatprep.mubr.f32.mxu1 %v8028_v12  ;;  %v2618_v35 = vadd.f32 %v8062_v0, %v6719_v25  ;;  %v8070_v0 = vld [vmem:[#allocation60_spill] sm:$0xff] }
 0xc13   : > { %3697 = vmatprep.subr.mxu0 %v6960_v18  ;;  %3768 = vmatprep.subr.mxu1 %v6963_v34 }
 0xcb2   : > { %v3423_v4 = vpop.f32.mrf.mxu0  ;;  %v3494_v27 = vpop.f32.mrf.mxu1 }
 0xcb3   : > { %v3499_v31 = vadd.f32 %v3423_v4, %v2503_v62  ;;  %v3501_v12 = vadd.f32 %v3494_v27, %v2616_v29  ;;  %v8067_v27 = vld [vmem:[#allocation58_spill] sm:$0xff] }
 0xcb4   : > { %v3425_v5 = vpop.f32.mrf.mxu0  ;;  %v3496_v34 = vpop.f32.mrf.mxu1 }
 0xcb5   : > { %v3503_v1 = vmul.f32 0.5, %v3499_v31  ;;  %v3500_v58 = vadd.f32 %v3425_v5, %v2505_v8  ;;  %v3502_v16 = vadd.f32 %v3496_v34, %v2618_v35  ;;  %v8068_v31 = vld [vmem:[#allocation59_spill] sm:$0xff] }
 0xcb7   : > { %4574 = vtanh.f32 %v3503_v1  ;;  %v3507_v18 = vmul.f32 0.5, %v3500_v58  ;;  %v3512_v14 = vmul.f32 0.5, %v3502_v16  ;;  %v8069_v1 = vld [vmem:[#allocation61_spill] sm:$0xff] }
 0xcb9   : > { %4576 = vtanh.f32 %v3507_v18 }
 0xcba   : > { %4578 = vtanh.f32 %v3501_v12 }
 0xcbb   : > { %4580 = vtanh.f32 %v3512_v14  ;;  %v8066_v14 = vld [vmem:[#allocation56_spill] sm:$0xff] }
 0xcc4   : > { %v4575_v61 = vpop.eup %4574 }
 0xcc5   : > { %v3505_v62 = vmul.f32 0.5, %v4575_v61  ;;  %v8071_v61 = vld [vmem:[#allocation50_spill] sm:$0xff] }
 0xcc6   : > { %v4577_v4 = vpop.eup %4576 }
 0xcc7   : > { %v3506_v40 = vadd.f32 0.5, %v3505_v62  ;;  %v3509_v3 = vmul.f32 0.5, %v4577_v4  ;;  %v4579_v28 = vpop.eup %4578  ;;  %v8072_v62 = vld [vmem:[#allocation55_spill] sm:$0xff]  ;;  %v8073_v4 = vld [vmem:[#allocation38_spill] sm:$0xff] }
 0xcc8   : > { %v4581_v12 = vpop.eup %4580 }
 0xcc9   : > { %v3510_v5 = vadd.f32 0.5, %v3509_v3  ;;  %v3517_v8 = vmul.f32 %v4579_v28, %v3506_v40  ;;  %v3514_v29 = vmul.f32 0.5, %v4581_v12  ;;  %v8063_v40 = vld [vmem:[#allocation35_spill] sm:$0xff]  ;;  %v8065_v3 = vld [vmem:[#allocation57_spill] sm:$0xff]  ;;  %v8074_v28 = vld [vmem:[#allocation40_spill] sm:$0xff] }
 0xcca   : > { %v8078_v12 = vld [vmem:[#allocation63_spill] sm:$0xff] }
 0xccb   : > { %v3516_v58 = vmul.f32 %v3510_v5, %v6975_v24  ;;  %v3515_v34 = vadd.f32 0.5, %v3514_v29  ;;  %v8064_v24 = vld [vmem:[#allocation37_spill] sm:$0xff]  ;;  %v8075_v5 = vld [vmem:[#allocation39_spill] sm:$0xff] }
 0xccc   : > { %v8079_v29 = vld [vmem:[#allocation65_spill] sm:$0xff] }
 0xccd   : > { %v7166_v18 = vadd.f32 %v3517_v8, %v3516_v58  ;;  %v8076_v8 = vld [vmem:[#allocation41_spill] sm:$0xff]  ;;  %v8077_v58 = vld [vmem:[#allocation62_spill] sm:$0xff] }
 0xccf   : > { %4582 = vtanh.f32 %v7166_v18 }
 0xcdc   : > { %v4583_v35 = vpop.eup %4582 }
 0xcdd   : > { %v3520_v16 = vmul.f32 %v4583_v35, %v3515_v34  ;;  %v8080_v34 = vld [vmem:[#allocation64_spill] sm:$0xff]  ;;  %v8081_v35 = vld [vmem:[#allocation66_spill] sm:$0xff] }
 0xcdf   : > { %4293 = vst [vmem:[%s5341_s3 + $0x20] sm:$0xff] %v3520_v16  ;;  %3592 = vmatmul.mubr.f32.vlgmr.msra.gmra.mxu0 %v3520_v16  ;;  %3663 = vmatmul.mubr.f32.vlgmr.msra.gmra.mxu1 %v3520_v16  ;;  %v8082_v16 = vld [vmem:[#allocation31_spill] sm:$0xff] }
 0xce0   : > { %3698 = vmatpush1.msra.mxu0 %v6884_v26  ;;  %3769 = vmatpush1.msra.mxu1 %v6887_v56 }
 0xce1   : > { %3699 = vmatprep.subr.mxu0 %v6890_v47  ;;  %3770 = vmatprep.subr.mxu1 %v6893_v32 }
 0xce2   : > { %3700 = vmatpush1.msra.mxu0 %v6896_v46  ;;  %3771 = vmatpush1.msra.mxu1 %v6899_v10 }
 0xce3   : > { %3701 = vmatprep.subr.mxu0 %v6985_v33  ;;  %3772 = vmatprep.subr.mxu1 %v6988_v59 }
 0xce4   : > { %3702 = vmatpush1.msra.mxu0 %v6991_v20  ;;  %3773 = vmatpush1.msra.mxu1 %v6994_v11 }
 0xce5   : > { %3703 = vmatprep.subr.mxu0 %v6997_v23  ;;  %3774 = vmatprep.subr.mxu1 %v7000_v2 }
 0xce6   : > { %3704 = vmatpush1.msra.mxu0 %v7003_v22  ;;  %3775 = vmatpush1.msra.mxu1 %v7006_v6 }
 0xce7   : > { %3705 = vmatprep.subr.mxu0 %v7009_v17  ;;  %3776 = vmatprep.subr.mxu1 %v7012_v48 }
 0xce8   : > { %3706 = vmatpush1.msra.mxu0 %v7015_v21  ;;  %3777 = vmatpush1.msra.mxu1 %v7018_v9 }
 0xce9   : > { %3707 = vmatprep.subr.mxu0 %v7021_v57  ;;  %3778 = vmatprep.subr.mxu1 %v7024_v39 }
 0xcea   : > { %3708 = vmatpush1.msra.mxu0 %v7027_v7  ;;  %3779 = vmatpush1.msra.mxu1 %v7030_v15 }
 0xceb   : > { %3709 = vmatprep.subr.mxu0 %v7033_v13  ;;  %3780 = vmatprep.subr.mxu1 %v7036_v36 }
 0xcec   : > { %3710 = vmatpush1.msra.mxu0 %v7039_v37  ;;  %3781 = vmatpush1.msra.mxu1 %v7042_v38 }
 0xced   : > { %3711 = vmatprep.subr.mxu0 %v7045_v41  ;;  %3782 = vmatprep.subr.mxu1 %v7048_v42 }
 0xcee   : > { %3712 = vmatpush1.msra.mxu0 %v7051_v43  ;;  %3783 = vmatpush1.msra.mxu1 %v7054_v45 }
 0xcef   : > { %3713 = vmatprep.subr.mxu0 %v7057_v19  ;;  %3784 = vmatprep.subr.mxu1 %v7060_v49 }
 0xcf0   : > { %3714 = vmatpush1.msra.mxu0 %v7063_v50  ;;  %3785 = vmatpush1.msra.mxu1 %v7066_v51 }
 0xcf1   : > { %3715 = vmatprep.subr.mxu0 %v7069_v52  ;;  %3786 = vmatprep.subr.mxu1 %v7072_v53 }
 0xcf2   : > { %3716 = vmatpush1.msra.mxu0 %v7075_v54  ;;  %3787 = vmatpush1.msra.mxu1 %v7078_v55 }
 0xcf3   : > { %3717 = vmatprep.subr.mxu0 %v7081_v63  ;;  %3788 = vmatprep.subr.mxu1 %v7084_v30 }
 0xcf4   : > { %3718 = vmatpush1.msra.mxu0 %v7087_v44  ;;  %3789 = vmatpush1.msra.mxu1 %v8063_v40 }
 0xcf5   : > { %3719 = vmatprep.subr.mxu0 %v8064_v24  ;;  %3790 = vmatprep.subr.mxu1 %v8065_v3 }
 0xcf6   : > { %3720 = vmatpush1.msra.mxu0 %v8066_v14  ;;  %3791 = vmatpush1.msra.mxu1 %v8067_v27 }
 0xcf7   : > { %3721 = vmatprep.subr.mxu0 %v8068_v31  ;;  %3792 = vmatprep.subr.mxu1 %v8069_v1  ;;  %v8091_v31 = vld [vmem:[#allocation72_spill] sm:$0xff] }
 0xcf8   : > { %3722 = vmatpush1.msra.mxu0 %v8070_v0  ;;  %3793 = vmatpush1.msra.mxu1 %v8071_v61  ;;  %v8089_v61 = vld [vmem:[#allocation78_spill] sm:$0xff]  ;;  %v2622_v27 = vadd.f32 %v8091_v31, %v6713_v60 }
 0xcf9   : > { %3723 = vmatprep.subr.mxu0 %v8072_v62  ;;  %3794 = vmatprep.subr.mxu1 %v8073_v4  ;;  %v8083_v62 = vmov 0.0   ;;  %v8084_v4 = vld [vmem:[#allocation28_spill] sm:$0xff] }
 0xcfa   : > { %3724 = vmatpush1.msra.mxu0 %v8074_v28  ;;  %3795 = vmatpush1.msra.mxu1 %v8075_v5  ;;  %v8085_v5 = vld [vmem:[#allocation34_spill] sm:$0xff] }
 0xcfb   : > { %3725 = vmatprep.subr.mxu0 %v8076_v8  ;;  %3796 = vmatprep.subr.mxu1 %v8077_v58  ;;  %v8086_v8 = vld [vmem:[#allocation36_spill] sm:$0xff]  ;;  %v8087_v58 = vld [vmem:[#allocation75_spill] sm:$0xff] }
 0xcfc   : > { %3726 = vmatpush1.msra.mxu0 %v8078_v12  ;;  %3797 = vmatpush1.msra.mxu1 %v8079_v29  ;;  %v8088_v12 = vld [vmem:[#allocation73_spill] sm:$0xff] }
 0xcfd   : > { %3727 = vmatprep.subr.mxu0 %v8080_v34  ;;  %3798 = vmatprep.subr.mxu1 %v8081_v35  ;;  %v2509_v28 = vadd.f32 %v8088_v12, %v8087_v58  ;;  %v8090_v34 = vld [vmem:[#allocation74_spill] sm:$0xff]  ;;  %v8092_v12 = vld [vmem:[#allocation79_spill] sm:$0xff] }
 0xcfe   : > { %3728 = vmatpush1.msra.mxu0 %v8082_v16  ;;  %3761 = vmatprep.mubr.f32.mxu0 %v8083_v62  ;;  %v2511_v0 = vadd.f32 %v8090_v34, %v8089_v61  ;;  %v2624_v58 = vadd.f32 %v8092_v12, %v6719_v25 }
 0xcff   : > { %3799 = vmatpush1.msra.mxu1 %v8084_v4  ;;  %3832 = vmatprep.mubr.f32.mxu1 %v8083_v62 }
 0xd00   : > { %3867 = vmatprep.subr.mxu0 %v8085_v5  ;;  %3938 = vmatprep.subr.mxu1 %v8086_v8 }
 0xd9f   : > { %v3593_v29 = vpop.f32.mrf.mxu0  ;;  %v3664_v1 = vpop.f32.mrf.mxu1 }
 0xda0   : > { %v3669_v35 = vadd.f32 %v3593_v29, %v2509_v28  ;;  %v3671_v62 = vadd.f32 %v3664_v1, %v2622_v27 }
 0xda1   : > { %v3595_v16 = vpop.f32.mrf.mxu0  ;;  %v3666_v8 = vpop.f32.mrf.mxu1 }
 0xda2   : > { %v3673_v4 = vmul.f32 0.5, %v3669_v35  ;;  %v3670_v14 = vadd.f32 %v3595_v16, %v2511_v0  ;;  %v3672_v3 = vadd.f32 %v3666_v8, %v2624_v58 }
 0xda4   : > { %4584 = vtanh.f32 %v3673_v4  ;;  %v3677_v5 = vmul.f32 0.5, %v3670_v14  ;;  %v3682_v24 = vmul.f32 0.5, %v3672_v3 }
 0xda6   : > { %4586 = vtanh.f32 %v3677_v5 }
 0xda7   : > { %4588 = vtanh.f32 %v3671_v62 }
 0xda8   : > { %4590 = vtanh.f32 %v3682_v24 }
 0xdb1   : > { %v4585_v34 = vpop.eup %4584 }
 0xdb2   : > { %v3675_v28 = vmul.f32 0.5, %v4585_v34 }
 0xdb3   : > { %v4587_v29 = vpop.eup %4586 }
 0xdb4   : > { %v3676_v61 = vadd.f32 0.5, %v3675_v28  ;;  %v3679_v40 = vmul.f32 0.5, %v4587_v29  ;;  %v4589_v31 = vpop.eup %4588 }
 0xdb5   : > { %v4591_v1 = vpop.eup %4590 }
 0xdb6   : > { %v3680_v0 = vadd.f32 0.5, %v3679_v40  ;;  %v3687_v4 = vmul.f32 %v4589_v31, %v3676_v61  ;;  %v3684_v62 = vmul.f32 0.5, %v4591_v1 }
 0xdb8   : > { %v3686_v14 = vmul.f32 %v3680_v0, %v7166_v18  ;;  %v3685_v58 = vadd.f32 0.5, %v3684_v62 }
 0xdba   : > { %v7245_v27 = vadd.f32 %v3687_v4, %v3686_v14 }
 0xdbc   : > { %4592 = vtanh.f32 %v7245_v27 }
 0xdc9   : > { %v4593_v3 = vpop.eup %4592 }
 0xdca   : > { %v3690_v35 = vmul.f32 %v4593_v3, %v3685_v58  ;;  %v8121_v58 = vld [vmem:[#allocation77_spill] sm:$0xff] }
 0xdcc   : > { %4294 = vst [vmem:[%s5341_s3 + $0x28] sm:$0xff] %v3690_v35  ;;  %3762 = vmatmul.mubr.f32.vlgmr.msra.gmra.mxu0 %v3690_v35  ;;  %3833 = vmatmul.mubr.f32.vlgmr.msra.gmra.mxu1 %v3690_v35 }
 0xdcd   : > { %3868 = vmatpush1.msra.mxu0 %v6884_v26  ;;  %3939 = vmatpush1.msra.mxu1 %v6887_v56  ;;  %v8093_v26 = vld [vmem:[#allocation35_spill] sm:$0xff]  ;;  %v8094_v56 = vld [vmem:[#allocation37_spill] sm:$0xff] }
 0xdce   : > { %3869 = vmatprep.subr.mxu0 %v6890_v47  ;;  %3940 = vmatprep.subr.mxu1 %v6893_v32  ;;  %v8095_v47 = vld [vmem:[#allocation57_spill] sm:$0xff]  ;;  %v8096_v32 = vld [vmem:[#allocation56_spill] sm:$0xff] }
 0xdcf   : > { %3870 = vmatpush1.msra.mxu0 %v6896_v46  ;;  %3941 = vmatpush1.msra.mxu1 %v6899_v10  ;;  %v8097_v46 = vld [vmem:[#allocation58_spill] sm:$0xff]  ;;  %v8098_v10 = vld [vmem:[#allocation59_spill] sm:$0xff] }
 0xdd0   : > { %3871 = vmatprep.subr.mxu0 %v6985_v33  ;;  %3942 = vmatprep.subr.mxu1 %v6988_v59  ;;  %v8099_v33 = vld [vmem:[#allocation61_spill] sm:$0xff]  ;;  %v8100_v59 = vld [vmem:[#allocation60_spill] sm:$0xff] }
 0xdd1   : > { %3872 = vmatpush1.msra.mxu0 %v6991_v20  ;;  %3943 = vmatpush1.msra.mxu1 %v6994_v11  ;;  %v8101_v20 = vld [vmem:[#allocation50_spill] sm:$0xff]  ;;  %v8102_v11 = vld [vmem:[#allocation55_spill] sm:$0xff] }
 0xdd2   : > { %3873 = vmatprep.subr.mxu0 %v6997_v23  ;;  %3944 = vmatprep.subr.mxu1 %v7000_v2  ;;  %v8103_v23 = vld [vmem:[#allocation38_spill] sm:$0xff]  ;;  %v8104_v2 = vld [vmem:[#allocation40_spill] sm:$0xff] }
 0xdd3   : > { %3874 = vmatpush1.msra.mxu0 %v7003_v22  ;;  %3945 = vmatpush1.msra.mxu1 %v7006_v6  ;;  %v8105_v22 = vld [vmem:[#allocation39_spill] sm:$0xff]  ;;  %v8106_v6 = vld [vmem:[#allocation41_spill] sm:$0xff] }
 0xdd4   : > { %3875 = vmatprep.subr.mxu0 %v7009_v17  ;;  %3946 = vmatprep.subr.mxu1 %v7012_v48  ;;  %v8107_v17 = vld [vmem:[#allocation62_spill] sm:$0xff]  ;;  %v8108_v48 = vld [vmem:[#allocation63_spill] sm:$0xff] }
 0xdd5   : > { %3876 = vmatpush1.msra.mxu0 %v7015_v21  ;;  %3947 = vmatpush1.msra.mxu1 %v7018_v9  ;;  %v8109_v21 = vld [vmem:[#allocation65_spill] sm:$0xff]  ;;  %v8110_v9 = vld [vmem:[#allocation64_spill] sm:$0xff] }
 0xdd6   : > { %3877 = vmatprep.subr.mxu0 %v7021_v57  ;;  %3948 = vmatprep.subr.mxu1 %v7024_v39  ;;  %v8111_v57 = vld [vmem:[#allocation66_spill] sm:$0xff]  ;;  %v8112_v39 = vld [vmem:[#allocation31_spill] sm:$0xff] }
 0xdd7   : > { %3878 = vmatpush1.msra.mxu0 %v7027_v7  ;;  %3949 = vmatpush1.msra.mxu1 %v7030_v15  ;;  %v8113_v7 = vmov 0.0   ;;  %v8114_v15 = vld [vmem:[#allocation28_spill] sm:$0xff] }
 0xdd8   : > { %3879 = vmatprep.subr.mxu0 %v7033_v13  ;;  %3950 = vmatprep.subr.mxu1 %v7036_v36  ;;  %v8115_v13 = vld [vmem:[#allocation75_spill] sm:$0xff]  ;;  %v8116_v36 = vld [vmem:[#allocation30_spill] sm:$0xff] }
 0xdd9   : > { %3880 = vmatpush1.msra.mxu0 %v7039_v37  ;;  %3951 = vmatpush1.msra.mxu1 %v7042_v38  ;;  %v2515_v37 = vadd.f32 %v8116_v36, %v8115_v13  ;;  %v2521_v3 = vadd.f32 %v8121_v58, %v8115_v13 }
 0xdda   : > { %3881 = vmatprep.subr.mxu0 %v7045_v41  ;;  %3952 = vmatprep.subr.mxu1 %v7048_v42  ;;  %v8117_v41 = vld [vmem:[#allocation78_spill] sm:$0xff]  ;;  %v8118_v42 = vld [vmem:[#allocation53_spill] sm:$0xff] }
 0xddb   : > { %3882 = vmatpush1.msra.mxu0 %v7051_v43  ;;  %3953 = vmatpush1.msra.mxu1 %v7054_v45  ;;  %v2517_v43 = vadd.f32 %v8118_v42, %v8117_v41 }
 0xddc   : > { %3883 = vmatprep.subr.mxu0 %v7057_v19  ;;  %3954 = vmatprep.subr.mxu1 %v7060_v49 }
 0xddd   : > { %3884 = vmatpush1.msra.mxu0 %v7063_v50  ;;  %3955 = vmatpush1.msra.mxu1 %v7066_v51  ;;  %v8119_v50 = vld [vmem:[#allocation29_spill] sm:$0xff] }
 0xdde   : > { %3885 = vmatprep.subr.mxu0 %v7069_v52  ;;  %3956 = vmatprep.subr.mxu1 %v7072_v53  ;;  %v2628_v51 = vadd.f32 %v8119_v50, %v6713_v60 }
 0xddf   : > { %3886 = vmatpush1.msra.mxu0 %v7075_v54  ;;  %3957 = vmatpush1.msra.mxu1 %v7078_v55 }
 0xde0   : > { %3887 = vmatprep.subr.mxu0 %v7081_v63  ;;  %3958 = vmatprep.subr.mxu1 %v7084_v30  ;;  %v8120_v30 = vld [vmem:[#allocation49_spill] sm:$0xff] }
 0xde1   : > { %3888 = vmatpush1.msra.mxu0 %v7087_v44  ;;  %3959 = vmatpush1.msra.mxu1 %v8093_v26  ;;  %v2630_v44 = vadd.f32 %v8120_v30, %v6719_v25  ;;  %v8122_v26 = vld [vmem:[#allocation51_spill] sm:$0xff] }
 0xde2   : > { %3889 = vmatprep.subr.mxu0 %v8094_v56  ;;  %3960 = vmatprep.subr.mxu1 %v8095_v47  ;;  %v2523_v56 = vadd.f32 %v8122_v26, %v8117_v41 }
 0xde3   : > { %3890 = vmatpush1.msra.mxu0 %v8096_v32  ;;  %3961 = vmatpush1.msra.mxu1 %v8097_v46  ;;  %v8123_v46 = vld [vmem:[#allocation76_spill] sm:$0xff] }
 0xde4   : > { %3891 = vmatprep.subr.mxu0 %v8098_v10  ;;  %3962 = vmatprep.subr.mxu1 %v8099_v33  ;;  %v2634_v10 = vadd.f32 %v8123_v46, %v6713_v60 }
 0xde5   : > { %3892 = vmatpush1.msra.mxu0 %v8100_v59  ;;  %3963 = vmatpush1.msra.mxu1 %v8101_v20 }
 0xde6   : > { %3893 = vmatprep.subr.mxu0 %v8102_v11  ;;  %3964 = vmatprep.subr.mxu1 %v8103_v23 }
 0xde7   : > { %3894 = vmatpush1.msra.mxu0 %v8104_v2  ;;  %3965 = vmatpush1.msra.mxu1 %v8105_v22  ;;  %v8124_v2 = vld [vmem:[#allocation80_spill] sm:$0xff] }
 0xde8   : > { %3895 = vmatprep.subr.mxu0 %v8106_v6  ;;  %3966 = vmatprep.subr.mxu1 %v8107_v17  ;;  %v2636_v22 = vadd.f32 %v8124_v2, %v6719_v25 }
 0xde9   : > { %3896 = vmatpush1.msra.mxu0 %v8108_v48  ;;  %3967 = vmatpush1.msra.mxu1 %v8109_v21 }
 0xdea   : > { %3897 = vmatprep.subr.mxu0 %v8110_v9  ;;  %3968 = vmatprep.subr.mxu1 %v8111_v57 }
 0xdeb   : > { %3898 = vmatpush1.msra.mxu0 %v8112_v39  ;;  %3931 = vmatprep.mubr.f32.mxu0 %v8113_v7 }
 0xdec   : > { %3969 = vmatpush1.msra.mxu1 %v8114_v15  ;;  %4002 = vmatprep.mubr.f32.mxu1 %v8113_v7 }
 0xe8c   : > { %v3763_v38 = vpop.f32.mrf.mxu0  ;;  %v3834_v19 = vpop.f32.mrf.mxu1 }
 0xe8d   : > { %v3839_v45 = vadd.f32 %v3763_v38, %v2515_v37  ;;  %v3841_v54 = vadd.f32 %v3834_v19, %v2628_v51 }
 0xe8e   : > { %v3765_v49 = vpop.f32.mrf.mxu0  ;;  %v3836_v63 = vpop.f32.mrf.mxu1 }
 0xe8f   : > { %v3843_v52 = vmul.f32 0.5, %v3839_v45  ;;  %v3840_v53 = vadd.f32 %v3765_v49, %v2517_v43  ;;  %v3842_v18 = vadd.f32 %v3836_v63, %v2630_v44 }
 0xe91   : > { %4594 = vtanh.f32 %v3843_v52  ;;  %v3847_v55 = vmul.f32 0.5, %v3840_v53  ;;  %v3852_v40 = vmul.f32 0.5, %v3842_v18 }
 0xe93   : > { %4596 = vtanh.f32 %v3847_v55 }
 0xe94   : > { %4598 = vtanh.f32 %v3841_v54 }
 0xe95   : > { %4600 = vtanh.f32 %v3852_v40 }
 0xe9e   : > { %v4595_v24 = vpop.eup %4594 }
 0xe9f   : > { %v3845_v61 = vmul.f32 0.5, %v4595_v24 }
 0xea0   : > { %v4597_v16 = vpop.eup %4596 }
 0xea1   : > { %v3846_v5 = vadd.f32 0.5, %v3845_v61  ;;  %v3849_v8 = vmul.f32 0.5, %v4597_v16  ;;  %v4599_v12 = vpop.eup %4598 }
 0xea2   : > { %v4601_v0 = vpop.eup %4600 }
 0xea3   : > { %v3850_v34 = vadd.f32 0.5, %v3849_v8  ;;  %v3857_v28 = vmul.f32 %v4599_v12, %v3846_v5  ;;  %v3854_v4 = vmul.f32 0.5, %v4601_v0 }
 0xea5   : > { %v3856_v29 = vmul.f32 %v3850_v34, %v7245_v27  ;;  %v3855_v14 = vadd.f32 0.5, %v3854_v4 }
 0xea7   : > { %v3858_v31 = vadd.f32 %v3857_v28, %v3856_v29 }
 0xea9   : > { %4602 = vtanh.f32 %v3858_v31 }
 0xeb6   : > { %v4603_v1 = vpop.eup %4602 }
 0xeb7   : > { %v3860_v62 = vmul.f32 %v4603_v1, %v3855_v14 }
 0xeb9   : > { %4295 = vst [vmem:[%s5341_s3 + $0x30] sm:$0xff] %v3860_v62  ;;  %3932 = vmatmul.mubr.f32.vlgmr.msra.gmra.mxu0 %v3860_v62  ;;  %4003 = vmatmul.mubr.f32.vlgmr.msra.gmra.mxu1 %v3860_v62 }
 0xf79   : > { %v3933_v35 = vpop.f32.mrf.mxu0  ;;  %v4004_v32 = vpop.f32.mrf.mxu1 }
 0xf7a   : > { %v4009_v47 = vadd.f32 %v3933_v35, %v2521_v3  ;;  %v4011_v20 = vadd.f32 %v4004_v32, %v2634_v10 }
 0xf7b   : > { %v3935_v27 = vpop.f32.mrf.mxu0  ;;  %v4006_v23 = vpop.f32.mrf.mxu1 }
 0xf7c   : > { %v4013_v33 = vmul.f32 0.5, %v4009_v47  ;;  %v4010_v59 = vadd.f32 %v3935_v27, %v2523_v56  ;;  %v4012_v6 = vadd.f32 %v4006_v23, %v2636_v22 }
 0xf7e   : > { %4604 = vtanh.f32 %v4013_v33  ;;  %v4017_v11 = vmul.f32 0.5, %v4010_v59  ;;  %v4022_v17 = vmul.f32 0.5, %v4012_v6 }
 0xf80   : > { %4606 = vtanh.f32 %v4017_v11 }
 0xf81   : > { %4608 = vtanh.f32 %v4011_v20 }
 0xf82   : > { %4610 = vtanh.f32 %v4022_v17 }
 0xf8b   : > { %v4605_v48 = vpop.eup %4604 }
 0xf8c   : > { %v4015_v21 = vmul.f32 0.5, %v4605_v48 }
 0xf8d   : > { %v4607_v9 = vpop.eup %4606 }
 0xf8e   : > { %v4016_v57 = vadd.f32 0.5, %v4015_v21  ;;  %v4019_v60 = vmul.f32 0.5, %v4607_v9  ;;  %v4609_v39 = vpop.eup %4608 }
 0xf8f   : > { %v4611_v37 = vpop.eup %4610 }
 0xf90   : > { %v4020_v7 = vadd.f32 0.5, %v4019_v60  ;;  %v4027_v15 = vmul.f32 %v4609_v39, %v4016_v57  ;;  %v4024_v25 = vmul.f32 0.5, %v4611_v37 }
 0xf92   : > { %v4026_v13 = vmul.f32 %v4020_v7, %v3858_v31  ;;  %v4025_v38 = vadd.f32 0.5, %v4024_v25 }
 0xf94   : > { %v4028_v36 = vadd.f32 %v4027_v15, %v4026_v13 }
 0xf96   : > { %4612 = vtanh.f32 %v4028_v36  ;;  %4034 = vst [vmem:[#allocation19 + $0x8] sm:$0xff] %v4028_v36 }
 0xfa3   : > { %v4613_v41 = vpop.eup %4612 }
 0xfa4   : > { %v4030_v42 = vmul.f32 %v4613_v41, %v4025_v38 }
 0xfa6   : > { %4296 = vst [vmem:[%s5341_s3 + $0x38] sm:$0xff] %v4030_v42  ;;  %4033 = vst [vmem:[#allocation17 + $0x8] sm:$0xff] %v4030_v42 }
 0xfa7   : > { %4939 = shalt.err (!%p4936_p11)
}
 0xfa8   : > { %s5088_s12 = smov 128   ;;  %s5089_s26 = smov 8  }
 0xfa9   : > { %4336 = dma.vmem_to_hbm [thread:$0]  (%p5274_p6), %s4066_s6, 256, %s7427_s8, [#allocation18], %s5088_s12, %s5088_s12, %s5089_s26  }
 0xfaa   : > { %s4036_s13 = scalar_lea.sflag [#allocation6], %s5319_s4  ;;  %s4950_s23 = scalar_lea.vmem %s7338_s17, 1024 }
 0xfab   : > { %p4951_p12 = scmp.ne.s32.totalorder %s7338_s17, %s4950_s23  ;;  %p8125_p0 = scmp.ne.s32.totalorder %s7672_s28, 0 }
 0xfac   : > { %s5090_s22 = smov [#allocation16]  }
 0xfad   : > { %p4952_p4 = pnand %p4951_p12, %p8125_p0  ;;  %s4954_s3 = sshll.u32 %s5090_s22, 4  ;;  %s4955_s3 = int_to_ptr.vmem [resolvable:$false] %s4954_s3 }
 0xfae   : > { %s4956_s5 = scalar_lea.vmem %s4955_s3, 2048  ;;  %p4957_p13 = scmp.lt.s32.totalorder %s7338_s17, %s4955_s3 }
 0xfaf   : > { %p4953_p9 = pneg %p4952_p4  ;;  %p4958_p3 = scmp.lt.s32.totalorder %s4956_s5, %s4950_s23 }
 0xfb1   : > { %p4959_p1 = por %p4958_p3, %p4957_p13 }
 0xfb3   : > { %p4960_p2 = pnand %p4959_p1, %p4953_p9 }
 0xfb5   : > { %4963 = shalt.err (!%p4960_p2)
}
 0xfb6   : > { %s4964_s6 = scalar_lea.hbm %s7336_s15, 1024  ;;  %s4968_s19 = scalar_lea.hbm %s7426_s7, 2048 }
 0xfb7   : > { %p4965_p8 = scmp.ne.s32.totalorder %s7336_s15, %s4964_s6  ;;  %p4969_p7 = scmp.lt.s32.totalorder %s7336_s15, %s7426_s7 }
 0xfb8   : > { %p4970_p11 = scmp.lt.s32.totalorder %s4968_s19, %s4964_s6 }
 0xfb9   : > { %p4966_p5 = pnand %p4965_p8, %p8125_p0 }
 0xfba   : > { %p4971_p12 = por %p4970_p11, %p4969_p7 }
 0xfbb   : > { %p4967_p10 = pneg %p4966_p5 }
 0xfbd   : > { %p4972_p4 = pnand %p4971_p12, %p4967_p10 }
 0xfbf   : > { %4975 = shalt.err (!%p4972_p4)
}
 0xfc0   : > { %4334 = dma.vmem_to_hbm [thread:$0]  (%p8125_p0), %s7338_s17, 1024, %s7336_s15, %s4036_s13, %s5088_s12, %s5088_s12, %s5089_s26  }
 0xfc1   : > { %s4976_s20 = scalar_lea.vmem %s7341_s29, 256  ;;  %p4983_p1 = scmp.lt.s32.totalorder %s7341_s29, %s7341_s29 }
 0xfc2   : > { %p4977_p9 = scmp.ne.s32.totalorder %s7341_s29, %s4976_s20  ;;  %p4984_p2 = scmp.lt.s32.totalorder %s4976_s20, %s4976_s20 }
 0xfc4   : > { %p4978_p13 = pnand %p4977_p9, %p5274_p6  ;;  %p4985_p8 = por %p4984_p2, %p4983_p1 }
 0xfc6   : > { %p4979_p3 = pneg %p4978_p13 }
 0xfc8   : > { %p4986_p5 = pnand %p4985_p8, %p4979_p3 }
 0xfca   : > { %4989 = shalt.err (!%p4986_p5)
}
 0xfcb   : > { %4338 = dma.vmem_to_hbm [thread:$0]  (%p5274_p6), %s7341_s29, 256, %s7428_s9, [#allocation18], %s5088_s12, %s5088_s12, %s5089_s26  }
 0xfcc   : > { %5041 = dma.done.wait (%p5274_p6), [#allocation18], 512  }
 0xfcd   : > { %5043 = vsyncadd (%p5274_p6), [#allocation18], 4294966784 }
 0xfce PF: > { %s4103_s17 = sand.u32 1, %s5050_s30   ;;  %p8126_p0 = scmp.ne.s32.totalorder %s7673_s27, 0 }
 0xfcf   : > { %p8127_p10 = scmp.ge.s32.totalorder %s5070_s14, 2  ;;  %s4104_s15 = scalar_lea.sflag [#allocation6], %s4103_s17 }
 0xfd1   : > { %p4368_p7 = pnand %p8127_p10, %p8126_p0 }
 0xfd3   : > { %p4369_p11 = pneg %p4368_p7 }
 0xfd5   : > { %5045 = dma.done.wait (%p4369_p11), %s4104_s15, 1024  }
 0xfd6   : > { %5047 = vsyncadd (%p4369_p11), %s4104_s15, 4294966272  ;;  %s30_s14 = sadd.s32 1, %s5070_s14   ;;  %s8128_s12 = sld [smem:[#allocation26_spill]] }
 0xfd7   : > { %p27_p12 = scmp.ge.s32.totalorder %s30_s14, 4   ;;  %s8129_s13 = sld [smem:[#allocation27_spill]] }
 0xfd8   : > { %s8130_s30 = smov %s5054_s10  ;;  %s8131_s10 = smov %s5058_s11 }
 0xfd9   : > { %s8132_s11 = smov %s5291_s24  ;;  %29 = sbr.rel (!%p27_p12) target bundleno = 17 (0x11), region = 166 }
 0xfde   :  { %4109 = vsyncpa [#allocation5], 1 }
 0xfdf   :  { %4111 = vsyncpa [#allocation5 + $0x1], 1 }
 0xfe0   :  { %4112 = vsyncpa [#allocation8], 1 }
 0xfe1   :  { %4113 = vsyncpa [#allocation11], 1 }
 0xfe2   :  { %4114 = vsyncpa [#allocation14], 1 }
 0xfe3   :  { %4115 = vsyncpa [#allocation6], 1 }
 0xfe4   :  { %4117 = vsyncpa [#allocation6 + $0x1], 1 }
 0xfe5   :  { %4118 = vsyncpa [#allocation18], 1 }

</bundles_post_ra>
